<compile_context>
chip_gen: v6e
topology: v6e:2x2x1
jax: 0.10.0
libtpu: 0.0.40
codegen_flags: <defaults>
</compile_context>

<pallas_src>
import functools

import jax
import jax.numpy as jnp
from jax.experimental import pallas as pl
from jax.experimental.pallas import tpu as pltpu


def _round_up(x, m):
    return ((x + m - 1) // m) * m


def _cdiv(a, b):
    return (a + b - 1) // b


def mlp_kernel(x_ref, w1_ref, b1_ref, w2_ref, b2_ref, w3_ref, b3_ref, o_ref):
    # x arrives in f32; cast to bf16 in-kernel (VPU cast, hidden under the MXU)
    # instead of a separate wrapper pre-pass over x in HBM.
    x = x_ref[...].astype(jnp.bfloat16)
    # Layer 1: bf16 matmul on the MXU with f32 accumulation; bias + ReLU on the VPU.
    h1 = jnp.dot(x, w1_ref[...], preferred_element_type=jnp.float32)
    h1 = jnp.maximum(h1 + b1_ref[...], 0.0)
    # Layer 2 (Dropout == identity in eval mode).
    h2 = jnp.dot(h1.astype(jnp.bfloat16), w2_ref[...],
                 preferred_element_type=jnp.float32)
    h2 = jnp.maximum(h2 + b2_ref[...], 0.0)
    # Output layer (lane-padded to a multiple of 128; no activation).
    out = jnp.dot(h2.astype(jnp.bfloat16), w3_ref[...],
                  preferred_element_type=jnp.float32)
    o_ref[...] = (out + b3_ref[...]).astype(o_ref.dtype)


def prepare_params(w1, b1, w2, b2, w3, b3):
    """One-time (offline) parameter prep. Call once at init/model-load time, NOT per
    forward pass: bf16 weight storage, 128-lane-padded W3/b3, 128-aligned contraction
    dim on W1 (zero rows). Biases stay f32 (added to the f32 accumulator)."""
    in_size = w1.shape[0]
    out_size = w3.shape[1]
    in_pad = _round_up(in_size, 128)
    out_pad = _round_up(out_size, 128)
    w1p = jnp.pad(w1.astype(jnp.bfloat16), ((0, in_pad - in_size), (0, 0)))
    w2p = w2.astype(jnp.bfloat16)
    w3p = jnp.pad(w3.astype(jnp.bfloat16), ((0, 0), (0, out_pad - out_size)))
    b3p = jnp.pad(b3, ((0, 0), (0, out_pad - out_size)))
    return w1p, b1, w2p, b2, w3p, b3p


def _choose_block_m(batch, max_block_m):
    """Batch tile size: multiple of 16 (bf16 sublane packing), balanced tiles (no
    mostly-zero last tile), and >= 2 tiles once the batch is big enough so the
    'parallel' grid axis shards across v7x's two TensorCores."""
    b16 = _round_up(batch, 16)
    if b16 < 64:
        return b16                      # tiny batch: single tile, no wasted rows
    n_tiles = max(2, _cdiv(b16, max_block_m))
    return min(_round_up(_cdiv(b16, n_tiles), 16), max_block_m)


@functools.partial(jax.jit, static_argnames=("out_size", "max_block_m"))
def mlp_forward(x, w1, b1, w2, b2, w3, b3, *, out_size, max_block_m=256):
    """Fused MLP forward. Parameters must come from `prepare_params` (bf16,
    [in, out] layout, W1 K-dim and W3/b3 lane-padded)."""
    B, in_size = x.shape
    in_pad, h1_size = w1.shape
    h2_size = w2.shape[1]
    out_pad = w3.shape[1]

    block_m = _choose_block_m(B, max_block_m)
    B_pad = _round_up(B, block_m)

    # Zero-pad batch rows (and K columns if the vocab isn't 128-aligned). This is the
    # only wrapper-side work on x and is a no-op when shapes already line up.
    if B_pad != B or in_pad != in_size:
        x = jnp.pad(x, ((0, B_pad - B), (0, in_pad - in_size)))

    grid = (B_pad // block_m,)  # batch tiles; weights are grid-invariant (constant index_map)

    out = pl.pallas_call(
        mlp_kernel,
        out_shape=jax.ShapeDtypeStruct((B_pad, out_pad), jnp.float32),
        grid_spec=pltpu.PrefetchScalarGridSpec(
            num_scalar_prefetch=0,
            grid=grid,
            in_specs=[
                pl.BlockSpec((block_m, in_pad), lambda i: (i, 0)),     # x tile (f32)
                pl.BlockSpec((in_pad, h1_size), lambda i: (0, 0)),     # W1 (resident, bf16)
                pl.BlockSpec((1, h1_size), lambda i: (0, 0)),          # b1 (f32)
                pl.BlockSpec((h1_size, h2_size), lambda i: (0, 0)),    # W2 (resident, bf16)
                pl.BlockSpec((1, h2_size), lambda i: (0, 0)),          # b2 (f32)
                pl.BlockSpec((h2_size, out_pad), lambda i: (0, 0)),    # W3 (padded, resident)
                pl.BlockSpec((1, out_pad), lambda i: (0, 0)),          # b3 (padded, f32)
            ],
            out_specs=pl.BlockSpec((block_m, out_pad), lambda i: (i, 0)),
        ),
        compiler_params=pltpu.CompilerParams(
            dimension_semantics=("parallel",),       # shard batch tiles across TCs (v7x)
            vmem_limit_bytes=32 * 1024 * 1024,       # safe for max_block_m tiles on v5e too
        ),
    )(x, w1, b1, w2, b2, w3, b3)

    # Padded rows/cols are garbage-free zero-input results; keep discarding them.
    return out[:B, :out_size]


def init_linear_params(key, in_features, out_features):
    """Deterministic init mimicking nn.Linear's uniform(-1/sqrt(in), 1/sqrt(in))."""
    k_w, k_b = jax.random.split(key)
    bound = 1.0 / jnp.sqrt(jnp.float32(in_features))
    # stored as [in, out] == W.T of the PyTorch weight
    w = jax.random.uniform(k_w, (in_features, out_features), jnp.float32, -bound, bound)
    b = jax.random.uniform(k_b, (1, out_features), jnp.float32, -bound, bound)
    return w, b


def reference_forward(x, w1, b1, w2, b2, w3, b3):
    # Mirrors the kernel's bf16 operand storage / f32 accumulation.
    f = lambda a: a.astype(jnp.bfloat16).astype(jnp.float32)
    h1 = jnp.maximum(f(x) @ f(w1) + b1, 0.0)
    h2 = jnp.maximum(f(h1) @ f(w2) + b2, 0.0)
    return f(h2) @ f(w3) + b3


if __name__ == "__main__":
    # Small synthetic shapes consistent with the module:
    #   input_size  = vocab size of CountVectorizer  -> 256 (synthetic)
    #   hidden_sizes = [1024, 1024]                  (as in the module)
    #   output_size = number of distinct answers     -> 16  (synthetic)
    batch = 12              # deliberately not a multiple of 16 (exercises row padding)
    input_size = 256
    hidden_sizes = [1024, 1024]
    output_size = 16

    key = jax.random.PRNGKey(0)
    k_x, k_x2, k1, k2, k3 = jax.random.split(key, 5)

    # Bag-of-words-like input (non-negative counts), float32 as PyTorch would see it.
    x = jax.random.randint(k_x, (batch, input_size), 0, 3).astype(jnp.float32)

    w1, b1 = init_linear_params(k1, input_size, hidden_sizes[0])
    w2, b2 = init_linear_params(k2, hidden_sizes[0], hidden_sizes[1])
    w3, b3 = init_linear_params(k3, hidden_sizes[1], output_size)

    # One-time parameter prep (hoisted out of the per-call jitted forward).
    params = prepare_params(w1, b1, w2, b2, w3, b3)

    out = mlp_forward(x, *params, out_size=output_size)
    out = jax.block_until_ready(out)
    ref = reference_forward(x, w1, b1, w2, b2, w3, b3)
    assert out.shape == (batch, output_size)
    assert jnp.allclose(out, ref, atol=2e-2, rtol=2e-2), "mismatch vs JAX reference (B=12)"

    # Also exercise the multi-tile path (grid of 2 balanced batch tiles / megacore split).
    batch2 = 80
    x2 = jax.random.randint(k_x2, (batch2, input_size), 0, 3).astype(jnp.float32)
    out2 = jax.block_until_ready(mlp_forward(x2, *params, out_size=output_size))
    ref2 = reference_forward(x2, w1, b1, w2, b2, w3, b3)
    assert out2.shape == (batch2, output_size)
    assert jnp.allclose(out2, ref2, atol=2e-2, rtol=2e-2), "mismatch vs JAX reference (B=80)"

    print("KERNEL_OK")
</pallas_src>

<mosaic_0001>
module attributes {stable_mosaic.version = 11 : i64} {
  func.func @mlp_kernel(%arg0: i32, %arg1: memref<16x256xf32, #tpu.memory_space<vmem>>, %arg2: memref<256x1024xbf16, #tpu.memory_space<vmem>>, %arg3: memref<1x1024xf32, #tpu.memory_space<vmem>>, %arg4: memref<1024x1024xbf16, #tpu.memory_space<vmem>>, %arg5: memref<1x1024xf32, #tpu.memory_space<vmem>>, %arg6: memref<1024x128xbf16, #tpu.memory_space<vmem>>, %arg7: memref<1x128xf32, #tpu.memory_space<vmem>>, %arg8: memref<16x128xf32, #tpu.memory_space<vmem>>) attributes {dimension_semantics = [#tpu.dimension_semantics<parallel>], iteration_bounds = array<i64: 1>, scalar_prefetch = 0 : i64, scratch_operands = 0 : i64, tpu.core_type = #tpu.core_type<tc>, window_params = [{transform_indices = @transform_0, window_bounds = array<i64: 16, 256>}, {pipeline_mode = #tpu.pipeline_mode<synchronous>, transform_indices = @transform_1, window_bounds = array<i64: 256, 1024>}, {pipeline_mode = #tpu.pipeline_mode<synchronous>, transform_indices = @transform_2, window_bounds = array<i64: 1, 1024>}, {pipeline_mode = #tpu.pipeline_mode<synchronous>, transform_indices = @transform_3, window_bounds = array<i64: 1024, 1024>}, {pipeline_mode = #tpu.pipeline_mode<synchronous>, transform_indices = @transform_4, window_bounds = array<i64: 1, 1024>}, {pipeline_mode = #tpu.pipeline_mode<synchronous>, transform_indices = @transform_5, window_bounds = array<i64: 1024, 128>}, {pipeline_mode = #tpu.pipeline_mode<synchronous>, transform_indices = @transform_6, window_bounds = array<i64: 1, 128>}, {transform_indices = @transform_7, window_bounds = array<i64: 16, 128>}]} {
    %c0 = arith.constant 0 : index
    %c0_0 = arith.constant 0 : index
    %0 = vector.load %arg1[%c0, %c0_0] : memref<16x256xf32, #tpu.memory_space<vmem>>, vector<16x256xf32>
    %1 = arith.truncf %0 : vector<16x256xf32> to vector<16x256xbf16>
    %c0_1 = arith.constant 0 : index
    %c0_2 = arith.constant 0 : index
    %2 = vector.load %arg2[%c0_1, %c0_2] : memref<256x1024xbf16, #tpu.memory_space<vmem>>, vector<256x1024xbf16>
    %cst = arith.constant dense<0.000000e+00> : vector<16x1024xf32>
    %3 = tpu.matmul %1, %2, %cst {dimension_numbers = #tpu.dot_dimension_numbers<[1], [0], [0], [1], [0, 0, 1, 1], [], []>} : vector<16x256xbf16>, vector<256x1024xbf16>, vector<16x1024xf32> -> vector<16x1024xf32>
    %c0_3 = arith.constant 0 : index
    %c0_4 = arith.constant 0 : index
    %4 = vector.load %arg3[%c0_3, %c0_4] : memref<1x1024xf32, #tpu.memory_space<vmem>>, vector<1x1024xf32>
    %5 = vector.broadcast %4 : vector<1x1024xf32> to vector<16x1024xf32>
    %6 = arith.addf %3, %5 : vector<16x1024xf32>
    %cst_5 = arith.constant 0.000000e+00 : f32
    %7 = vector.broadcast %cst_5 : f32 to vector<16x1024xf32>
    %8 = arith.maximumf %6, %7 : vector<16x1024xf32>
    %9 = arith.truncf %8 : vector<16x1024xf32> to vector<16x1024xbf16>
    %c0_6 = arith.constant 0 : index
    %c0_7 = arith.constant 0 : index
    %10 = vector.load %arg4[%c0_6, %c0_7] : memref<1024x1024xbf16, #tpu.memory_space<vmem>>, vector<1024x1024xbf16>
    %cst_8 = arith.constant dense<0.000000e+00> : vector<16x1024xf32>
    %11 = tpu.matmul %9, %10, %cst_8 {dimension_numbers = #tpu.dot_dimension_numbers<[1], [0], [0], [1], [0, 0, 1, 1], [], []>} : vector<16x1024xbf16>, vector<1024x1024xbf16>, vector<16x1024xf32> -> vector<16x1024xf32>
    %c0_9 = arith.constant 0 : index
    %c0_10 = arith.constant 0 : index
    %12 = vector.load %arg5[%c0_9, %c0_10] : memref<1x1024xf32, #tpu.memory_space<vmem>>, vector<1x1024xf32>
    %13 = vector.broadcast %12 : vector<1x1024xf32> to vector<16x1024xf32>
    %14 = arith.addf %11, %13 : vector<16x1024xf32>
    %cst_11 = arith.constant 0.000000e+00 : f32
    %15 = vector.broadcast %cst_11 : f32 to vector<16x1024xf32>
    %16 = arith.maximumf %14, %15 : vector<16x1024xf32>
    %17 = arith.truncf %16 : vector<16x1024xf32> to vector<16x1024xbf16>
    %c0_12 = arith.constant 0 : index
    %c0_13 = arith.constant 0 : index
    %18 = vector.load %arg6[%c0_12, %c0_13] : memref<1024x128xbf16, #tpu.memory_space<vmem>>, vector<1024x128xbf16>
    %cst_14 = arith.constant dense<0.000000e+00> : vector<16x128xf32>
    %19 = tpu.matmul %17, %18, %cst_14 {dimension_numbers = #tpu.dot_dimension_numbers<[1], [0], [0], [1], [0, 0, 1, 1], [], []>} : vector<16x1024xbf16>, vector<1024x128xbf16>, vector<16x128xf32> -> vector<16x128xf32>
    %c0_15 = arith.constant 0 : index
    %c0_16 = arith.constant 0 : index
    %20 = vector.load %arg7[%c0_15, %c0_16] : memref<1x128xf32, #tpu.memory_space<vmem>>, vector<1x128xf32>
    %21 = vector.broadcast %20 : vector<1x128xf32> to vector<16x128xf32>
    %22 = arith.addf %19, %21 : vector<16x128xf32>
    %c0_17 = arith.constant 0 : index
    %c0_18 = arith.constant 0 : index
    %23 = vector.load %arg8[%c0_17, %c0_18] : memref<16x128xf32, #tpu.memory_space<vmem>>, vector<16x128xf32>
    tpu.vector_store %arg8[%c0_17, %c0_18], %22 {strides = array<i32>} : memref<16x128xf32, #tpu.memory_space<vmem>>, vector<16x128xf32>,
    return
  }
  func.func @transform_0(%arg0: i32) -> (i32, i32) {
    %c0_i32 = arith.constant 0 : i32
    %c0_i32_0 = arith.constant 0 : i32
    return %arg0, %c0_i32 : i32, i32
  }
  func.func @transform_1(%arg0: i32) -> (i32, i32) {
    %c0_i32 = arith.constant 0 : i32
    %c0_i32_0 = arith.constant 0 : i32
    %c0_i32_1 = arith.constant 0 : i32
    return %c0_i32, %c0_i32_0 : i32, i32
  }
  func.func @transform_2(%arg0: i32) -> (i32, i32) {
    %c0_i32 = arith.constant 0 : i32
    %c0_i32_0 = arith.constant 0 : i32
    %c0_i32_1 = arith.constant 0 : i32
    return %c0_i32, %c0_i32_0 : i32, i32
  }
  func.func @transform_3(%arg0: i32) -> (i32, i32) {
    %c0_i32 = arith.constant 0 : i32
    %c0_i32_0 = arith.constant 0 : i32
    %c0_i32_1 = arith.constant 0 : i32
    return %c0_i32, %c0_i32_0 : i32, i32
  }
  func.func @transform_4(%arg0: i32) -> (i32, i32) {
    %c0_i32 = arith.constant 0 : i32
    %c0_i32_0 = arith.constant 0 : i32
    %c0_i32_1 = arith.constant 0 : i32
    return %c0_i32, %c0_i32_0 : i32, i32
  }
  func.func @transform_5(%arg0: i32) -> (i32, i32) {
    %c0_i32 = arith.constant 0 : i32
    %c0_i32_0 = arith.constant 0 : i32
    %c0_i32_1 = arith.constant 0 : i32
    return %c0_i32, %c0_i32_0 : i32, i32
  }
  func.func @transform_6(%arg0: i32) -> (i32, i32) {
    %c0_i32 = arith.constant 0 : i32
    %c0_i32_0 = arith.constant 0 : i32
    %c0_i32_1 = arith.constant 0 : i32
    return %c0_i32, %c0_i32_0 : i32, i32
  }
  func.func @transform_7(%arg0: i32) -> (i32, i32) {
    %c0_i32 = arith.constant 0 : i32
    %c0_i32_0 = arith.constant 0 : i32
    return %arg0, %c0_i32 : i32, i32
  }
}

</mosaic_0001>

<bundles_post_ra>
// kernel: mlp_forward.1
= control target key start
LH: loop header
LB: loop body
LE: loop exit
PB: predicated region body
PF: predicated region fallthrough
CT: control target
= control target key end

     0   :  { %12 = vsyncpa [#allocation3], 0  ;;  %s6975_s0 = inlined_call_operand.vmem [shape: f32[16,256], index: 0, kind: input, shape index: {}]   ;;  %s6976_s1 = inlined_call_operand.hbm [shape: bf16[256,1024], index: 1, kind: input, shape index: {}]   ;;  %s6977_s2 = inlined_call_operand.hbm [shape: f32[1,1024], index: 2, kind: input, shape index: {}]   ;;  %s6978_s3 = inlined_call_operand.hbm [shape: bf16[1024,1024], index: 3, kind: input, shape index: {}]   ;;  %s6979_s4 = inlined_call_operand.hbm [shape: f32[1,1024], index: 4, kind: input, shape index: {}]   ;;  %s6980_s5 = inlined_call_operand.hbm [shape: bf16[1024,128], index: 5, kind: input, shape index: {}]   ;;  %s6981_s6 = inlined_call_operand.hbm [shape: f32[1,128], index: 6, kind: input, shape index: {}]   ;;  %s6982_s7 = inlined_call_operand.hbm [shape: f32[16,128], index: 7, kind: output, shape index: {}]  }
   0x1   :  { %13 = vsyncpa [#allocation6], 0 }
   0x2   :  { %14 = vsyncpa [#allocation9], 0 }
   0x3   :  { %15 = vsyncpa [#allocation12], 0 }
   0x4   :  { %16 = vsyncpa [#allocation4], 0  ;;  %s6667_s24 = smov [#allocation5]   ;;  %s6668_s26 = smov [#allocation8]  }
   0x5   :  { %s37_s25 = sshll.u32 %s6667_s24, 4  ;;  %s59_s27 = sshll.u32 %s6668_s26, 4  ;;  %s38_s25 = int_to_ptr.vmem [resolvable:$true] %s37_s25  ;;  %s60_s27 = int_to_ptr.vmem [resolvable:$true] %s59_s27 }
   0x6   :  { %s6525_s28 = scalar_lea.vmem %s38_s25, 128  ;;  %p6530_p1 = scmp.lt.s32.totalorder %s38_s25, %s38_s25 }
   0x7   :  { %p6526_p0 = scmp.ne.s32.totalorder %s38_s25, %s6525_s28  ;;  %p6531_p2 = scmp.lt.s32.totalorder %s6525_s28, %s6525_s28 }
   0x9   :  { %p6532_p3 = por %p6531_p2, %p6530_p1 }
   0xb   :  { %p6533_p4 = pnand %p6532_p3, %p6526_p0 }
   0xd   :  { %6536 = shalt.err (!%p6533_p4)
}
   0xe   :  { %40 = dma.hbm_to_vmem [thread:$0]  %s6977_s2, 128, %s38_s25, [#allocation6]  }
   0xf   :  { %s6545_s8 = scalar_lea.vmem %s60_s27, 128  ;;  %p6550_p6 = scmp.lt.s32.totalorder %s60_s27, %s60_s27 }
  0x10   :  { %p6546_p5 = scmp.ne.s32.totalorder %s60_s27, %s6545_s8  ;;  %p6551_p7 = scmp.lt.s32.totalorder %s6545_s8, %s6545_s8 }
  0x12   :  { %p6552_p8 = por %p6551_p7, %p6550_p6 }
  0x14   :  { %p6553_p9 = pnand %p6552_p8, %p6546_p5 }
  0x16   :  { %6556 = shalt.err (!%p6553_p9)
}
  0x17   :  { %62 = dma.hbm_to_vmem [thread:$0]  %s6979_s4, 128, %s60_s27, [#allocation9]  }
  0x18   :  { %s6669_s11 = smov [#allocation2]  }
  0x19   :  { %s24_s12 = sshll.u32 %s6669_s11, 4  ;;  %s25_s12 = int_to_ptr.vmem [resolvable:$true] %s24_s12 }
  0x1a   :  { %s6565_s13 = scalar_lea.vmem %s25_s12, 16384  ;;  %p6570_p11 = scmp.lt.s32.totalorder %s25_s12, %s25_s12 }
  0x1b   :  { %p6566_p10 = scmp.ne.s32.totalorder %s25_s12, %s6565_s13  ;;  %p6571_p12 = scmp.lt.s32.totalorder %s6565_s13, %s6565_s13 }
  0x1d   :  { %p6572_p13 = por %p6571_p12, %p6570_p11 }
  0x1f   :  { %p6573_p0 = pnand %p6572_p13, %p6566_p10 }
  0x21   :  { %6576 = shalt.err (!%p6573_p0)
}
  0x22   :  { %s6670_s2 = smov 512   ;;  %s6671_s14 = smov 32  }
  0x23   :  { %30 = dma.hbm_to_vmem [thread:$0]  %s6976_s1, 16384, %s25_s12, [#allocation3], %s6670_s2, %s6670_s2, %s6671_s14  }
  0x24   :  { %s6672_s17 = smov [#allocation7]   ;;  %s6673_s4 = smov [#allocation10]  }
  0x25   :  { %s46_s18 = sshll.u32 %s6672_s17, 4  ;;  %s68_s19 = sshll.u32 %s6673_s4, 4  ;;  %s47_s18 = int_to_ptr.vmem [resolvable:$true] %s46_s18  ;;  %s69_s19 = int_to_ptr.vmem [resolvable:$true] %s68_s19 }
  0x26   :  { %s6585_s20 = scalar_lea.vmem %s47_s18, 65536  ;;  %p6590_p2 = scmp.lt.s32.totalorder %s47_s18, %s47_s18 }
  0x27   :  { %p6586_p1 = scmp.ne.s32.totalorder %s47_s18, %s6585_s20  ;;  %p6591_p3 = scmp.lt.s32.totalorder %s6585_s20, %s6585_s20 }
  0x29   :  { %p6592_p4 = por %p6591_p3, %p6590_p2 }
  0x2b   :  { %p6593_p5 = pnand %p6592_p4, %p6586_p1 }
  0x2d   :  { %6596 = shalt.err (!%p6593_p5)
}
  0x2e   :  { %52 = dma.hbm_to_vmem [thread:$0]  %s6978_s3, 65536, %s47_s18, [#allocation6], %s6670_s2, %s6670_s2, %s6671_s14  }
  0x2f   :  { %s6605_s23 = scalar_lea.vmem %s69_s19, 8192  ;;  %p6610_p7 = scmp.lt.s32.totalorder %s69_s19, %s69_s19 }
  0x30   :  { %p6606_p6 = scmp.ne.s32.totalorder %s69_s19, %s6605_s23  ;;  %p6611_p8 = scmp.lt.s32.totalorder %s6605_s23, %s6605_s23 }
  0x32   :  { %p6612_p9 = por %p6611_p8, %p6610_p7 }
  0x34   :  { %p6613_p10 = pnand %p6612_p9, %p6606_p6 }
  0x36   :  { %6616 = shalt.err (!%p6613_p10)
}
  0x37   :  { %s6674_s1 = smov 64   ;;  %s6675_s24 = smov 4  }
  0x38   :  { %74 = dma.hbm_to_vmem [thread:$0]  %s6980_s5, 8192, %s69_s19, [#allocation9], %s6674_s1, %s6674_s1, %s6675_s24  }
  0x39   :  { %s6676_s27 = smov [#allocation11]  }
  0x3a   :  { %s81_s28 = sshll.u32 %s6676_s27, 4  ;;  %s82_s28 = int_to_ptr.vmem [resolvable:$true] %s81_s28 }
  0x3b   :  { %s6625_s29 = scalar_lea.vmem %s82_s28, 16  ;;  %s6629_s3 = scalar_lea.vmem %s82_s28, 32 }
  0x3c   :  { %p6626_p11 = scmp.ne.s32.totalorder %s82_s28, %s6625_s29  ;;  %p6630_p12 = scmp.lt.s32.totalorder %s82_s28, %s82_s28 }
  0x3d   :  { %p6631_p13 = scmp.lt.s32.totalorder %s6629_s3, %s6625_s29 }
  0x3f   :  { %p6632_p0 = por %p6631_p13, %p6630_p12 }
  0x41   :  { %p6633_p1 = pnand %p6632_p0, %p6626_p11 }
  0x43   :  { %6636 = shalt.err (!%p6633_p1)
}
  0x44   :  { %84 = dma.hbm_to_vmem [thread:$0]  %s6981_s6, 16, %s82_s28, [#allocation12]  }
  0x45   :  { %6657 = dma.done.wait [#allocation3], 16384  }
  0x46   :  { %6658 = vsyncadd [#allocation3], 4294950912 }
  0x47   :  { %6659 = dma.done.wait [#allocation6], 65664  }
  0x48   :  { %6660 = vsyncadd [#allocation6], 4294901632 }
  0x49   :  { %6661 = dma.done.wait [#allocation9], 8320  }
  0x4a   :  { %6662 = vsyncadd [#allocation9], 4294958976 }
  0x4b   :  { %6663 = dma.done.wait [#allocation12], 16  }
  0x4c   :  { %6664 = vsyncadd [#allocation12], 4294967280  ;;  %v166_v0 = vld [vmem:[#allocation2 + $0x1c0] sm:$0xff]  ;;  %v167_v2 = vld [vmem:[#allocation2 + $0x1c8] sm:$0xff] }
  0x4d   :  { %v170_v1 = vld [vmem:[#allocation2 + $0x1e0] sm:$0xff]  ;;  %v171_v4 = vld [vmem:[#allocation2 + $0x1e8] sm:$0xff]  ;;  %v107_v54 = vld [vmem:[%s6975_s0 + $0x18] sm:$0xff] }
  0x4e   :  { %v5704_v3 = vcombine.high %v166_v0, %v170_v1  ;;  %v5703_v5 = vcombine.low %v166_v0, %v170_v1  ;;  %v158_v6 = vld [vmem:[#allocation2 + $0x180] sm:$0xff]  ;;  %v5706_v8 = vcombine.high %v167_v2, %v171_v4  ;;  %v5705_v9 = vcombine.low %v167_v2, %v171_v4  ;;  %v159_v11 = vld [vmem:[#allocation2 + $0x188] sm:$0xff] }
  0x4f   :  { %v162_v7 = vld [vmem:[#allocation2 + $0x1a0] sm:$0xff]  ;;  %v163_v12 = vld [vmem:[#allocation2 + $0x1a8] sm:$0xff] }
  0x50   :  { %v5696_v10 = vcombine.high %v158_v6, %v162_v7  ;;  %v150_v13 = vld [vmem:[#allocation2 + $0x140] sm:$0xff]  ;;  %920 = vmatprep.subr.bf16.mxu0 %v5704_v3  ;;  %v5698_v14 = vcombine.high %v159_v11, %v163_v12  ;;  %v151_v16 = vld [vmem:[#allocation2 + $0x148] sm:$0xff]  ;;  %963 = vmatprep.subr.bf16.mxu1 %v5706_v8  ;;  %v5695_v18 = vcombine.low %v158_v6, %v162_v7 }
  0x51   :  { %v154_v15 = vld [vmem:[#allocation2 + $0x160] sm:$0xff]  ;;  %v155_v17 = vld [vmem:[#allocation2 + $0x168] sm:$0xff]  ;;  %921 = vmatpush1.bf16.msra.mxu0 %v5703_v5  ;;  %964 = vmatpush1.bf16.msra.mxu1 %v5705_v9  ;;  %v5697_v19 = vcombine.low %v159_v11, %v163_v12 }
  0x52   :  { %922 = vmatprep.subr.bf16.mxu0 %v5696_v10  ;;  %v5688_v20 = vcombine.high %v150_v13, %v154_v15  ;;  %965 = vmatprep.subr.bf16.mxu1 %v5698_v14  ;;  %v5690_v21 = vcombine.high %v151_v16, %v155_v17  ;;  %v142_v22 = vld [vmem:[#allocation2 + $0x100] sm:$0xff]  ;;  %v143_v24 = vld [vmem:[#allocation2 + $0x108] sm:$0xff]  ;;  %v5687_v26 = vcombine.low %v150_v13, %v154_v15 }
  0x53   :  { %v146_v23 = vld [vmem:[#allocation2 + $0x120] sm:$0xff]  ;;  %v147_v25 = vld [vmem:[#allocation2 + $0x128] sm:$0xff]  ;;  %v5689_v27 = vcombine.low %v151_v16, %v155_v17 }
  0x54   :  { %v5680_v28 = vcombine.high %v142_v22, %v146_v23  ;;  %v5682_v29 = vcombine.high %v143_v24, %v147_v25  ;;  %v134_v30 = vld [vmem:[#allocation2 + $0xc0] sm:$0xff]  ;;  %v135_v32 = vld [vmem:[#allocation2 + $0xc8] sm:$0xff]  ;;  %v5679_v34 = vcombine.low %v142_v22, %v146_v23  ;;  %v5681_v35 = vcombine.low %v143_v24, %v147_v25 }
  0x55   :  { %923 = vmatpush1.bf16.msra.mxu0 %v5695_v18  ;;  %966 = vmatpush1.bf16.msra.mxu1 %v5697_v19  ;;  %v138_v31 = vld [vmem:[#allocation2 + $0xe0] sm:$0xff]  ;;  %v139_v33 = vld [vmem:[#allocation2 + $0xe8] sm:$0xff] }
  0x56   :  { %924 = vmatprep.subr.bf16.mxu0 %v5688_v20  ;;  %967 = vmatprep.subr.bf16.mxu1 %v5690_v21  ;;  %v5672_v36 = vcombine.high %v134_v30, %v138_v31  ;;  %v5674_v37 = vcombine.high %v135_v32, %v139_v33  ;;  %v126_v38 = vld [vmem:[#allocation2 + $0x80] sm:$0xff]  ;;  %v127_v40 = vld [vmem:[#allocation2 + $0x88] sm:$0xff]  ;;  %v5671_v42 = vcombine.low %v134_v30, %v138_v31 }
  0x57   :  { %v130_v39 = vld [vmem:[#allocation2 + $0xa0] sm:$0xff]  ;;  %v131_v41 = vld [vmem:[#allocation2 + $0xa8] sm:$0xff]  ;;  %v5673_v43 = vcombine.low %v135_v32, %v139_v33 }
  0x58   :  { %v5664_v44 = vcombine.high %v126_v38, %v130_v39  ;;  %v5666_v45 = vcombine.high %v127_v40, %v131_v41  ;;  %v118_v46 = vld [vmem:[#allocation2 + $0x40] sm:$0xff]  ;;  %v119_v48 = vld [vmem:[#allocation2 + $0x48] sm:$0xff]  ;;  %v5663_v50 = vcombine.low %v126_v38, %v130_v39  ;;  %v5665_v51 = vcombine.low %v127_v40, %v131_v41 }
  0x59   :  { %925 = vmatpush1.bf16.msra.mxu0 %v5687_v26  ;;  %968 = vmatpush1.bf16.msra.mxu1 %v5689_v27  ;;  %v122_v47 = vld [vmem:[#allocation2 + $0x60] sm:$0xff]  ;;  %v123_v49 = vld [vmem:[#allocation2 + $0x68] sm:$0xff] }
  0x5a   :  { %926 = vmatprep.subr.bf16.mxu0 %v5680_v28  ;;  %969 = vmatprep.subr.bf16.mxu1 %v5682_v29  ;;  %v5656_v52 = vcombine.high %v118_v46, %v122_v47  ;;  %v105_v53 = vld [vmem:[%s6975_s0 + $0x8] sm:$0xff]  ;;  %v5658_v55 = vcombine.high %v119_v48, %v123_v49  ;;  %v110_v56 = vld [vmem:[#allocation2] sm:$0xff]  ;;  %v5655_v61 = vcombine.low %v118_v46, %v122_v47 }
  0x5b   :  { %v114_v57 = vld [vmem:[#allocation2 + $0x20] sm:$0xff]  ;;  %v6744_v58 = vpack.c.bf16 %v107_v54, %v105_v53  ;;  %v111_v59 = vld [vmem:[#allocation2 + $0x8] sm:$0xff]  ;;  %v5657_v62 = vcombine.low %v119_v48, %v123_v49 }
  0x5c   :  { %v115_v60 = vld [vmem:[#allocation2 + $0x28] sm:$0xff]  ;;  %v5648_v63 = vcombine.high %v110_v56, %v114_v57  ;;  %v230_v1 = vld [vmem:[#allocation2 + $0x3c0] sm:$0xff]  ;;  %v5647_v5 = vcombine.low %v110_v56, %v114_v57 }
  0x5d   :  { %927 = vmatpush1.bf16.msra.mxu0 %v5679_v34  ;;  %970 = vmatpush1.bf16.msra.mxu1 %v5681_v35  ;;  %v5650_v0 = vcombine.high %v111_v59, %v115_v60  ;;  %v234_v2 = vld [vmem:[#allocation2 + $0x3e0] sm:$0xff]  ;;  %v231_v3 = vld [vmem:[#allocation2 + $0x3c8] sm:$0xff]  ;;  %v5649_v6 = vcombine.low %v111_v59, %v115_v60 }
  0x5e   :  { %928 = vmatprep.subr.bf16.mxu0 %v5672_v36  ;;  %971 = vmatprep.subr.bf16.mxu1 %v5674_v37  ;;  %v235_v4 = vld [vmem:[#allocation2 + $0x3e8] sm:$0xff]  ;;  %v5768_v7 = vcombine.high %v230_v1, %v234_v2  ;;  %v222_v9 = vld [vmem:[#allocation2 + $0x380] sm:$0xff]  ;;  %v5767_v13 = vcombine.low %v230_v1, %v234_v2  ;;  %v168_v2 = vld [vmem:[#allocation2 + $0x1d0] sm:$0xff] }
  0x5f   :  { %952 = vmatprep.mubr.bf16.mxu0 %v6744_v58  ;;  %995 = vmatprep.mubr.bf16.mxu1 %v6744_v58  ;;  %v5770_v8 = vcombine.high %v231_v3, %v235_v4  ;;  %v226_v10 = vld [vmem:[#allocation2 + $0x3a0] sm:$0xff]  ;;  %v223_v11 = vld [vmem:[#allocation2 + $0x388] sm:$0xff]  ;;  %v5769_v14 = vcombine.low %v231_v3, %v235_v4  ;;  %v172_v3 = vld [vmem:[#allocation2 + $0x1f0] sm:$0xff] }
  0x60   :  { %v227_v12 = vld [vmem:[#allocation2 + $0x3a8] sm:$0xff]  ;;  %v5760_v15 = vcombine.high %v222_v9, %v226_v10  ;;  %v214_v17 = vld [vmem:[#allocation2 + $0x340] sm:$0xff]  ;;  %v5759_v21 = vcombine.low %v222_v9, %v226_v10  ;;  %v160_v9 = vld [vmem:[#allocation2 + $0x190] sm:$0xff] }
  0x61   :  { %929 = vmatpush1.bf16.msra.mxu0 %v5671_v42  ;;  %972 = vmatpush1.bf16.msra.mxu1 %v5673_v43  ;;  %v5762_v16 = vcombine.high %v223_v11, %v227_v12  ;;  %v218_v18 = vld [vmem:[#allocation2 + $0x360] sm:$0xff]  ;;  %v215_v19 = vld [vmem:[#allocation2 + $0x348] sm:$0xff]  ;;  %v5761_v22 = vcombine.low %v223_v11, %v227_v12  ;;  %v164_v10 = vld [vmem:[#allocation2 + $0x1b0] sm:$0xff]  ;;  %v5708_v12 = vcombine.high %v168_v2, %v172_v3 }
  0x62   :  { %930 = vmatprep.subr.bf16.mxu0 %v5664_v44  ;;  %973 = vmatprep.subr.bf16.mxu1 %v5666_v45  ;;  %v219_v20 = vld [vmem:[#allocation2 + $0x368] sm:$0xff]  ;;  %v5752_v23 = vcombine.high %v214_v17, %v218_v18  ;;  %v206_v25 = vld [vmem:[#allocation2 + $0x300] sm:$0xff]  ;;  %v5751_v29 = vcombine.low %v214_v17, %v218_v18  ;;  %v5707_v17 = vcombine.low %v168_v2, %v172_v3  ;;  %v152_v18 = vld [vmem:[#allocation2 + $0x150] sm:$0xff] }
  0x63   :  { %v5754_v24 = vcombine.high %v215_v19, %v219_v20  ;;  %v210_v26 = vld [vmem:[#allocation2 + $0x320] sm:$0xff]  ;;  %v207_v27 = vld [vmem:[#allocation2 + $0x308] sm:$0xff]  ;;  %v5753_v30 = vcombine.low %v215_v19, %v219_v20  ;;  %v156_v19 = vld [vmem:[#allocation2 + $0x170] sm:$0xff] }
  0x64   :  { %v211_v28 = vld [vmem:[#allocation2 + $0x328] sm:$0xff]  ;;  %v5744_v31 = vcombine.high %v206_v25, %v210_v26  ;;  %v198_v33 = vld [vmem:[#allocation2 + $0x2c0] sm:$0xff]  ;;  %v5743_v37 = vcombine.low %v206_v25, %v210_v26  ;;  %v5699_v25 = vcombine.low %v160_v9, %v164_v10  ;;  %v144_v26 = vld [vmem:[#allocation2 + $0x110] sm:$0xff] }
  0x65   :  { %931 = vmatpush1.bf16.msra.mxu0 %v5663_v50  ;;  %974 = vmatpush1.bf16.msra.mxu1 %v5665_v51  ;;  %v5746_v32 = vcombine.high %v207_v27, %v211_v28  ;;  %v202_v34 = vld [vmem:[#allocation2 + $0x2e0] sm:$0xff]  ;;  %v199_v35 = vld [vmem:[#allocation2 + $0x2c8] sm:$0xff]  ;;  %v5745_v38 = vcombine.low %v207_v27, %v211_v28  ;;  %v148_v27 = vld [vmem:[#allocation2 + $0x130] sm:$0xff] }
  0x66   :  { %932 = vmatprep.subr.bf16.mxu0 %v5656_v52  ;;  %975 = vmatprep.subr.bf16.mxu1 %v5658_v55  ;;  %v203_v36 = vld [vmem:[#allocation2 + $0x2e8] sm:$0xff]  ;;  %v5736_v39 = vcombine.high %v198_v33, %v202_v34  ;;  %v190_v41 = vld [vmem:[#allocation2 + $0x280] sm:$0xff]  ;;  %v5735_v45 = vcombine.low %v198_v33, %v202_v34  ;;  %v5691_v33 = vcombine.low %v152_v18, %v156_v19  ;;  %v136_v34 = vld [vmem:[#allocation2 + $0xd0] sm:$0xff] }
  0x67   :  { %v5738_v40 = vcombine.high %v199_v35, %v203_v36  ;;  %v194_v42 = vld [vmem:[#allocation2 + $0x2a0] sm:$0xff]  ;;  %v191_v43 = vld [vmem:[#allocation2 + $0x288] sm:$0xff]  ;;  %v5737_v46 = vcombine.low %v199_v35, %v203_v36  ;;  %v140_v35 = vld [vmem:[#allocation2 + $0xf0] sm:$0xff] }
  0x68   :  { %v195_v44 = vld [vmem:[#allocation2 + $0x2a8] sm:$0xff]  ;;  %v5728_v47 = vcombine.high %v190_v41, %v194_v42  ;;  %v182_v49 = vld [vmem:[#allocation2 + $0x240] sm:$0xff]  ;;  %v5727_v53 = vcombine.low %v190_v41, %v194_v42  ;;  %v5683_v41 = vcombine.low %v144_v26, %v148_v27  ;;  %v128_v42 = vld [vmem:[#allocation2 + $0x90] sm:$0xff] }
  0x69   :  { %933 = vmatpush1.bf16.msra.mxu0 %v5655_v61  ;;  %976 = vmatpush1.bf16.msra.mxu1 %v5657_v62  ;;  %v5730_v48 = vcombine.high %v191_v43, %v195_v44  ;;  %v186_v50 = vld [vmem:[#allocation2 + $0x260] sm:$0xff]  ;;  %v183_v51 = vld [vmem:[#allocation2 + $0x248] sm:$0xff]  ;;  %v5729_v54 = vcombine.low %v191_v43, %v195_v44  ;;  %v132_v43 = vld [vmem:[#allocation2 + $0xb0] sm:$0xff] }
  0x6a   :  { %934 = vmatprep.subr.bf16.mxu0 %v5648_v63  ;;  %977 = vmatprep.subr.bf16.mxu1 %v5650_v0  ;;  %v187_v52 = vld [vmem:[#allocation2 + $0x268] sm:$0xff]  ;;  %v5720_v55 = vcombine.high %v182_v49, %v186_v50  ;;  %v174_v57 = vld [vmem:[#allocation2 + $0x200] sm:$0xff]  ;;  %v5719_v62 = vcombine.low %v182_v49, %v186_v50  ;;  %v120_v49 = vld [vmem:[#allocation2 + $0x50] sm:$0xff] }
  0x6b   :  { %v5722_v56 = vcombine.high %v183_v51, %v187_v52  ;;  %v178_v59 = vld [vmem:[#allocation2 + $0x220] sm:$0xff]  ;;  %v175_v60 = vld [vmem:[#allocation2 + $0x208] sm:$0xff]  ;;  %v5721_v63 = vcombine.low %v183_v51, %v187_v52  ;;  %v124_v50 = vld [vmem:[#allocation2 + $0x70] sm:$0xff]  ;;  %v5668_v52 = vcombine.high %v128_v42, %v132_v43 }
  0x6c   :  { %v179_v61 = vld [vmem:[#allocation2 + $0x228] sm:$0xff]  ;;  %v5712_v0 = vcombine.high %v174_v57, %v178_v59  ;;  %v104_v4 = vld [vmem:[%s6975_s0] sm:$0xff]  ;;  %v232_v2 = vld [vmem:[#allocation2 + $0x3d0] sm:$0xff] }
  0x6d   :  { %935 = vmatpush1.bf16.msra.mxu0 %v5647_v5  ;;  %978 = vmatpush1.bf16.msra.mxu1 %v5649_v6  ;;  %v5714_v1 = vcombine.high %v175_v60, %v179_v61  ;;  %v169_v5 = vld [vmem:[#allocation2 + $0x1d8] sm:$0xff]  ;;  %v5713_v11 = vcombine.low %v175_v60, %v179_v61  ;;  %v5660_v61 = vcombine.high %v120_v49, %v124_v50  ;;  %v236_v3 = vld [vmem:[#allocation2 + $0x3f0] sm:$0xff] }
  0x6e   :  { %936 = vmatprep.subr.bf16.mxu0 %v5768_v7  ;;  %979 = vmatprep.subr.bf16.mxu1 %v5770_v8  ;;  %v173_v6 = vld [vmem:[#allocation2 + $0x1f8] sm:$0xff]  ;;  %v5711_v7 = vcombine.low %v174_v57, %v178_v59  ;;  %v106_v8 = vld [vmem:[%s6975_s0 + $0x10] sm:$0xff]  ;;  %s6677_s0 = smov [#allocation13]  }
  0x6f   :  { %v5709_v20 = vcombine.low %v169_v5, %v173_v6  ;;  %v112_v57 = vld [vmem:[#allocation2 + $0x10] sm:$0xff]  ;;  %s5632_s14 = sshll.u32 %s6677_s0, 4  ;;  %s5633_s14 = int_to_ptr.vmem [resolvable:$true] %s5632_s14 }
  0x70   :  { %v116_v59 = vld [vmem:[#allocation2 + $0x30] sm:$0xff]  ;;  %s6637_s15 = scalar_lea.vmem %s5633_s14, 256  ;;  %p6642_p3 = scmp.lt.s32.totalorder %s5633_s14, %s5633_s14 }
  0x71   :  { %937 = vmatpush2.bf16.msra.mxu0 %v5767_v13  ;;  %980 = vmatpush2.bf16.msra.mxu1 %v5769_v14  ;;  %v161_v13 = vld [vmem:[#allocation2 + $0x198] sm:$0xff]  ;;  %p6638_p2 = scmp.ne.s32.totalorder %s5633_s14, %s6637_s15  ;;  %p6643_p4 = scmp.lt.s32.totalorder %s6637_s15, %s6637_s15 }
  0x72   :  { %938 = vmatprep.subr.bf16.mxu0 %v5760_v15  ;;  %981 = vmatprep.subr.bf16.mxu1 %v5762_v16  ;;  %v165_v14 = vld [vmem:[#allocation2 + $0x1b8] sm:$0xff]  ;;  %v5710_v15 = vcombine.high %v169_v5, %v173_v6  ;;  %v6754_v16 = vpack.c.bf16 %v106_v8, %v104_v4  ;;  %v5652_v5 = vcombine.high %v112_v57, %v116_v59 }
  0x73   :  { %v5701_v28 = vcombine.low %v161_v13, %v165_v14  ;;  %v233_v6 = vld [vmem:[#allocation2 + $0x3d8] sm:$0xff]  ;;  %p6644_p5 = por %p6643_p4, %p6642_p3 }
  0x75   :  { %939 = vmatpush2.bf16.msra.mxu0 %v5759_v21  ;;  %982 = vmatpush2.bf16.msra.mxu1 %v5761_v22  ;;  %v5700_v21 = vcombine.high %v160_v9, %v164_v10  ;;  %v153_v22 = vld [vmem:[#allocation2 + $0x158] sm:$0xff]  ;;  %v5651_v9 = vcombine.low %v112_v57, %v116_v59  ;;  %v224_v10 = vld [vmem:[#allocation2 + $0x390] sm:$0xff]  ;;  %p6645_p6 = pnand %p6644_p5, %p6638_p2 }
  0x76   :  { %940 = vmatprep.subr.bf16.mxu0 %v5752_v23  ;;  %983 = vmatprep.subr.bf16.mxu1 %v5754_v24  ;;  %v157_v23 = vld [vmem:[#allocation2 + $0x178] sm:$0xff]  ;;  %v5702_v24 = vcombine.high %v161_v13, %v165_v14  ;;  %v5772_v13 = vcombine.high %v232_v2, %v236_v3 }
  0x77   :  { %v5693_v36 = vcombine.low %v153_v22, %v157_v23  ;;  %v225_v14 = vld [vmem:[#allocation2 + $0x398] sm:$0xff] }
  0x79   :  { %941 = vmatpush2.bf16.msra.mxu0 %v5751_v29  ;;  %984 = vmatpush2.bf16.msra.mxu1 %v5753_v30  ;;  %v5692_v29 = vcombine.high %v152_v18, %v156_v19  ;;  %v145_v30 = vld [vmem:[#allocation2 + $0x118] sm:$0xff]  ;;  %v5771_v18 = vcombine.low %v232_v2, %v236_v3  ;;  %v216_v19 = vld [vmem:[#allocation2 + $0x350] sm:$0xff] }
  0x7a   :  { %942 = vmatprep.subr.bf16.mxu0 %v5744_v31  ;;  %985 = vmatprep.subr.bf16.mxu1 %v5746_v32  ;;  %v149_v31 = vld [vmem:[#allocation2 + $0x138] sm:$0xff]  ;;  %v5694_v32 = vcombine.high %v153_v22, %v157_v23 }
  0x7b   :  { %v5685_v44 = vcombine.low %v145_v30, %v149_v31  ;;  %v217_v23 = vld [vmem:[#allocation2 + $0x358] sm:$0xff] }
  0x7d   :  { %943 = vmatpush2.bf16.msra.mxu0 %v5743_v37  ;;  %986 = vmatpush2.bf16.msra.mxu1 %v5745_v38  ;;  %v5684_v37 = vcombine.high %v144_v26, %v148_v27  ;;  %v137_v38 = vld [vmem:[#allocation2 + $0xd8] sm:$0xff]  ;;  %v208_v27 = vld [vmem:[#allocation2 + $0x310] sm:$0xff] }
  0x7e   :  { %944 = vmatprep.subr.bf16.mxu0 %v5736_v39  ;;  %987 = vmatprep.subr.bf16.mxu1 %v5738_v40  ;;  %v141_v39 = vld [vmem:[#allocation2 + $0xf8] sm:$0xff]  ;;  %v5686_v40 = vcombine.high %v145_v30, %v149_v31 }
  0x7f   :  { %v5677_v51 = vcombine.low %v137_v38, %v141_v39  ;;  %v209_v31 = vld [vmem:[#allocation2 + $0x318] sm:$0xff] }
  0x81   :  { %945 = vmatpush2.bf16.msra.mxu0 %v5735_v45  ;;  %988 = vmatpush2.bf16.msra.mxu1 %v5737_v46  ;;  %v129_v45 = vld [vmem:[#allocation2 + $0x98] sm:$0xff] }
  0x82   :  { %946 = vmatprep.subr.bf16.mxu0 %v5728_v47  ;;  %989 = vmatprep.subr.bf16.mxu1 %v5730_v48  ;;  %v133_v46 = vld [vmem:[#allocation2 + $0xb8] sm:$0xff]  ;;  %v5678_v47 = vcombine.high %v137_v38, %v141_v39  ;;  %v5675_v48 = vcombine.low %v136_v34, %v140_v35  ;;  %v200_v38 = vld [vmem:[#allocation2 + $0x2d0] sm:$0xff] }
  0x83   :  { %v5669_v60 = vcombine.low %v129_v45, %v133_v46  ;;  %v204_v39 = vld [vmem:[#allocation2 + $0x2f0] sm:$0xff] }
  0x85   :  { %947 = vmatpush2.bf16.msra.mxu0 %v5727_v53  ;;  %990 = vmatpush2.bf16.msra.mxu1 %v5729_v54  ;;  %v121_v53 = vld [vmem:[#allocation2 + $0x58] sm:$0xff] }
  0x86   :  { %948 = vmatprep.subr.bf16.mxu0 %v5720_v55  ;;  %991 = vmatprep.subr.bf16.mxu1 %v5722_v56  ;;  %v125_v54 = vld [vmem:[#allocation2 + $0x78] sm:$0xff]  ;;  %v5670_v55 = vcombine.high %v129_v45, %v133_v46  ;;  %v5667_v56 = vcombine.low %v128_v42, %v132_v43  ;;  %v192_v45 = vld [vmem:[#allocation2 + $0x290] sm:$0xff] }
  0x87   :  { %v5661_v4 = vcombine.low %v121_v53, %v125_v54  ;;  %v196_v46 = vld [vmem:[#allocation2 + $0x2b0] sm:$0xff] }
  0x88   :  { %v5731_v57 = vcombine.low %v192_v45, %v196_v46 }
  0x89   :  { %949 = vmatpush2.bf16.msra.mxu0 %v5719_v62  ;;  %992 = vmatpush2.bf16.msra.mxu1 %v5721_v63  ;;  %v113_v62 = vld [vmem:[#allocation2 + $0x18] sm:$0xff] }
  0x8a   :  { %950 = vmatprep.subr.bf16.mxu0 %v5712_v0  ;;  %993 = vmatprep.subr.bf16.mxu1 %v5714_v1  ;;  %v117_v63 = vld [vmem:[#allocation2 + $0x38] sm:$0xff]  ;;  %v5662_v0 = vcombine.high %v121_v53, %v125_v54  ;;  %v5659_v1 = vcombine.low %v120_v49, %v124_v50  ;;  %v5739_v49 = vcombine.low %v200_v38, %v204_v39  ;;  %v184_v53 = vld [vmem:[#allocation2 + $0x250] sm:$0xff] }
  0x8b   :  { %v5654_v8 = vcombine.high %v113_v62, %v117_v63  ;;  %v188_v54 = vld [vmem:[#allocation2 + $0x270] sm:$0xff] }
  0x8c   :  { %v5723_v2 = vcombine.low %v184_v53, %v188_v54 }
  0x8d   :  { %951 = vmatpush2.bf16.msra.mxu0 %v5711_v7  ;;  %994 = vmatpush2.bf16.msra.mxu1 %v5713_v11  ;;  %v237_v7 = vld [vmem:[#allocation2 + $0x3f8] sm:$0xff]  ;;  %v228_v11 = vld [vmem:[#allocation2 + $0x3b0] sm:$0xff] }
  0x8e   :  { %1006 = vmatprep.subr.bf16.mxu0 %v5708_v12  ;;  %1049 = vmatprep.subr.bf16.mxu1 %v5710_v15  ;;  %v5653_v12 = vcombine.low %v113_v62, %v117_v63  ;;  %v229_v15 = vld [vmem:[#allocation2 + $0x3b8] sm:$0xff]  ;;  %v5764_v22 = vcombine.high %v224_v10, %v228_v11  ;;  %v5763_v26 = vcombine.low %v224_v10, %v228_v11  ;;  %v176_v62 = vld [vmem:[#allocation2 + $0x210] sm:$0xff] }
  0x8f   :  { %v180_v63 = vld [vmem:[#allocation2 + $0x230] sm:$0xff] }
  0x90   :  { %953 = vmatmul.mubr.bf16.vlgmr.msra.gmra.mxu0 %v6754_v16  ;;  %996 = vmatmul.mubr.bf16.vlgmr.msra.gmra.mxu1 %v6754_v16  ;;  %v5715_v10 = vcombine.low %v176_v62, %v180_v63 }
  0x91   :  { %1007 = vmatpush1.bf16.msra.mxu0 %v5707_v17  ;;  %1050 = vmatpush1.bf16.msra.mxu1 %v5709_v20  ;;  %v5774_v17 = vcombine.high %v233_v6, %v237_v7  ;;  %v220_v20 = vld [vmem:[#allocation2 + $0x370] sm:$0xff] }
  0x92   :  { %1008 = vmatprep.subr.bf16.mxu0 %v5700_v21  ;;  %1051 = vmatprep.subr.bf16.mxu1 %v5702_v24  ;;  %v5773_v21 = vcombine.low %v233_v6, %v237_v7  ;;  %v221_v24 = vld [vmem:[#allocation2 + $0x378] sm:$0xff]  ;;  %v5756_v30 = vcombine.high %v216_v19, %v220_v20  ;;  %v1172_v6 = vld [vmem:[#allocation7 + $0x1c0] sm:$0xff] }
  0x93   :  { %1038 = vmatprep.mubr.bf16.mxu0 %v6744_v58  ;;  %1081 = vmatprep.mubr.bf16.mxu1 %v6744_v58  ;;  %v5676_v58 = vcombine.high %v136_v34, %v140_v35  ;;  %v5755_v34 = vcombine.low %v216_v19, %v220_v20  ;;  %v5757_v35 = vcombine.low %v217_v23, %v221_v24  ;;  %v1176_v7 = vld [vmem:[#allocation7 + $0x1e0] sm:$0xff] }
  0x94   :  { %v5831_v19 = vcombine.low %v1172_v6, %v1176_v7 }
  0x95   :  { %1009 = vmatpush1.bf16.msra.mxu0 %v5699_v25  ;;  %1052 = vmatpush1.bf16.msra.mxu1 %v5701_v28  ;;  %v5766_v25 = vcombine.high %v225_v14, %v229_v15  ;;  %v212_v28 = vld [vmem:[#allocation2 + $0x330] sm:$0xff] }
  0x96   :  { %1010 = vmatprep.subr.bf16.mxu0 %v5692_v29  ;;  %1053 = vmatprep.subr.bf16.mxu1 %v5694_v32  ;;  %v5765_v29 = vcombine.low %v225_v14, %v229_v15  ;;  %v213_v32 = vld [vmem:[#allocation2 + $0x338] sm:$0xff]  ;;  %v5747_v42 = vcombine.low %v208_v27, %v212_v28  ;;  %v1164_v14 = vld [vmem:[#allocation7 + $0x180] sm:$0xff] }
  0x97   :  { %v5749_v43 = vcombine.low %v209_v31, %v213_v32  ;;  %v1168_v15 = vld [vmem:[#allocation7 + $0x1a0] sm:$0xff] }
  0x99   :  { %1011 = vmatpush1.bf16.msra.mxu0 %v5691_v33  ;;  %1054 = vmatpush1.bf16.msra.mxu1 %v5693_v36  ;;  %v5758_v33 = vcombine.high %v217_v23, %v221_v24  ;;  %v5748_v36 = vcombine.high %v208_v27, %v212_v28  ;;  %v1156_v23 = vld [vmem:[#allocation7 + $0x140] sm:$0xff]  ;;  %v5823_v27 = vcombine.low %v1164_v14, %v1168_v15 }
  0x9a   :  { %1012 = vmatprep.subr.bf16.mxu0 %v5684_v37  ;;  %1055 = vmatprep.subr.bf16.mxu1 %v5686_v40  ;;  %v5750_v37 = vcombine.high %v209_v31, %v213_v32  ;;  %v201_v40 = vld [vmem:[#allocation2 + $0x2d8] sm:$0xff]  ;;  %v1160_v24 = vld [vmem:[#allocation7 + $0x160] sm:$0xff] }
  0x9b   :  { %v1148_v31 = vld [vmem:[#allocation7 + $0x100] sm:$0xff] }
  0x9c   :  { %v1152_v32 = vld [vmem:[#allocation7 + $0x120] sm:$0xff] }
  0x9d   :  { %1013 = vmatpush1.bf16.msra.mxu0 %v5683_v41  ;;  %1056 = vmatpush1.bf16.msra.mxu1 %v5685_v44  ;;  %v205_v41 = vld [vmem:[#allocation2 + $0x2f8] sm:$0xff]  ;;  %v5740_v44 = vcombine.high %v200_v38, %v204_v39  ;;  %v1140_v38 = vld [vmem:[#allocation7 + $0xc0] sm:$0xff] }
  0x9e   :  { %1014 = vmatprep.subr.bf16.mxu0 %v5676_v58  ;;  %1057 = vmatprep.subr.bf16.mxu1 %v5678_v47  ;;  %v5742_v58 = vcombine.high %v201_v40, %v205_v41  ;;  %v193_v47 = vld [vmem:[#allocation2 + $0x298] sm:$0xff]  ;;  %v5741_v50 = vcombine.low %v201_v40, %v205_v41  ;;  %v1144_v39 = vld [vmem:[#allocation7 + $0xe0] sm:$0xff] }
  0x9f   :  { %v1268_v40 = vld [vmem:[#allocation7 + $0x4c0] sm:$0xff] }
  0xa0   :  { %v1272_v41 = vld [vmem:[#allocation7 + $0x4e0] sm:$0xff] }
  0xa1   :  { %1015 = vmatpush1.bf16.msra.mxu0 %v5675_v48  ;;  %1058 = vmatpush1.bf16.msra.mxu1 %v5677_v51  ;;  %v197_v48 = vld [vmem:[#allocation2 + $0x2b8] sm:$0xff]  ;;  %v5732_v51 = vcombine.high %v192_v45, %v196_v46  ;;  %v1136_v45 = vld [vmem:[#allocation7 + $0xa0] sm:$0xff]  ;;  %v5928_v46 = vcombine.high %v1268_v40, %v1272_v41 }
  0xa2   :  { %1016 = vmatprep.subr.bf16.mxu0 %v5668_v52  ;;  %1059 = vmatprep.subr.bf16.mxu1 %v5670_v55  ;;  %v5734_v52 = vcombine.high %v193_v47, %v197_v48  ;;  %v185_v55 = vld [vmem:[#allocation2 + $0x258] sm:$0xff]  ;;  %v5733_v59 = vcombine.low %v193_v47, %v197_v48  ;;  %v6762_v47 = vld [vmem:[#allocation7 + $0x9c0] sm:$0xff] }
  0xa3   :  { %v6764_v48 = vld [vmem:[#allocation7 + $0x9e0] sm:$0xff] }
  0xa5   :  { %1017 = vmatpush1.bf16.msra.mxu0 %v5667_v56  ;;  %1060 = vmatpush1.bf16.msra.mxu1 %v5669_v60  ;;  %v189_v56 = vld [vmem:[#allocation2 + $0x278] sm:$0xff]  ;;  %v5724_v60 = vcombine.high %v184_v53, %v188_v54  ;;  %v5799_v53 = vcombine.low %v1140_v38, %v1144_v39  ;;  %v6087_v54 = vcombine.low %v6762_v47, %v6764_v48 }
  0xa6   :  { %1018 = vmatprep.subr.bf16.mxu0 %v5660_v61  ;;  %1061 = vmatprep.subr.bf16.mxu1 %v5662_v0  ;;  %v5726_v61 = vcombine.high %v185_v55, %v189_v56  ;;  %v177_v0 = vld [vmem:[#allocation2 + $0x218] sm:$0xff]  ;;  %v5725_v3 = vcombine.low %v185_v55, %v189_v56  ;;  %v5927_v56 = vcombine.low %v1268_v40, %v1272_v41 }
  0xa9   :  { %1019 = vmatpush1.bf16.msra.mxu0 %v5659_v1  ;;  %1062 = vmatpush1.bf16.msra.mxu1 %v5661_v4  ;;  %v181_v1 = vld [vmem:[#allocation2 + $0x238] sm:$0xff]  ;;  %v5716_v4 = vcombine.high %v176_v62, %v180_v63  ;;  %v1252_v62 = vld [vmem:[#allocation7 + $0x440] sm:$0xff] }
  0xaa   :  { %1020 = vmatprep.subr.bf16.mxu0 %v5652_v5  ;;  %1063 = vmatprep.subr.bf16.mxu1 %v5654_v8  ;;  %v5718_v5 = vcombine.high %v177_v0, %v181_v1  ;;  %v1300_v8 = vld [vmem:[#allocation7 + $0x5c0] sm:$0xff]  ;;  %v5717_v11 = vcombine.low %v177_v0, %v181_v1 }
  0xab   :  { %v1256_v63 = vld [vmem:[#allocation7 + $0x460] sm:$0xff] }
  0xad   :  { %1021 = vmatpush1.bf16.msra.mxu0 %v5651_v9  ;;  %1064 = vmatpush1.bf16.msra.mxu1 %v5653_v12  ;;  %v1304_v9 = vld [vmem:[#allocation7 + $0x5e0] sm:$0xff]  ;;  %v5832_v12 = vcombine.high %v1172_v6, %v1176_v7 }
  0xae   :  { %1022 = vmatprep.subr.bf16.mxu0 %v5772_v13  ;;  %1065 = vmatprep.subr.bf16.mxu1 %v5774_v17  ;;  %v5960_v13 = vcombine.high %v1300_v8, %v1304_v9  ;;  %v1292_v17 = vld [vmem:[#allocation7 + $0x580] sm:$0xff]  ;;  %v5959_v20 = vcombine.low %v1300_v8, %v1304_v9  ;;  %v5911_v9 = vcombine.low %v1252_v62, %v1256_v63 }
  0xaf   :  { %v1244_v6 = vld [vmem:[#allocation7 + $0x400] sm:$0xff] }
  0xb0   :  { %v1248_v7 = vld [vmem:[#allocation7 + $0x420] sm:$0xff] }
  0xb1   :  { %1023 = vmatpush2.bf16.msra.mxu0 %v5771_v18  ;;  %1066 = vmatpush2.bf16.msra.mxu1 %v5773_v21  ;;  %v1296_v18 = vld [vmem:[#allocation7 + $0x5a0] sm:$0xff]  ;;  %v5824_v21 = vcombine.high %v1164_v14, %v1168_v15 }
  0xb2   :  { %1024 = vmatprep.subr.bf16.mxu0 %v5764_v22  ;;  %1067 = vmatprep.subr.bf16.mxu1 %v5766_v25  ;;  %v5952_v22 = vcombine.high %v1292_v17, %v1296_v18  ;;  %v1284_v25 = vld [vmem:[#allocation7 + $0x540] sm:$0xff]  ;;  %v5951_v28 = vcombine.low %v1292_v17, %v1296_v18  ;;  %v5903_v18 = vcombine.low %v1244_v6, %v1248_v7 }
  0xb3   :  { %v1364_v14 = vld [vmem:[#allocation7 + $0x7c0] sm:$0xff] }
  0xb4   :  { %v1368_v15 = vld [vmem:[#allocation7 + $0x7e0] sm:$0xff] }
  0xb5   :  { %1025 = vmatpush2.bf16.msra.mxu0 %v5763_v26  ;;  %1068 = vmatpush2.bf16.msra.mxu1 %v5765_v29  ;;  %v1288_v26 = vld [vmem:[#allocation7 + $0x560] sm:$0xff]  ;;  %v5816_v29 = vcombine.high %v1156_v23, %v1160_v24 }
  0xb6   :  { %1026 = vmatprep.subr.bf16.mxu0 %v5756_v30  ;;  %1069 = vmatprep.subr.bf16.mxu1 %v5758_v33  ;;  %v5944_v30 = vcombine.high %v1284_v25, %v1288_v26  ;;  %v1276_v33 = vld [vmem:[#allocation7 + $0x500] sm:$0xff] }
  0xb9   :  { %1027 = vmatpush2.bf16.msra.mxu0 %v5755_v34  ;;  %1070 = vmatpush2.bf16.msra.mxu1 %v5757_v35  ;;  %v1280_v34 = vld [vmem:[#allocation7 + $0x520] sm:$0xff]  ;;  %v5815_v35 = vcombine.low %v1156_v23, %v1160_v24 }
  0xba   :  { %1028 = vmatprep.subr.bf16.mxu0 %v5748_v36  ;;  %1071 = vmatprep.subr.bf16.mxu1 %v5750_v37  ;;  %v5943_v36 = vcombine.low %v1284_v25, %v1288_v26  ;;  %v5808_v37 = vcombine.high %v1148_v31, %v1152_v32  ;;  %v1356_v23 = vld [vmem:[#allocation7 + $0x780] sm:$0xff]  ;;  %v6023_v26 = vcombine.low %v1364_v14, %v1368_v15 }
  0xbb   :  { %v1360_v24 = vld [vmem:[#allocation7 + $0x7a0] sm:$0xff] }
  0xbd   :  { %1029 = vmatpush2.bf16.msra.mxu0 %v5747_v42  ;;  %1072 = vmatpush2.bf16.msra.mxu1 %v5749_v43  ;;  %v5807_v42 = vcombine.low %v1148_v31, %v1152_v32  ;;  %v5935_v43 = vcombine.low %v1276_v33, %v1280_v34  ;;  %v1348_v31 = vld [vmem:[#allocation7 + $0x740] sm:$0xff] }
  0xbe   :  { %1030 = vmatprep.subr.bf16.mxu0 %v5740_v44  ;;  %1073 = vmatprep.subr.bf16.mxu1 %v5742_v58  ;;  %v5800_v44 = vcombine.high %v1140_v38, %v1144_v39  ;;  %v1132_v58 = vld [vmem:[#allocation7 + $0x80] sm:$0xff] }
  0xbf   :  { %v5791_v0 = vcombine.low %v1132_v58, %v1136_v45  ;;  %v1352_v32 = vld [vmem:[#allocation7 + $0x760] sm:$0xff] }
  0xc0   :  { %v1340_v38 = vld [vmem:[#allocation7 + $0x700] sm:$0xff]  ;;  %v6007_v41 = vcombine.low %v1348_v31, %v1352_v32 }
  0xc1   :  { %1031 = vmatpush2.bf16.msra.mxu0 %v5739_v49  ;;  %1074 = vmatpush2.bf16.msra.mxu1 %v5741_v50  ;;  %v6766_v49 = vld [vmem:[#allocation7 + $0xdc0] sm:$0xff] }
  0xc2   :  { %1032 = vmatprep.subr.bf16.mxu0 %v5732_v51  ;;  %1075 = vmatprep.subr.bf16.mxu1 %v5734_v52  ;;  %v1260_v50 = vld [vmem:[#allocation7 + $0x480] sm:$0xff] }
  0xc3   :  { %v1264_v51 = vld [vmem:[#allocation7 + $0x4a0] sm:$0xff] }
  0xc4   :  { %v6768_v52 = vld [vmem:[#allocation7 + $0xde0] sm:$0xff]  ;;  %v5919_v1 = vcombine.low %v1260_v50, %v1264_v51 }
  0xc5   :  { %1033 = vmatpush2.bf16.msra.mxu0 %v5731_v57  ;;  %1076 = vmatpush2.bf16.msra.mxu1 %v5733_v59  ;;  %v6215_v55 = vcombine.low %v6766_v49, %v6768_v52  ;;  %v5792_v57 = vcombine.high %v1132_v58, %v1136_v45  ;;  %v5920_v59 = vcombine.high %v1260_v50, %v1264_v51  ;;  %v1344_v39 = vld [vmem:[#allocation7 + $0x720] sm:$0xff] }
  0xc6   :  { %1034 = vmatprep.subr.bf16.mxu0 %v5724_v60  ;;  %1077 = vmatprep.subr.bf16.mxu1 %v5726_v61  ;;  %v1124_v60 = vld [vmem:[#allocation7 + $0x40] sm:$0xff]  ;;  %v5999_v51 = vcombine.low %v1340_v38, %v1344_v39 }
  0xc7   :  { %v1128_v61 = vld [vmem:[#allocation7 + $0x60] sm:$0xff] }
  0xc8   :  { %v5783_v8 = vcombine.low %v1124_v60, %v1128_v61  ;;  %v1208_v58 = vld [vmem:[#allocation7 + $0x2e0] sm:$0xff] }
  0xc9   :  { %1035 = vmatpush2.bf16.msra.mxu0 %v5723_v2  ;;  %1078 = vmatpush2.bf16.msra.mxu1 %v5725_v3  ;;  %v5784_v2 = vcombine.high %v1124_v60, %v1128_v61  ;;  %v5912_v3 = vcombine.high %v1252_v62, %v1256_v63  ;;  %v1332_v45 = vld [vmem:[#allocation7 + $0x6c0] sm:$0xff] }
  0xca   :  { %1036 = vmatprep.subr.bf16.mxu0 %v5716_v4  ;;  %1079 = vmatprep.subr.bf16.mxu1 %v5718_v5  ;;  %v1116_v4 = vld [vmem:[#allocation7] sm:$0xff] }
  0xcb   :  { %v1120_v5 = vld [vmem:[#allocation7 + $0x20] sm:$0xff] }
  0xcc   :  { %v5775_v17 = vcombine.low %v1116_v4, %v1120_v5  ;;  %v1324_v60 = vld [vmem:[#allocation7 + $0x680] sm:$0xff] }
  0xcd   :  { %1037 = vmatpush2.bf16.msra.mxu0 %v5715_v10  ;;  %1080 = vmatpush2.bf16.msra.mxu1 %v5717_v11  ;;  %v5776_v10 = vcombine.high %v1116_v4, %v1120_v5  ;;  %v5904_v11 = vcombine.high %v1244_v6, %v1248_v7  ;;  %v1328_v61 = vld [vmem:[#allocation7 + $0x6a0] sm:$0xff] }
  0xce   :  { %4230 = vmatprep.subr.bf16.mxu0 %v5832_v12  ;;  %4273 = vmatprep.subr.bf16.mxu1 %v5960_v13  ;;  %v1236_v12 = vld [vmem:[#allocation7 + $0x3c0] sm:$0xff]  ;;  %v5983_v7 = vcombine.low %v1324_v60, %v1328_v61 }
  0xcf   :  { %v1240_v13 = vld [vmem:[#allocation7 + $0x3e0] sm:$0xff] }
  0xd0   :  { %1039 = vmatmul.mubr.bf16.vlgmr.msra.gmra.mxu0 %v6754_v16  ;;  %1082 = vmatmul.mubr.bf16.vlgmr.msra.gmra.mxu1 %v6754_v16  ;;  %v5936_v16 = vcombine.high %v1276_v33, %v1280_v34  ;;  %v5895_v25 = vcombine.low %v1236_v12, %v1240_v13  ;;  %v6015_v34 = vcombine.low %v1356_v23, %v1360_v24  ;;  %v1316_v4 = vld [vmem:[#allocation7 + $0x640] sm:$0xff] }
  0xd1   :  { %4231 = vmatpush1.bf16.msra.mxu0 %v5831_v19  ;;  %4274 = vmatpush1.bf16.msra.mxu1 %v5959_v20  ;;  %v5896_v19 = vcombine.high %v1236_v12, %v1240_v13  ;;  %v6024_v20 = vcombine.high %v1364_v14, %v1368_v15  ;;  %v1320_v5 = vld [vmem:[#allocation7 + $0x660] sm:$0xff] }
  0xd2   :  { %4232 = vmatprep.subr.bf16.mxu0 %v5824_v21  ;;  %4275 = vmatprep.subr.bf16.mxu1 %v5952_v22  ;;  %v1228_v21 = vld [vmem:[#allocation7 + $0x380] sm:$0xff]  ;;  %v5975_v15 = vcombine.low %v1316_v4, %v1320_v5 }
  0xd3   :  { %v1232_v22 = vld [vmem:[#allocation7 + $0x3a0] sm:$0xff] }
  0xd4   :  { %v5887_v33 = vcombine.low %v1228_v21, %v1232_v22  ;;  %v1308_v12 = vld [vmem:[#allocation7 + $0x600] sm:$0xff] }
  0xd5   :  { %4233 = vmatpush1.bf16.msra.mxu0 %v5823_v27  ;;  %4276 = vmatpush1.bf16.msra.mxu1 %v5951_v28  ;;  %v5888_v27 = vcombine.high %v1228_v21, %v1232_v22  ;;  %v6016_v28 = vcombine.high %v1356_v23, %v1360_v24  ;;  %v1312_v13 = vld [vmem:[#allocation7 + $0x620] sm:$0xff]  ;;  %v6088_v21 = vcombine.high %v6762_v47, %v6764_v48  ;;  %v240_v23 = vlaneseq }
  0xd6   :  { %4234 = vmatprep.subr.bf16.mxu0 %v5816_v29  ;;  %4277 = vmatprep.subr.bf16.mxu1 %v5944_v30  ;;  %v1220_v29 = vld [vmem:[#allocation7 + $0x340] sm:$0xff]  ;;  %v6216_v22 = vcombine.high %v6766_v49, %v6768_v52 }
  0xd7   :  { %v1224_v30 = vld [vmem:[#allocation7 + $0x360] sm:$0xff]  ;;  %v6778_v24 = vshrl.u32 %v240_v23, 7 }
  0xd8   :  { %v5879_v40 = vcombine.low %v1220_v29, %v1224_v30  ;;  %v1396_v23 = vld [vmem:[#allocation7 + $0x8c0] sm:$0xff] }
  0xd9   :  { %4235 = vmatpush1.bf16.msra.mxu0 %v5815_v35  ;;  %4278 = vmatpush1.bf16.msra.mxu1 %v5943_v36  ;;  %v5880_v35 = vcombine.high %v1220_v29, %v1224_v30  ;;  %v6008_v36 = vcombine.high %v1348_v31, %v1352_v32  ;;  %v250_v29 = vsub.s32 2, %v6778_v24  ;;  %v1400_v49 = vld [vmem:[#allocation7 + $0x8e0] sm:$0xff] }
  0xda   :  { %4236 = vmatprep.subr.bf16.mxu0 %v5808_v37  ;;  %4279 = vmatprep.subr.bf16.mxu1 %v5936_v16  ;;  %v1212_v37 = vld [vmem:[#allocation7 + $0x300] sm:$0xff] }
  0xdb   :  { %v1216_v16 = vld [vmem:[#allocation7 + $0x320] sm:$0xff] }
  0xdc   :  { %v5871_v50 = vcombine.low %v1212_v37, %v1216_v16  ;;  %v1524_v52 = vld [vmem:[#allocation7 + $0xcc0] sm:$0xff] }
  0xdd   :  { %4237 = vmatpush1.bf16.msra.mxu0 %v5807_v42  ;;  %4280 = vmatpush1.bf16.msra.mxu1 %v5935_v43  ;;  %v5872_v42 = vcombine.high %v1212_v37, %v1216_v16  ;;  %v6000_v43 = vcombine.high %v1340_v38, %v1344_v39 }
  0xde   :  { %4238 = vmatprep.subr.bf16.mxu0 %v5800_v44  ;;  %4281 = vmatprep.subr.bf16.mxu1 %v5928_v46  ;;  %v1204_v44 = vld [vmem:[#allocation7 + $0x2c0] sm:$0xff] }
  0xdf   :  { %v1336_v46 = vld [vmem:[#allocation7 + $0x6e0] sm:$0xff]  ;;  %v5863_v62 = vcombine.low %v1204_v44, %v1208_v58 }
  0xe0   :  { %v5991_v63 = vcombine.low %v1332_v45, %v1336_v46 }
  0xe1   :  { %4239 = vmatpush1.bf16.msra.mxu0 %v5799_v53  ;;  %4282 = vmatpush1.bf16.msra.mxu1 %v5927_v56  ;;  %v5864_v53 = vcombine.high %v1204_v44, %v1208_v58  ;;  %v5992_v56 = vcombine.high %v1332_v45, %v1336_v46 }
  0xe2   :  { %4240 = vmatprep.subr.bf16.mxu0 %v5792_v57  ;;  %4283 = vmatprep.subr.bf16.mxu1 %v5920_v59  ;;  %v1196_v57 = vld [vmem:[#allocation7 + $0x280] sm:$0xff] }
  0xe3   :  { %v1200_v59 = vld [vmem:[#allocation7 + $0x2a0] sm:$0xff] }
  0xe4   :  { %v5855_v6 = vcombine.low %v1196_v57, %v1200_v59 }
  0xe5   :  { %4241 = vmatpush1.bf16.msra.mxu0 %v5791_v0  ;;  %4284 = vmatpush1.bf16.msra.mxu1 %v5919_v1  ;;  %v5856_v0 = vcombine.high %v1196_v57, %v1200_v59  ;;  %v5984_v1 = vcombine.high %v1324_v60, %v1328_v61  ;;  %v1420_v59 = vld [vmem:[#allocation7 + $0x980] sm:$0xff] }
  0xe6   :  { %4242 = vmatprep.subr.bf16.mxu0 %v5784_v2  ;;  %4285 = vmatprep.subr.bf16.mxu1 %v5912_v3  ;;  %v1188_v2 = vld [vmem:[#allocation7 + $0x240] sm:$0xff] }
  0xe7   :  { %v1192_v3 = vld [vmem:[#allocation7 + $0x260] sm:$0xff] }
  0xe8   :  { %v5847_v14 = vcombine.low %v1188_v2, %v1192_v3  ;;  %v1424_v60 = vld [vmem:[#allocation7 + $0x9a0] sm:$0xff] }
  0xe9   :  { %4243 = vmatpush1.bf16.msra.mxu0 %v5783_v8  ;;  %4286 = vmatpush1.bf16.msra.mxu1 %v5911_v9  ;;  %v5848_v8 = vcombine.high %v1188_v2, %v1192_v3  ;;  %v5976_v9 = vcombine.high %v1316_v4, %v1320_v5 }
  0xea   :  { %4244 = vmatprep.subr.bf16.mxu0 %v5776_v10  ;;  %4287 = vmatprep.subr.bf16.mxu1 %v5904_v11  ;;  %v1180_v10 = vld [vmem:[#allocation7 + $0x200] sm:$0xff] }
  0xeb   :  { %v1184_v11 = vld [vmem:[#allocation7 + $0x220] sm:$0xff] }
  0xed   :  { %4245 = vmatpush1.bf16.msra.mxu0 %v5775_v17  ;;  %4288 = vmatpush1.bf16.msra.mxu1 %v5903_v18  ;;  %v5840_v17 = vcombine.high %v1180_v10, %v1184_v11  ;;  %v5968_v18 = vcombine.high %v1308_v12, %v1312_v13 }
  0xee   :  { %4246 = vmatprep.subr.bf16.mxu0 %v5896_v19  ;;  %4289 = vmatprep.subr.bf16.mxu1 %v6024_v20  ;;  %v5839_v19 = vcombine.low %v1180_v10, %v1184_v11  ;;  %v5967_v20 = vcombine.low %v1308_v12, %v1312_v13  ;;  %v1416_v10 = vld [vmem:[#allocation7 + $0x960] sm:$0xff]  ;;  %v6079_v13 = vcombine.low %v1420_v59, %v1424_v60 }
  0xef   :  { %v1540_v11 = vld [vmem:[#allocation7 + $0xd40] sm:$0xff] }
  0xf0   :  { %v1544_v12 = vld [vmem:[#allocation7 + $0xd60] sm:$0xff] }
  0xf1   :  { %4247 = vmatpush2.bf16.msra.mxu0 %v5895_v25  ;;  %4290 = vmatpush2.bf16.msra.mxu1 %v6023_v26  ;;  %v246_v25 = vsub.s32 1, %v6778_v24  ;;  %v242_v26 = vsub.s32 0, %v6778_v24  ;;  %v6199_v47 = vcombine.low %v1540_v11, %v1544_v12 }
  0xf2   :  { %4248 = vmatprep.subr.bf16.mxu0 %v5888_v27  ;;  %4291 = vmatprep.subr.bf16.mxu1 %v6016_v28  ;;  %v254_v27 = vsub.s32 3, %v6778_v24  ;;  %v6783_v28 = vld [vmem:[#allocation5] sm:$0xff] }
  0xf3   :  { %v247_v32 = vrot.slane %v6783_v28, %v246_v25 }
  0xf5   :  { %4249 = vmatpush2.bf16.msra.mxu0 %v5887_v33  ;;  %4292 = vmatpush2.bf16.msra.mxu1 %v6015_v34  ;;  %v243_v33 = vrot.slane %v6783_v28, %v242_v26 }
  0xf6   :  { %4250 = vmatprep.subr.bf16.mxu0 %v5880_v35  ;;  %4293 = vmatprep.subr.bf16.mxu1 %v6008_v36  ;;  %v255_v35 = vrot.slane %v6783_v28, %v254_v27  ;;  %v251_v36 = vrot.slane %v6783_v28, %v250_v29 }
  0xf9   :  { %4251 = vmatpush2.bf16.msra.mxu0 %v5879_v40  ;;  %4294 = vmatpush2.bf16.msra.mxu1 %v6007_v41 }
  0xfa   :  { %4252 = vmatprep.subr.bf16.mxu0 %v5872_v42  ;;  %4295 = vmatprep.subr.bf16.mxu1 %v6000_v43 }
  0xfd   :  { %4253 = vmatpush2.bf16.msra.mxu0 %v5871_v50  ;;  %4296 = vmatpush2.bf16.msra.mxu1 %v5999_v51 }
  0xfe   :  { %4254 = vmatprep.subr.bf16.mxu0 %v5864_v53  ;;  %4297 = vmatprep.subr.bf16.mxu1 %v5992_v56 }
 0x101   :  { %4255 = vmatpush2.bf16.msra.mxu0 %v5863_v62  ;;  %4298 = vmatpush2.bf16.msra.mxu1 %v5991_v63 }
 0x102   :  { %4256 = vmatprep.subr.bf16.mxu0 %v5856_v0  ;;  %4299 = vmatprep.subr.bf16.mxu1 %v5984_v1  ;;  %v1548_v0 = vld [vmem:[#allocation7 + $0xd80] sm:$0xff] }
 0x103   :  { %v1552_v1 = vld [vmem:[#allocation7 + $0xda0] sm:$0xff] }
 0x105   :  { %4257 = vmatpush2.bf16.msra.mxu0 %v5855_v6  ;;  %4300 = vmatpush2.bf16.msra.mxu1 %v5983_v7  ;;  %v6080_v6 = vcombine.high %v1420_v59, %v1424_v60 }
 0x106   :  { %4258 = vmatprep.subr.bf16.mxu0 %v5848_v8  ;;  %4301 = vmatprep.subr.bf16.mxu1 %v5976_v9  ;;  %v6208_v8 = vcombine.high %v1548_v0, %v1552_v1  ;;  %v1412_v9 = vld [vmem:[#allocation7 + $0x940] sm:$0xff] }
 0x109   :  { %4259 = vmatpush2.bf16.msra.mxu0 %v5847_v14  ;;  %4302 = vmatpush2.bf16.msra.mxu1 %v5975_v15  ;;  %v6207_v14 = vcombine.low %v1548_v0, %v1552_v1  ;;  %v6072_v15 = vcombine.high %v1412_v9, %v1416_v10  ;;  %v1496_v0 = vld [vmem:[#allocation7 + $0xbe0] sm:$0xff] }
 0x10a   :  { %4260 = vmatprep.subr.bf16.mxu0 %v5840_v17  ;;  %4303 = vmatprep.subr.bf16.mxu1 %v5968_v18  ;;  %v6200_v17 = vcombine.high %v1540_v11, %v1544_v12  ;;  %v1404_v18 = vld [vmem:[#allocation7 + $0x900] sm:$0xff] }
 0x10b   :  { %v1620_v1 = vld [vmem:[#allocation7 + $0xfc0] sm:$0xff] }
 0x10c   :  { %v1484_v11 = vld [vmem:[#allocation7 + $0xb80] sm:$0xff] }
 0x10d   :  { %4261 = vmatpush2.bf16.msra.mxu0 %v5839_v19  ;;  %4304 = vmatpush2.bf16.msra.mxu1 %v5967_v20  ;;  %v1408_v19 = vld [vmem:[#allocation7 + $0x920] sm:$0xff] }
 0x10e   :  { %4316 = vmatprep.subr.bf16.mxu0 %v6088_v21  ;;  %4359 = vmatprep.subr.bf16.mxu1 %v6216_v22  ;;  %v1532_v20 = vld [vmem:[#allocation7 + $0xd00] sm:$0xff]  ;;  %v6071_v22 = vcombine.low %v1412_v9, %v1416_v10  ;;  %v6064_v48 = vcombine.high %v1404_v18, %v1408_v19 }
 0x10f   :  { %v1536_v21 = vld [vmem:[#allocation7 + $0xd20] sm:$0xff] }
 0x110   :  { %v1488_v12 = vld [vmem:[#allocation7 + $0xba0] sm:$0xff] }
 0x150   :  { %v954_v30 = vpop.f32.mrf.mxu0  ;;  %v997_v31 = vpop.f32.mrf.mxu1 }
 0x151   :  { %v955_v41 = vadd.f32 %v954_v30, %v243_v33  ;;  %v998_v58 = vadd.f32 %v997_v31, %v251_v36  ;;  %v6063_v30 = vcombine.low %v1404_v18, %v1408_v19  ;;  %v6191_v31 = vcombine.low %v1532_v20, %v1536_v21 }
 0x152   :  { %v956_v34 = vpop.f32.mrf.mxu0  ;;  %v999_v37 = vpop.f32.mrf.mxu1  ;;  %v6144_v18 = vcombine.high %v1484_v11, %v1488_v12 }
 0x153   :  { %v957_v38 = vadd.f32 %v956_v34, %v247_v32  ;;  %v1000_v42 = vadd.f32 %v999_v37, %v255_v35  ;;  %v1092_v61 = vmax.f32 %v955_v41, 0.0  ;;  %v1094_v2 = vmax.f32 %v998_v58, 0.0  ;;  %v1388_v34 = vld [vmem:[#allocation7 + $0x880] sm:$0xff] }
 0x154   :  { %v958_v16 = vpop.f32.mrf.mxu0  ;;  %v1001_v40 = vpop.f32.mrf.mxu1  ;;  %v1520_v37 = vld [vmem:[#allocation7 + $0xca0] sm:$0xff] }
 0x155   :  { %v959_v39 = vadd.f32 %v958_v16, %v243_v33  ;;  %v1002_v43 = vadd.f32 %v1001_v40, %v251_v36  ;;  %v1093_v53 = vmax.f32 %v957_v38, 0.0  ;;  %v1095_v62 = vmax.f32 %v1000_v42, 0.0  ;;  %v1516_v36 = vld [vmem:[#allocation7 + $0xc80] sm:$0xff] }
 0x156   :  { %v960_v44 = vpop.f32.mrf.mxu0  ;;  %v1003_v46 = vpop.f32.mrf.mxu1  ;;  %v6055_v16 = vcombine.low %v1396_v23, %v1400_v49  ;;  %v6176_v40 = vcombine.high %v1516_v36, %v1520_v37  ;;  %v1380_v41 = vld [vmem:[#allocation7 + $0x840] sm:$0xff] }
 0x157   :  { %v961_v45 = vadd.f32 %v960_v44, %v247_v32  ;;  %v1100_v50 = vmax.f32 %v959_v39, 0.0  ;;  %v1004_v51 = vadd.f32 %v1003_v46, %v255_v35  ;;  %v1102_v56 = vmax.f32 %v1002_v43, 0.0  ;;  %v1392_v35 = vld [vmem:[#allocation7 + $0x8a0] sm:$0xff] }
 0x158   :  { %v6056_v32 = vcombine.high %v1396_v23, %v1400_v49  ;;  %v6048_v39 = vcombine.high %v1388_v34, %v1392_v35  ;;  %v1384_v42 = vld [vmem:[#allocation7 + $0x860] sm:$0xff]  ;;  %v6047_v58 = vcombine.low %v1388_v34, %v1392_v35 }
 0x159   :  { %v1101_v57 = vmax.f32 %v961_v45, 0.0  ;;  %v1103_v63 = vmax.f32 %v1004_v51, 0.0  ;;  %v6800_v4 = vpack.c.bf16 %v1100_v50, %v1092_v61  ;;  %v6804_v7 = vpack.c.bf16 %v1102_v56, %v1094_v2  ;;  %v1508_v43 = vld [vmem:[#allocation7 + $0xc40] sm:$0xff] }
 0x15a   :  { %v1512_v44 = vld [vmem:[#allocation7 + $0xc60] sm:$0xff]  ;;  %v6175_v45 = vcombine.low %v1516_v36, %v1520_v37  ;;  %v6040_v46 = vcombine.high %v1380_v41, %v1384_v42  ;;  %v6039_v59 = vcombine.low %v1380_v41, %v1384_v42 }
 0x15b   :  { %v6798_v3 = vpack.c.bf16 %v1101_v57, %v1093_v53  ;;  %v6802_v5 = vpack.c.bf16 %v1103_v63, %v1095_v62  ;;  %v6168_v50 = vcombine.high %v1508_v43, %v1512_v44  ;;  %v1372_v51 = vld [vmem:[#allocation7 + $0x800] sm:$0xff]  ;;  %v6167_v60 = vcombine.low %v1508_v43, %v1512_v44 }
 0x15c   :  { %v1376_v53 = vld [vmem:[#allocation7 + $0x820] sm:$0xff] }
 0x15d   :  { %4262 = vmatprep.mubr.bf16.mxu0 %v6798_v3  ;;  %4305 = vmatprep.mubr.bf16.mxu1 %v6802_v5  ;;  %v1500_v56 = vld [vmem:[#allocation7 + $0xc00] sm:$0xff]  ;;  %v6032_v61 = vcombine.high %v1372_v51, %v1376_v53 }
 0x15e   :  { %4263 = vmatmul.mubr.bf16.vlgmr.msra.gmra.mxu0 %v6800_v4  ;;  %4306 = vmatmul.mubr.bf16.vlgmr.msra.gmra.mxu1 %v6804_v7  ;;  %v1504_v57 = vld [vmem:[#allocation7 + $0xc20] sm:$0xff] }
 0x15f   :  { %4317 = vmatpush1.bf16.msra.mxu0 %v6087_v54  ;;  %4360 = vmatpush1.bf16.msra.mxu1 %v6215_v55  ;;  %v6192_v54 = vcombine.high %v1532_v20, %v1536_v21  ;;  %v1528_v55 = vld [vmem:[#allocation7 + $0xce0] sm:$0xff]  ;;  %v6160_v62 = vcombine.high %v1500_v56, %v1504_v57 }
 0x160   :  { %4318 = vmatprep.subr.bf16.mxu0 %v6080_v6  ;;  %4361 = vmatprep.subr.bf16.mxu1 %v6208_v8  ;;  %v6184_v33 = vcombine.high %v1524_v52, %v1528_v55  ;;  %v6183_v38 = vcombine.low %v1524_v52, %v1528_v55  ;;  %v1492_v63 = vld [vmem:[#allocation7 + $0xbc0] sm:$0xff]  ;;  %v6031_v6 = vcombine.low %v1372_v51, %v1376_v53 }
 0x161   :  { %v1624_v2 = vld [vmem:[#allocation7 + $0xfe0] sm:$0xff]  ;;  %v6159_v8 = vcombine.low %v1500_v56, %v1504_v57  ;;  %v6152_v9 = vcombine.high %v1492_v63, %v1496_v0  ;;  %v262_v56 = vsub.s32 5, %v6778_v24 }
 0x162   :  { %v6280_v10 = vcombine.high %v1620_v1, %v1624_v2  ;;  %v1476_v20 = vld [vmem:[#allocation7 + $0xb40] sm:$0xff] }
 0x163   :  { %4319 = vmatpush1.bf16.msra.mxu0 %v6079_v13  ;;  %4362 = vmatpush1.bf16.msra.mxu1 %v6207_v14  ;;  %v1612_v13 = vld [vmem:[#allocation7 + $0xf80] sm:$0xff] }
 0x164   :  { %4320 = vmatprep.subr.bf16.mxu0 %v6072_v15  ;;  %4363 = vmatprep.subr.bf16.mxu1 %v6200_v17  ;;  %v1616_v14 = vld [vmem:[#allocation7 + $0xfa0] sm:$0xff]  ;;  %v6151_v15 = vcombine.low %v1492_v63, %v1496_v0  ;;  %v6279_v17 = vcombine.low %v1620_v1, %v1624_v2  ;;  %v6983_v0 = vsub.s32 6, %v6778_v24 }
 0x165   :  { %v6272_v19 = vcombine.high %v1612_v13, %v1616_v14  ;;  %v1480_v21 = vld [vmem:[#allocation7 + $0xb60] sm:$0xff] }
 0x166   :  { %v6136_v23 = vcombine.high %v1476_v20, %v1480_v21  ;;  %v1468_v52 = vld [vmem:[#allocation7 + $0xb00] sm:$0xff] }
 0x167   :  { %4321 = vmatpush1.bf16.msra.mxu0 %v6071_v22  ;;  %4364 = vmatpush1.bf16.msra.mxu1 %v6199_v47  ;;  %v1604_v22 = vld [vmem:[#allocation7 + $0xf40] sm:$0xff] }
 0x168   :  { %4322 = vmatprep.subr.bf16.mxu0 %v6064_v48  ;;  %4365 = vmatprep.subr.bf16.mxu1 %v6192_v54  ;;  %v1608_v47 = vld [vmem:[#allocation7 + $0xf60] sm:$0xff]  ;;  %v6143_v48 = vcombine.low %v1484_v11, %v1488_v12  ;;  %v6271_v54 = vcombine.low %v1612_v13, %v1616_v14 }
 0x169   :  { %v6264_v49 = vcombine.high %v1604_v22, %v1608_v47  ;;  %v1472_v55 = vld [vmem:[#allocation7 + $0xb20] sm:$0xff] }
 0x16a   :  { %v6128_v34 = vcombine.high %v1468_v52, %v1472_v55  ;;  %v1460_v36 = vld [vmem:[#allocation7 + $0xac0] sm:$0xff] }
 0x16b   :  { %4323 = vmatpush1.bf16.msra.mxu0 %v6063_v30  ;;  %4366 = vmatpush1.bf16.msra.mxu1 %v6191_v31  ;;  %v1596_v30 = vld [vmem:[#allocation7 + $0xf00] sm:$0xff] }
 0x16c   :  { %4324 = vmatprep.subr.bf16.mxu0 %v6056_v32  ;;  %4367 = vmatprep.subr.bf16.mxu1 %v6184_v33  ;;  %v1600_v31 = vld [vmem:[#allocation7 + $0xf20] sm:$0xff]  ;;  %v6135_v32 = vcombine.low %v1476_v20, %v1480_v21  ;;  %v6263_v33 = vcombine.low %v1604_v22, %v1608_v47  ;;  %v267_v20 = vrot.slane %v6783_v28, %v6983_v0 }
 0x16d   :  { %v6256_v35 = vcombine.high %v1596_v30, %v1600_v31  ;;  %v1464_v37 = vld [vmem:[#allocation7 + $0xae0] sm:$0xff] }
 0x16e   :  { %v6120_v41 = vcombine.high %v1460_v36, %v1464_v37  ;;  %v1452_v43 = vld [vmem:[#allocation7 + $0xa80] sm:$0xff] }
 0x16f   :  { %4325 = vmatpush1.bf16.msra.mxu0 %v6055_v16  ;;  %4368 = vmatpush1.bf16.msra.mxu1 %v6183_v38  ;;  %v1588_v16 = vld [vmem:[#allocation7 + $0xec0] sm:$0xff] }
 0x170   :  { %4326 = vmatprep.subr.bf16.mxu0 %v6048_v39  ;;  %4369 = vmatprep.subr.bf16.mxu1 %v6176_v40  ;;  %v1592_v38 = vld [vmem:[#allocation7 + $0xee0] sm:$0xff]  ;;  %v6127_v39 = vcombine.low %v1468_v52, %v1472_v55  ;;  %v6255_v40 = vcombine.low %v1596_v30, %v1600_v31  ;;  %v1173_v30 = vld [vmem:[#allocation7 + $0x1c8] sm:$0xff] }
 0x171   :  { %v6248_v42 = vcombine.high %v1588_v16, %v1592_v38  ;;  %v1456_v44 = vld [vmem:[#allocation7 + $0xaa0] sm:$0xff]  ;;  %v1177_v31 = vld [vmem:[#allocation7 + $0x1e8] sm:$0xff] }
 0x172   :  { %v6112_v51 = vcombine.high %v1452_v43, %v1456_v44  ;;  %v1444_v57 = vld [vmem:[#allocation7 + $0xa40] sm:$0xff]  ;;  %v6111_v1 = vcombine.low %v1452_v43, %v1456_v44  ;;  %v5834_v43 = vcombine.high %v1173_v30, %v1177_v31 }
 0x173   :  { %4327 = vmatpush1.bf16.msra.mxu0 %v6047_v58  ;;  %4370 = vmatpush1.bf16.msra.mxu1 %v6175_v45  ;;  %v1580_v58 = vld [vmem:[#allocation7 + $0xe80] sm:$0xff] }
 0x174   :  { %4328 = vmatprep.subr.bf16.mxu0 %v6040_v46  ;;  %4371 = vmatprep.subr.bf16.mxu1 %v6168_v50  ;;  %v1584_v45 = vld [vmem:[#allocation7 + $0xea0] sm:$0xff]  ;;  %v6119_v46 = vcombine.low %v1460_v36, %v1464_v37  ;;  %v6247_v50 = vcombine.low %v1588_v16, %v1592_v38  ;;  %v1305_v36 = vld [vmem:[#allocation7 + $0x5e8] sm:$0xff] }
 0x175   :  { %v6240_v53 = vcombine.high %v1580_v58, %v1584_v45  ;;  %v1576_v63 = vld [vmem:[#allocation7 + $0xe60] sm:$0xff] }
 0x176   :  { %v1436_v12 = vld [vmem:[#allocation7 + $0xa00] sm:$0xff] }
 0x177   :  { %4329 = vmatpush1.bf16.msra.mxu0 %v6039_v59  ;;  %4372 = vmatpush1.bf16.msra.mxu1 %v6167_v60  ;;  %v1448_v59 = vld [vmem:[#allocation7 + $0xa60] sm:$0xff]  ;;  %v258_v60 = vsub.s32 4, %v6778_v24 }
 0x178   :  { %4330 = vmatprep.subr.bf16.mxu0 %v6032_v61  ;;  %4373 = vmatprep.subr.bf16.mxu1 %v6160_v62  ;;  %v270_v61 = vsub.s32 7, %v6778_v24  ;;  %v1572_v62 = vld [vmem:[#allocation7 + $0xe40] sm:$0xff]  ;;  %v6103_v22 = vcombine.low %v1444_v57, %v1448_v59 }
 0x179   :  { %v6232_v11 = vcombine.high %v1572_v62, %v1576_v63  ;;  %v1440_v13 = vld [vmem:[#allocation7 + $0xa20] sm:$0xff]  ;;  %v259_v14 = vrot.slane %v6783_v28, %v258_v60 }
 0x17b   :  { %4331 = vmatpush1.bf16.msra.mxu0 %v6031_v6  ;;  %4374 = vmatpush1.bf16.msra.mxu1 %v6159_v8  ;;  %v6239_v6 = vcombine.low %v1580_v58, %v1584_v45  ;;  %v6104_v8 = vcombine.high %v1444_v57, %v1448_v59  ;;  %v1165_v57 = vld [vmem:[#allocation7 + $0x188] sm:$0xff] }
 0x17c   :  { %4332 = vmatprep.subr.bf16.mxu0 %v6152_v9  ;;  %4375 = vmatprep.subr.bf16.mxu1 %v6280_v10  ;;  %v263_v10 = vrot.slane %v6783_v28, %v262_v56  ;;  %v1169_v59 = vld [vmem:[#allocation7 + $0x1a8] sm:$0xff] }
 0x17f   :  { %4333 = vmatpush2.bf16.msra.mxu0 %v6151_v15  ;;  %4376 = vmatpush2.bf16.msra.mxu1 %v6279_v17  ;;  %v271_v17 = vrot.slane %v6783_v28, %v270_v61  ;;  %v1301_v28 = vld [vmem:[#allocation7 + $0x5c8] sm:$0xff] }
 0x180   :  { %4334 = vmatprep.subr.bf16.mxu0 %v6144_v18  ;;  %4377 = vmatprep.subr.bf16.mxu1 %v6272_v19  ;;  %v1564_v18 = vld [vmem:[#allocation7 + $0xe00] sm:$0xff] }
 0x181   :  { %v1568_v19 = vld [vmem:[#allocation7 + $0xe20] sm:$0xff] }
 0x182   :  { %v6224_v55 = vcombine.high %v1564_v18, %v1568_v19 }
 0x183   :  { %4335 = vmatpush2.bf16.msra.mxu0 %v6143_v48  ;;  %4378 = vmatpush2.bf16.msra.mxu1 %v6271_v54  ;;  %v6231_v48 = vcombine.low %v1572_v62, %v1576_v63  ;;  %v6096_v54 = vcombine.high %v1436_v12, %v1440_v13 }
 0x184   :  { %4336 = vmatprep.subr.bf16.mxu0 %v6136_v23  ;;  %4379 = vmatprep.subr.bf16.mxu1 %v6264_v49 }
 0x187   :  { %4337 = vmatpush2.bf16.msra.mxu0 %v6135_v32  ;;  %4380 = vmatpush2.bf16.msra.mxu1 %v6263_v33 }
 0x188   :  { %4338 = vmatprep.subr.bf16.mxu0 %v6128_v34  ;;  %4381 = vmatprep.subr.bf16.mxu1 %v6256_v35 }
 0x18b   :  { %4339 = vmatpush2.bf16.msra.mxu0 %v6127_v39  ;;  %4382 = vmatpush2.bf16.msra.mxu1 %v6255_v40  ;;  %v6095_v39 = vcombine.low %v1436_v12, %v1440_v13  ;;  %v5826_v12 = vcombine.high %v1165_v57, %v1169_v59  ;;  %v1157_v13 = vld [vmem:[#allocation7 + $0x148] sm:$0xff] }
 0x18c   :  { %4340 = vmatprep.subr.bf16.mxu0 %v6120_v41  ;;  %4383 = vmatprep.subr.bf16.mxu1 %v6248_v42  ;;  %v6223_v42 = vcombine.low %v1564_v18, %v1568_v19  ;;  %v1289_v18 = vld [vmem:[#allocation7 + $0x568] sm:$0xff]  ;;  %v5825_v19 = vcombine.low %v1165_v57, %v1169_v59 }
 0x18f   :  { %4341 = vmatpush2.bf16.msra.mxu0 %v6119_v46  ;;  %4384 = vmatpush2.bf16.msra.mxu1 %v6247_v50  ;;  %v5962_v46 = vcombine.high %v1301_v28, %v1305_v36 }
 0x190   :  { %v1040_v2 = vpop.f32.mrf.mxu0  ;;  %4342 = vmatprep.subr.bf16.mxu0 %v6112_v51  ;;  %v1083_v9 = vpop.f32.mrf.mxu1  ;;  %4385 = vmatprep.subr.bf16.mxu1 %v6240_v53 }
 0x191   :  { %v1041_v32 = vadd.f32 %v1040_v2, %v259_v14  ;;  %v1084_v37 = vadd.f32 %v1083_v9, %v267_v20  ;;  %v1293_v2 = vld [vmem:[#allocation7 + $0x588] sm:$0xff] }
 0x192   :  { %v1042_v15 = vpop.f32.mrf.mxu0  ;;  %v1085_v21 = vpop.f32.mrf.mxu1 }
 0x193   :  { %4343 = vmatpush2.bf16.msra.mxu0 %v6111_v1  ;;  %4386 = vmatpush2.bf16.msra.mxu1 %v6239_v6  ;;  %v1043_v23 = vadd.f32 %v1042_v15, %v263_v10  ;;  %v1086_v33 = vadd.f32 %v1085_v21, %v271_v17  ;;  %v1096_v50 = vmax.f32 %v1041_v32, 0.0  ;;  %v1098_v62 = vmax.f32 %v1084_v37, 0.0  ;;  %v1297_v6 = vld [vmem:[#allocation7 + $0x5a8] sm:$0xff] }
 0x194   :  { %v1044_v47 = vpop.f32.mrf.mxu0  ;;  %4344 = vmatprep.subr.bf16.mxu0 %v6104_v8  ;;  %v1087_v52 = vpop.f32.mrf.mxu1  ;;  %4387 = vmatprep.subr.bf16.mxu1 %v6232_v11  ;;  %v5833_v1 = vcombine.low %v1173_v30, %v1177_v31  ;;  %v5954_v15 = vcombine.high %v1293_v2, %v1297_v6  ;;  %v1141_v31 = vld [vmem:[#allocation7 + $0xc8] sm:$0xff] }
 0x195   :  { %v1045_v49 = vadd.f32 %v1044_v47, %v259_v14  ;;  %v1088_v34 = vadd.f32 %v1087_v52, %v267_v20  ;;  %v1097_v44 = vmax.f32 %v1043_v23, 0.0  ;;  %v1099_v51 = vmax.f32 %v1086_v33, 0.0  ;;  %v1161_v14 = vld [vmem:[#allocation7 + $0x168] sm:$0xff] }
 0x196   :  { %v1046_v35 = vpop.f32.mrf.mxu0  ;;  %v1089_v38 = vpop.f32.mrf.mxu1  ;;  %v5953_v20 = vcombine.low %v1293_v2, %v1297_v6  ;;  %v5818_v21 = vcombine.high %v1157_v13, %v1161_v14  ;;  %v1149_v47 = vld [vmem:[#allocation7 + $0x108] sm:$0xff] }
 0x197   :  { %v1047_v16 = vadd.f32 %v1046_v35, %v263_v10  ;;  %4345 = vmatpush2.bf16.msra.mxu0 %v6103_v22  ;;  %v1104_v40 = vmax.f32 %v1045_v49, 0.0  ;;  %v1090_v41 = vadd.f32 %v1089_v38, %v271_v17  ;;  %4388 = vmatpush2.bf16.msra.mxu1 %v6231_v48  ;;  %v1106_v58 = vmax.f32 %v1088_v34, 0.0  ;;  %v1285_v17 = vld [vmem:[#allocation7 + $0x548] sm:$0xff] }
 0x198   :  { %4346 = vmatprep.subr.bf16.mxu0 %v6096_v54  ;;  %4389 = vmatprep.subr.bf16.mxu1 %v6224_v55  ;;  %v5961_v10 = vcombine.low %v1301_v28, %v1305_v36  ;;  %v5946_v22 = vcombine.high %v1285_v17, %v1289_v18  ;;  %v1153_v48 = vld [vmem:[#allocation7 + $0x128] sm:$0xff]  ;;  %v5817_v49 = vcombine.low %v1157_v13, %v1161_v14 }
 0x199   :  { %v1105_v45 = vmax.f32 %v1047_v16, 0.0  ;;  %v1107_v53 = vmax.f32 %v1090_v41, 0.0  ;;  %v6834_v8 = vpack.c.bf16 %v1104_v40, %v1096_v50  ;;  %v6838_v11 = vpack.c.bf16 %v1106_v58, %v1098_v62  ;;  %v1277_v54 = vld [vmem:[#allocation7 + $0x508] sm:$0xff] }
 0x19a   :  { %v1281_v23 = vld [vmem:[#allocation7 + $0x528] sm:$0xff]  ;;  %v5945_v52 = vcombine.low %v1285_v17, %v1289_v18  ;;  %v5810_v55 = vcombine.high %v1149_v47, %v1153_v48  ;;  %v5809_v35 = vcombine.low %v1149_v47, %v1153_v48 }
 0x19b   :  { %v6832_v63 = vpack.c.bf16 %v1105_v45, %v1097_v44  ;;  %4347 = vmatpush2.bf16.msra.mxu0 %v6095_v39  ;;  %v6836_v9 = vpack.c.bf16 %v1107_v53, %v1099_v51  ;;  %4390 = vmatpush2.bf16.msra.mxu1 %v6223_v42  ;;  %v5938_v30 = vcombine.high %v1277_v54, %v1281_v23  ;;  %v1145_v32 = vld [vmem:[#allocation7 + $0xe8] sm:$0xff] }
 0x19c   :  { %4402 = vmatprep.subr.bf16.mxu0 %v5834_v43  ;;  %4445 = vmatprep.subr.bf16.mxu1 %v5962_v46  ;;  %v1269_v33 = vld [vmem:[#allocation7 + $0x4c8] sm:$0xff]  ;;  %v5937_v28 = vcombine.low %v1277_v54, %v1281_v23  ;;  %v5802_v36 = vcombine.high %v1141_v31, %v1145_v32  ;;  %v5801_v41 = vcombine.low %v1141_v31, %v1145_v32 }
 0x19d   :  { %4348 = vmatprep.mubr.bf16.mxu0 %v6832_v63  ;;  %4391 = vmatprep.mubr.bf16.mxu1 %v6836_v9  ;;  %v1273_v34 = vld [vmem:[#allocation7 + $0x4e8] sm:$0xff] }
 0x19e   :  { %4349 = vmatmul.mubr.bf16.vlgmr.msra.gmra.mxu0 %v6834_v8  ;;  %4392 = vmatmul.mubr.bf16.vlgmr.msra.gmra.mxu1 %v6838_v11  ;;  %v5930_v37 = vcombine.high %v1269_v33, %v1273_v34  ;;  %v1133_v16 = vld [vmem:[#allocation7 + $0x88] sm:$0xff]  ;;  %v5929_v42 = vcombine.low %v1269_v33, %v1273_v34 }
 0x19f   :  { %4403 = vmatpush1.bf16.msra.mxu0 %v5833_v1  ;;  %4446 = vmatpush1.bf16.msra.mxu1 %v5961_v10  ;;  %v1137_v38 = vld [vmem:[#allocation7 + $0xa8] sm:$0xff] }
 0x1a0   :  { %4434 = vmatprep.mubr.bf16.mxu0 %v6798_v3  ;;  %4477 = vmatprep.mubr.bf16.mxu1 %v6802_v5  ;;  %v1261_v39 = vld [vmem:[#allocation7 + $0x488] sm:$0xff]  ;;  %v5794_v43 = vcombine.high %v1133_v16, %v1137_v38  ;;  %v5793_v51 = vcombine.low %v1133_v16, %v1137_v38 }
 0x1a1   :  { %4404 = vmatprep.subr.bf16.mxu0 %v5826_v12  ;;  %4447 = vmatprep.subr.bf16.mxu1 %v5954_v15  ;;  %v1265_v40 = vld [vmem:[#allocation7 + $0x4a8] sm:$0xff] }
 0x1a2   :  { %v5922_v44 = vcombine.high %v1261_v39, %v1265_v40  ;;  %v1125_v58 = vld [vmem:[#allocation7 + $0x48] sm:$0xff]  ;;  %v5921_v53 = vcombine.low %v1261_v39, %v1265_v40 }
 0x1a3   :  { %4405 = vmatpush1.bf16.msra.mxu0 %v5825_v19  ;;  %4448 = vmatpush1.bf16.msra.mxu1 %v5953_v20  ;;  %v1129_v45 = vld [vmem:[#allocation7 + $0x68] sm:$0xff] }
 0x1a4   :  { %4406 = vmatprep.subr.bf16.mxu0 %v5818_v21  ;;  %4449 = vmatprep.subr.bf16.mxu1 %v5946_v22  ;;  %v1253_v46 = vld [vmem:[#allocation7 + $0x448] sm:$0xff]  ;;  %v5786_v57 = vcombine.high %v1125_v58, %v1129_v45  ;;  %v5785_v10 = vcombine.low %v1125_v58, %v1129_v45 }
 0x1a5   :  { %v1257_v50 = vld [vmem:[#allocation7 + $0x468] sm:$0xff] }
 0x1a6   :  { %v5914_v59 = vcombine.high %v1253_v46, %v1257_v50  ;;  %v1117_v62 = vld [vmem:[#allocation7 + $0x8] sm:$0xff]  ;;  %v5913_v12 = vcombine.low %v1253_v46, %v1257_v50 }
 0x1a7   :  { %4407 = vmatpush1.bf16.msra.mxu0 %v5817_v49  ;;  %4450 = vmatpush1.bf16.msra.mxu1 %v5945_v52  ;;  %v1121_v1 = vld [vmem:[#allocation7 + $0x28] sm:$0xff] }
 0x1a8   :  { %4408 = vmatprep.subr.bf16.mxu0 %v5810_v55  ;;  %4451 = vmatprep.subr.bf16.mxu1 %v5938_v30  ;;  %v1245_v2 = vld [vmem:[#allocation7 + $0x408] sm:$0xff]  ;;  %v5778_v13 = vcombine.high %v1117_v62, %v1121_v1  ;;  %v5777_v20 = vcombine.low %v1117_v62, %v1121_v1 }
 0x1a9   :  { %v1249_v6 = vld [vmem:[#allocation7 + $0x428] sm:$0xff] }
 0x1aa   :  { %v5906_v14 = vcombine.high %v1245_v2, %v1249_v6  ;;  %v1237_v15 = vld [vmem:[#allocation7 + $0x3c8] sm:$0xff]  ;;  %v5905_v21 = vcombine.low %v1245_v2, %v1249_v6 }
 0x1ab   :  { %4409 = vmatpush1.bf16.msra.mxu0 %v5809_v35  ;;  %4452 = vmatpush1.bf16.msra.mxu1 %v5937_v28  ;;  %v1241_v17 = vld [vmem:[#allocation7 + $0x3e8] sm:$0xff] }
 0x1ac   :  { %4410 = vmatprep.subr.bf16.mxu0 %v5802_v36  ;;  %4453 = vmatprep.subr.bf16.mxu1 %v5930_v37  ;;  %v1365_v18 = vld [vmem:[#allocation7 + $0x7c8] sm:$0xff]  ;;  %v5898_v22 = vcombine.high %v1237_v15, %v1241_v17  ;;  %v5897_v52 = vcombine.low %v1237_v15, %v1241_v17 }
 0x1ad   :  { %v1369_v19 = vld [vmem:[#allocation7 + $0x7e8] sm:$0xff] }
 0x1ae   :  { %v6026_v47 = vcombine.high %v1365_v18, %v1369_v19  ;;  %v1229_v48 = vld [vmem:[#allocation7 + $0x388] sm:$0xff]  ;;  %v6025_v55 = vcombine.low %v1365_v18, %v1369_v19 }
 0x1af   :  { %4411 = vmatpush1.bf16.msra.mxu0 %v5801_v41  ;;  %4454 = vmatpush1.bf16.msra.mxu1 %v5929_v42  ;;  %v1233_v54 = vld [vmem:[#allocation7 + $0x3a8] sm:$0xff] }
 0x1b0   :  { %4412 = vmatprep.subr.bf16.mxu0 %v5794_v43  ;;  %4455 = vmatprep.subr.bf16.mxu1 %v5922_v44  ;;  %v1357_v23 = vld [vmem:[#allocation7 + $0x788] sm:$0xff]  ;;  %v5890_v30 = vcombine.high %v1229_v48, %v1233_v54  ;;  %v5889_v28 = vcombine.low %v1229_v48, %v1233_v54 }
 0x1b1   :  { %v1361_v49 = vld [vmem:[#allocation7 + $0x7a8] sm:$0xff] }
 0x1b2   :  { %v6018_v31 = vcombine.high %v1357_v23, %v1361_v49  ;;  %v1221_v32 = vld [vmem:[#allocation7 + $0x348] sm:$0xff]  ;;  %v6017_v36 = vcombine.low %v1357_v23, %v1361_v49 }
 0x1b3   :  { %4413 = vmatpush1.bf16.msra.mxu0 %v5793_v51  ;;  %4456 = vmatpush1.bf16.msra.mxu1 %v5921_v53  ;;  %v1225_v33 = vld [vmem:[#allocation7 + $0x368] sm:$0xff] }
 0x1b4   :  { %4414 = vmatprep.subr.bf16.mxu0 %v5786_v57  ;;  %4457 = vmatprep.subr.bf16.mxu1 %v5914_v59  ;;  %v1349_v34 = vld [vmem:[#allocation7 + $0x748] sm:$0xff]  ;;  %v5882_v37 = vcombine.high %v1221_v32, %v1225_v33  ;;  %v5881_v42 = vcombine.low %v1221_v32, %v1225_v33 }
 0x1b5   :  { %v1353_v35 = vld [vmem:[#allocation7 + $0x768] sm:$0xff] }
 0x1b6   :  { %v6010_v16 = vcombine.high %v1349_v34, %v1353_v35  ;;  %v1213_v38 = vld [vmem:[#allocation7 + $0x308] sm:$0xff]  ;;  %v6009_v43 = vcombine.low %v1349_v34, %v1353_v35 }
 0x1b7   :  { %4415 = vmatpush1.bf16.msra.mxu0 %v5785_v10  ;;  %4458 = vmatpush1.bf16.msra.mxu1 %v5913_v12  ;;  %v1217_v39 = vld [vmem:[#allocation7 + $0x328] sm:$0xff] }
 0x1b8   :  { %4416 = vmatprep.subr.bf16.mxu0 %v5778_v13  ;;  %4459 = vmatprep.subr.bf16.mxu1 %v5906_v14  ;;  %v1341_v40 = vld [vmem:[#allocation7 + $0x708] sm:$0xff]  ;;  %v5874_v44 = vcombine.high %v1213_v38, %v1217_v39  ;;  %v5873_v53 = vcombine.low %v1213_v38, %v1217_v39 }
 0x1b9   :  { %v1345_v41 = vld [vmem:[#allocation7 + $0x728] sm:$0xff] }
 0x1ba   :  { %v6002_v58 = vcombine.high %v1341_v40, %v1345_v41  ;;  %v1205_v45 = vld [vmem:[#allocation7 + $0x2c8] sm:$0xff]  ;;  %v6001_v57 = vcombine.low %v1341_v40, %v1345_v41 }
 0x1bb   :  { %4417 = vmatpush1.bf16.msra.mxu0 %v5777_v20  ;;  %4460 = vmatpush1.bf16.msra.mxu1 %v5905_v21  ;;  %v1209_v46 = vld [vmem:[#allocation7 + $0x2e8] sm:$0xff] }
 0x1bc   :  { %4418 = vmatprep.subr.bf16.mxu0 %v5898_v22  ;;  %4461 = vmatprep.subr.bf16.mxu1 %v6026_v47  ;;  %v1333_v50 = vld [vmem:[#allocation7 + $0x6c8] sm:$0xff]  ;;  %v5866_v59 = vcombine.high %v1205_v45, %v1209_v46  ;;  %v5865_v12 = vcombine.low %v1205_v45, %v1209_v46 }
 0x1bd   :  { %v1337_v51 = vld [vmem:[#allocation7 + $0x6e8] sm:$0xff] }
 0x1be   :  { %v5994_v62 = vcombine.high %v1333_v50, %v1337_v51  ;;  %v1197_v1 = vld [vmem:[#allocation7 + $0x288] sm:$0xff]  ;;  %v5993_v13 = vcombine.low %v1333_v50, %v1337_v51 }
 0x1bf   :  { %4419 = vmatpush2.bf16.msra.mxu0 %v5897_v52  ;;  %4462 = vmatpush2.bf16.msra.mxu1 %v6025_v55  ;;  %v1201_v2 = vld [vmem:[#allocation7 + $0x2a8] sm:$0xff] }
 0x1c0   :  { %4420 = vmatprep.subr.bf16.mxu0 %v5890_v30  ;;  %4463 = vmatprep.subr.bf16.mxu1 %v6018_v31  ;;  %v1325_v6 = vld [vmem:[#allocation7 + $0x688] sm:$0xff]  ;;  %v5858_v14 = vcombine.high %v1197_v1, %v1201_v2  ;;  %v5857_v21 = vcombine.low %v1197_v1, %v1201_v2 }
 0x1c1   :  { %v1329_v10 = vld [vmem:[#allocation7 + $0x6a8] sm:$0xff] }
 0x1c2   :  { %v5986_v15 = vcombine.high %v1325_v6, %v1329_v10  ;;  %v1189_v17 = vld [vmem:[#allocation7 + $0x248] sm:$0xff]  ;;  %v5985_v22 = vcombine.low %v1325_v6, %v1329_v10 }
 0x1c3   :  { %4421 = vmatpush2.bf16.msra.mxu0 %v5889_v28  ;;  %4464 = vmatpush2.bf16.msra.mxu1 %v6017_v36  ;;  %v1193_v18 = vld [vmem:[#allocation7 + $0x268] sm:$0xff] }
 0x1c4   :  { %4422 = vmatprep.subr.bf16.mxu0 %v5882_v37  ;;  %4465 = vmatprep.subr.bf16.mxu1 %v6010_v16  ;;  %v1317_v19 = vld [vmem:[#allocation7 + $0x648] sm:$0xff]  ;;  %v5850_v47 = vcombine.high %v1189_v17, %v1193_v18  ;;  %v5849_v55 = vcombine.low %v1189_v17, %v1193_v18 }
 0x1c5   :  { %v1321_v20 = vld [vmem:[#allocation7 + $0x668] sm:$0xff] }
 0x1c6   :  { %v5978_v48 = vcombine.high %v1317_v19, %v1321_v20  ;;  %v1181_v54 = vld [vmem:[#allocation7 + $0x208] sm:$0xff]  ;;  %v5977_v30 = vcombine.low %v1317_v19, %v1321_v20 }
 0x1c7   :  { %4423 = vmatpush2.bf16.msra.mxu0 %v5881_v42  ;;  %4466 = vmatpush2.bf16.msra.mxu1 %v6009_v43  ;;  %v1185_v23 = vld [vmem:[#allocation7 + $0x228] sm:$0xff] }
 0x1c8   :  { %4424 = vmatprep.subr.bf16.mxu0 %v5874_v44  ;;  %4467 = vmatprep.subr.bf16.mxu1 %v6002_v58  ;;  %v1309_v49 = vld [vmem:[#allocation7 + $0x608] sm:$0xff]  ;;  %v5842_v31 = vcombine.high %v1181_v54, %v1185_v23  ;;  %v5841_v36 = vcombine.low %v1181_v54, %v1185_v23 }
 0x1c9   :  { %v1313_v52 = vld [vmem:[#allocation7 + $0x628] sm:$0xff] }
 0x1ca   :  { %v5970_v32 = vcombine.high %v1309_v49, %v1313_v52  ;;  %v1429_v33 = vld [vmem:[#allocation7 + $0x9c8] sm:$0xff]  ;;  %v5969_v37 = vcombine.low %v1309_v49, %v1313_v52 }
 0x1cb   :  { %4425 = vmatpush2.bf16.msra.mxu0 %v5873_v53  ;;  %4468 = vmatpush2.bf16.msra.mxu1 %v6001_v57  ;;  %v1433_v34 = vld [vmem:[#allocation7 + $0x9e8] sm:$0xff] }
 0x1cc   :  { %4426 = vmatprep.subr.bf16.mxu0 %v5866_v59  ;;  %4469 = vmatprep.subr.bf16.mxu1 %v5994_v62  ;;  %v1557_v35 = vld [vmem:[#allocation7 + $0xdc8] sm:$0xff]  ;;  %v6090_v16 = vcombine.high %v1429_v33, %v1433_v34  ;;  %v6089_v41 = vcombine.low %v1429_v33, %v1433_v34 }
 0x1cd   :  { %v1561_v28 = vld [vmem:[#allocation7 + $0xde8] sm:$0xff] }
 0x1ce   :  { %v6218_v38 = vcombine.high %v1557_v35, %v1561_v28  ;;  %v1421_v39 = vld [vmem:[#allocation7 + $0x988] sm:$0xff]  ;;  %v6217_v44 = vcombine.low %v1557_v35, %v1561_v28 }
 0x1cf   :  { %4427 = vmatpush2.bf16.msra.mxu0 %v5865_v12  ;;  %4470 = vmatpush2.bf16.msra.mxu1 %v5993_v13  ;;  %v1425_v40 = vld [vmem:[#allocation7 + $0x9a8] sm:$0xff] }
 0x1d0   :  { %4428 = vmatprep.subr.bf16.mxu0 %v5858_v14  ;;  %4471 = vmatprep.subr.bf16.mxu1 %v5986_v15  ;;  %v1549_v42 = vld [vmem:[#allocation7 + $0xd88] sm:$0xff]  ;;  %v6082_v58 = vcombine.high %v1421_v39, %v1425_v40  ;;  %v6081_v57 = vcombine.low %v1421_v39, %v1425_v40 }
 0x1d1   :  { %v1553_v43 = vld [vmem:[#allocation7 + $0xda8] sm:$0xff] }
 0x1d2   :  { %v1413_v45 = vld [vmem:[#allocation7 + $0x948] sm:$0xff]  ;;  %v6210_v50 = vcombine.high %v1549_v42, %v1553_v43  ;;  %v6209_v59 = vcombine.low %v1549_v42, %v1553_v43 }
 0x1d3   :  { %4429 = vmatpush2.bf16.msra.mxu0 %v5857_v21  ;;  %4472 = vmatpush2.bf16.msra.mxu1 %v5985_v22  ;;  %v1417_v46 = vld [vmem:[#allocation7 + $0x968] sm:$0xff] }
 0x1d4   :  { %4430 = vmatprep.subr.bf16.mxu0 %v5850_v47  ;;  %4473 = vmatprep.subr.bf16.mxu1 %v5978_v48  ;;  %v1541_v51 = vld [vmem:[#allocation7 + $0xd48] sm:$0xff]  ;;  %v6074_v62 = vcombine.high %v1413_v45, %v1417_v46  ;;  %v6073_v13 = vcombine.low %v1413_v45, %v1417_v46 }
 0x1d5   :  { %v1545_v53 = vld [vmem:[#allocation7 + $0xd68] sm:$0xff] }
 0x1d6   :  { %v6202_v1 = vcombine.high %v1541_v51, %v1545_v53  ;;  %v1405_v2 = vld [vmem:[#allocation7 + $0x908] sm:$0xff]  ;;  %v6201_v14 = vcombine.low %v1541_v51, %v1545_v53 }
 0x1d7   :  { %4431 = vmatpush2.bf16.msra.mxu0 %v5849_v55  ;;  %4474 = vmatpush2.bf16.msra.mxu1 %v5977_v30  ;;  %v1409_v6 = vld [vmem:[#allocation7 + $0x928] sm:$0xff] }
 0x1d8   :  { %4432 = vmatprep.subr.bf16.mxu0 %v5842_v31  ;;  %4475 = vmatprep.subr.bf16.mxu1 %v5970_v32  ;;  %v1533_v10 = vld [vmem:[#allocation7 + $0xd08] sm:$0xff]  ;;  %v6066_v15 = vcombine.high %v1405_v2, %v1409_v6  ;;  %v6065_v22 = vcombine.low %v1405_v2, %v1409_v6 }
 0x1d9   :  { %v1537_v12 = vld [vmem:[#allocation7 + $0xd28] sm:$0xff] }
 0x1da   :  { %v6194_v17 = vcombine.high %v1533_v10, %v1537_v12  ;;  %v1397_v18 = vld [vmem:[#allocation7 + $0x8c8] sm:$0xff]  ;;  %v6193_v47 = vcombine.low %v1533_v10, %v1537_v12 }
 0x1db   :  { %4433 = vmatpush2.bf16.msra.mxu0 %v5841_v36  ;;  %4476 = vmatpush2.bf16.msra.mxu1 %v5969_v37  ;;  %v1401_v19 = vld [vmem:[#allocation7 + $0x8e8] sm:$0xff] }
 0x1dc   :  { %4488 = vmatprep.subr.bf16.mxu0 %v6090_v16  ;;  %4531 = vmatprep.subr.bf16.mxu1 %v6218_v38  ;;  %v1525_v20 = vld [vmem:[#allocation7 + $0xcc8] sm:$0xff]  ;;  %v6058_v48 = vcombine.high %v1397_v18, %v1401_v19  ;;  %v6057_v30 = vcombine.low %v1397_v18, %v1401_v19 }
 0x1dd   :  { %v1529_v21 = vld [vmem:[#allocation7 + $0xce8] sm:$0xff] }
 0x1de   :  { %4435 = vmatmul.mubr.bf16.vlgmr.msra.gmra.mxu0 %v6800_v4  ;;  %4478 = vmatmul.mubr.bf16.vlgmr.msra.gmra.mxu1 %v6804_v7  ;;  %v6186_v54 = vcombine.high %v1525_v20, %v1529_v21  ;;  %v1389_v23 = vld [vmem:[#allocation7 + $0x888] sm:$0xff]  ;;  %v6185_v31 = vcombine.low %v1525_v20, %v1529_v21 }
 0x1df   :  { %4489 = vmatpush1.bf16.msra.mxu0 %v6089_v41  ;;  %4520 = vmatprep.mubr.bf16.mxu0 %v6832_v63  ;;  %v1393_v49 = vld [vmem:[#allocation7 + $0x8a8] sm:$0xff] }
 0x1e0   :  { %4532 = vmatpush1.bf16.msra.mxu1 %v6217_v44  ;;  %4563 = vmatprep.mubr.bf16.mxu1 %v6836_v9  ;;  %v1517_v52 = vld [vmem:[#allocation7 + $0xc88] sm:$0xff]  ;;  %v6050_v32 = vcombine.high %v1389_v23, %v1393_v49  ;;  %v6049_v37 = vcombine.low %v1389_v23, %v1393_v49 }
 0x1e1   :  { %4490 = vmatprep.subr.bf16.mxu0 %v6082_v58  ;;  %4533 = vmatprep.subr.bf16.mxu1 %v6210_v50  ;;  %v1521_v55 = vld [vmem:[#allocation7 + $0xca8] sm:$0xff] }
 0x1e2   :  { %v6178_v33 = vcombine.high %v1517_v52, %v1521_v55  ;;  %v1381_v34 = vld [vmem:[#allocation7 + $0x848] sm:$0xff]  ;;  %v6177_v16 = vcombine.low %v1517_v52, %v1521_v55 }
 0x1e3   :  { %4491 = vmatpush1.bf16.msra.mxu0 %v6081_v57  ;;  %v1385_v35 = vld [vmem:[#allocation7 + $0x868] sm:$0xff] }
 0x1e4   :  { %4534 = vmatpush1.bf16.msra.mxu1 %v6209_v59  ;;  %4492 = vmatprep.subr.bf16.mxu0 %v6074_v62  ;;  %v1509_v28 = vld [vmem:[#allocation7 + $0xc48] sm:$0xff]  ;;  %v6042_v38 = vcombine.high %v1381_v34, %v1385_v35  ;;  %v6041_v44 = vcombine.low %v1381_v34, %v1385_v35 }
 0x1e5   :  { %4535 = vmatprep.subr.bf16.mxu1 %v6202_v1  ;;  %v1513_v36 = vld [vmem:[#allocation7 + $0xc68] sm:$0xff] }
 0x1e6   :  { %v6170_v39 = vcombine.high %v1509_v28, %v1513_v36  ;;  %v1373_v40 = vld [vmem:[#allocation7 + $0x808] sm:$0xff]  ;;  %v6169_v58 = vcombine.low %v1509_v28, %v1513_v36 }
 0x1e7   :  { %4493 = vmatpush1.bf16.msra.mxu0 %v6073_v13  ;;  %v1377_v41 = vld [vmem:[#allocation7 + $0x828] sm:$0xff] }
 0x1e8   :  { %4536 = vmatpush1.bf16.msra.mxu1 %v6201_v14  ;;  %4494 = vmatprep.subr.bf16.mxu0 %v6066_v15  ;;  %v1501_v42 = vld [vmem:[#allocation7 + $0xc08] sm:$0xff]  ;;  %v6034_v45 = vcombine.high %v1373_v40, %v1377_v41  ;;  %v6033_v59 = vcombine.low %v1373_v40, %v1377_v41 }
 0x1e9   :  { %4537 = vmatprep.subr.bf16.mxu1 %v6194_v17  ;;  %v1505_v43 = vld [vmem:[#allocation7 + $0xc28] sm:$0xff] }
 0x1ea   :  { %v6162_v46 = vcombine.high %v1501_v42, %v1505_v43  ;;  %v1493_v50 = vld [vmem:[#allocation7 + $0xbc8] sm:$0xff]  ;;  %v6161_v62 = vcombine.low %v1501_v42, %v1505_v43 }
 0x1eb   :  { %4495 = vmatpush1.bf16.msra.mxu0 %v6065_v22  ;;  %v1497_v51 = vld [vmem:[#allocation7 + $0xbe8] sm:$0xff] }
 0x1ec   :  { %4538 = vmatpush1.bf16.msra.mxu1 %v6193_v47  ;;  %4496 = vmatprep.subr.bf16.mxu0 %v6058_v48  ;;  %v1621_v53 = vld [vmem:[#allocation7 + $0xfc8] sm:$0xff]  ;;  %v6154_v1 = vcombine.high %v1493_v50, %v1497_v51  ;;  %v6153_v14 = vcombine.low %v1493_v50, %v1497_v51 }
 0x1ed   :  { %4539 = vmatprep.subr.bf16.mxu1 %v6186_v54  ;;  %v1625_v57 = vld [vmem:[#allocation7 + $0xfe8] sm:$0xff] }
 0x1ee   :  { %v6282_v2 = vcombine.high %v1621_v53, %v1625_v57  ;;  %v1485_v6 = vld [vmem:[#allocation7 + $0xb88] sm:$0xff]  ;;  %v6281_v15 = vcombine.low %v1621_v53, %v1625_v57 }
 0x1ef   :  { %4497 = vmatpush1.bf16.msra.mxu0 %v6057_v30  ;;  %v1489_v10 = vld [vmem:[#allocation7 + $0xba8] sm:$0xff] }
 0x1f0   :  { %4540 = vmatpush1.bf16.msra.mxu1 %v6185_v31  ;;  %4498 = vmatprep.subr.bf16.mxu0 %v6050_v32  ;;  %v1613_v12 = vld [vmem:[#allocation7 + $0xf88] sm:$0xff]  ;;  %v6146_v17 = vcombine.high %v1485_v6, %v1489_v10  ;;  %v6145_v47 = vcombine.low %v1485_v6, %v1489_v10 }
 0x1f1   :  { %4541 = vmatprep.subr.bf16.mxu1 %v6178_v33  ;;  %v1617_v13 = vld [vmem:[#allocation7 + $0xfa8] sm:$0xff] }
 0x1f2   :  { %v6274_v18 = vcombine.high %v1613_v12, %v1617_v13  ;;  %v1477_v19 = vld [vmem:[#allocation7 + $0xb48] sm:$0xff]  ;;  %v6273_v48 = vcombine.low %v1613_v12, %v1617_v13 }
 0x1f3   :  { %4499 = vmatpush1.bf16.msra.mxu0 %v6049_v37  ;;  %v1481_v20 = vld [vmem:[#allocation7 + $0xb68] sm:$0xff] }
 0x1f4   :  { %4542 = vmatpush1.bf16.msra.mxu1 %v6177_v16  ;;  %4500 = vmatprep.subr.bf16.mxu0 %v6042_v38  ;;  %v1605_v21 = vld [vmem:[#allocation7 + $0xf48] sm:$0xff]  ;;  %v6138_v54 = vcombine.high %v1477_v19, %v1481_v20  ;;  %v6137_v31 = vcombine.low %v1477_v19, %v1481_v20  ;;  %v1174_v20 = vld [vmem:[#allocation7 + $0x1d0] sm:$0xff] }
 0x1f5   :  { %4543 = vmatprep.subr.bf16.mxu1 %v6170_v39  ;;  %v1609_v22 = vld [vmem:[#allocation7 + $0xf68] sm:$0xff] }
 0x1f6   :  { %v6266_v23 = vcombine.high %v1605_v21, %v1609_v22  ;;  %v1469_v49 = vld [vmem:[#allocation7 + $0xb08] sm:$0xff]  ;;  %v6265_v32 = vcombine.low %v1605_v21, %v1609_v22  ;;  %v1178_v21 = vld [vmem:[#allocation7 + $0x1f0] sm:$0xff] }
 0x1f7   :  { %4501 = vmatpush1.bf16.msra.mxu0 %v6041_v44  ;;  %v1473_v52 = vld [vmem:[#allocation7 + $0xb28] sm:$0xff]  ;;  %v1302_v22 = vld [vmem:[#allocation7 + $0x5d0] sm:$0xff] }
 0x1f8   :  { %4544 = vmatpush1.bf16.msra.mxu1 %v6169_v58  ;;  %4502 = vmatprep.subr.bf16.mxu0 %v6034_v45  ;;  %v1597_v55 = vld [vmem:[#allocation7 + $0xf08] sm:$0xff]  ;;  %v6130_v33 = vcombine.high %v1469_v49, %v1473_v52  ;;  %v6129_v16 = vcombine.low %v1469_v49, %v1473_v52  ;;  %v1166_v52 = vld [vmem:[#allocation7 + $0x190] sm:$0xff] }
 0x1f9   :  { %4545 = vmatprep.subr.bf16.mxu1 %v6162_v46  ;;  %v1601_v30 = vld [vmem:[#allocation7 + $0xf28] sm:$0xff] }
 0x1fa   :  { %v6258_v34 = vcombine.high %v1597_v55, %v1601_v30  ;;  %v1461_v35 = vld [vmem:[#allocation7 + $0xac8] sm:$0xff]  ;;  %v6257_v38 = vcombine.low %v1597_v55, %v1601_v30  ;;  %v1170_v55 = vld [vmem:[#allocation7 + $0x1b0] sm:$0xff]  ;;  %v5835_v30 = vcombine.low %v1174_v20, %v1178_v21 }
 0x1fb   :  { %4503 = vmatpush1.bf16.msra.mxu0 %v6033_v59  ;;  %v1465_v28 = vld [vmem:[#allocation7 + $0xae8] sm:$0xff] }
 0x1fc   :  { %4546 = vmatpush1.bf16.msra.mxu1 %v6161_v62  ;;  %4504 = vmatprep.subr.bf16.mxu0 %v6154_v1  ;;  %v1589_v36 = vld [vmem:[#allocation7 + $0xec8] sm:$0xff]  ;;  %v6122_v39 = vcombine.high %v1461_v35, %v1465_v28  ;;  %v6121_v58 = vcombine.low %v1461_v35, %v1465_v28  ;;  %v1158_v35 = vld [vmem:[#allocation7 + $0x150] sm:$0xff] }
 0x1fd   :  { %4547 = vmatprep.subr.bf16.mxu1 %v6282_v2  ;;  %v1593_v37 = vld [vmem:[#allocation7 + $0xee8] sm:$0xff]  ;;  %v1162_v28 = vld [vmem:[#allocation7 + $0x170] sm:$0xff] }
 0x1fe   :  { %v6250_v40 = vcombine.high %v1589_v36, %v1593_v37  ;;  %v1453_v41 = vld [vmem:[#allocation7 + $0xa88] sm:$0xff]  ;;  %v6249_v45 = vcombine.low %v1589_v36, %v1593_v37  ;;  %v1286_v37 = vld [vmem:[#allocation7 + $0x550] sm:$0xff] }
 0x1ff   :  { %4505 = vmatpush2.bf16.msra.mxu0 %v6153_v14  ;;  %v1457_v42 = vld [vmem:[#allocation7 + $0xaa8] sm:$0xff] }
 0x200   :  { %4548 = vmatpush2.bf16.msra.mxu1 %v6281_v15  ;;  %4506 = vmatprep.subr.bf16.mxu0 %v6146_v17  ;;  %v1581_v43 = vld [vmem:[#allocation7 + $0xe88] sm:$0xff]  ;;  %v6114_v46 = vcombine.high %v1453_v41, %v1457_v42  ;;  %v6113_v62 = vcombine.low %v1453_v41, %v1457_v42  ;;  %v1150_v42 = vld [vmem:[#allocation7 + $0x110] sm:$0xff] }
 0x201   :  { %4549 = vmatprep.subr.bf16.mxu1 %v6274_v18  ;;  %v1585_v44 = vld [vmem:[#allocation7 + $0xea8] sm:$0xff] }
 0x202   :  { %v6242_v50 = vcombine.high %v1581_v43, %v1585_v44  ;;  %v1445_v51 = vld [vmem:[#allocation7 + $0xa48] sm:$0xff]  ;;  %v6241_v1 = vcombine.low %v1581_v43, %v1585_v44  ;;  %v1154_v43 = vld [vmem:[#allocation7 + $0x130] sm:$0xff] }
 0x203   :  { %4507 = vmatpush2.bf16.msra.mxu0 %v6145_v47  ;;  %v1449_v53 = vld [vmem:[#allocation7 + $0xa68] sm:$0xff]  ;;  %v1306_v47 = vld [vmem:[#allocation7 + $0x5f0] sm:$0xff] }
 0x204   :  { %4550 = vmatpush2.bf16.msra.mxu1 %v6273_v48  ;;  %4508 = vmatprep.subr.bf16.mxu0 %v6138_v54  ;;  %v1573_v57 = vld [vmem:[#allocation7 + $0xe48] sm:$0xff]  ;;  %v6106_v2 = vcombine.high %v1445_v51, %v1449_v53  ;;  %v6105_v15 = vcombine.low %v1445_v51, %v1449_v53  ;;  %v5964_v49 = vcombine.high %v1302_v22, %v1306_v47  ;;  %v1278_v44 = vld [vmem:[#allocation7 + $0x510] sm:$0xff] }
 0x205   :  { %4551 = vmatprep.subr.bf16.mxu1 %v6266_v23  ;;  %v1577_v59 = vld [vmem:[#allocation7 + $0xe68] sm:$0xff]  ;;  %v5836_v23 = vcombine.high %v1174_v20, %v1178_v21  ;;  %v1142_v53 = vld [vmem:[#allocation7 + $0xd0] sm:$0xff] }
 0x206   :  { %v6234_v6 = vcombine.high %v1573_v57, %v1577_v59  ;;  %v1437_v10 = vld [vmem:[#allocation7 + $0xa08] sm:$0xff]  ;;  %v6233_v17 = vcombine.low %v1573_v57, %v1577_v59  ;;  %v1146_v57 = vld [vmem:[#allocation7 + $0xf0] sm:$0xff] }
 0x207   :  { %4509 = vmatpush2.bf16.msra.mxu0 %v6137_v31  ;;  %v1441_v12 = vld [vmem:[#allocation7 + $0xa28] sm:$0xff]  ;;  %v1294_v31 = vld [vmem:[#allocation7 + $0x590] sm:$0xff] }
 0x208   :  { %4552 = vmatpush2.bf16.msra.mxu1 %v6265_v32  ;;  %4510 = vmatprep.subr.bf16.mxu0 %v6130_v33  ;;  %v1565_v13 = vld [vmem:[#allocation7 + $0xe08] sm:$0xff]  ;;  %v6098_v18 = vcombine.high %v1437_v10, %v1441_v12  ;;  %v6097_v48 = vcombine.low %v1437_v10, %v1441_v12  ;;  %v1298_v32 = vld [vmem:[#allocation7 + $0x5b0] sm:$0xff]  ;;  %v5963_v33 = vcombine.low %v1302_v22, %v1306_v47 }
 0x209   :  { %4553 = vmatprep.subr.bf16.mxu1 %v6258_v34  ;;  %v1569_v14 = vld [vmem:[#allocation7 + $0xe28] sm:$0xff]  ;;  %v5828_v34 = vcombine.high %v1166_v52, %v1170_v55  ;;  %v5956_v36 = vcombine.high %v1294_v31, %v1298_v32  ;;  %v1270_v59 = vld [vmem:[#allocation7 + $0x4d0] sm:$0xff] }
 0x20a   :  { %v6226_v19 = vcombine.high %v1565_v13, %v1569_v14  ;;  %v6225_v54 = vcombine.low %v1565_v13, %v1569_v14  ;;  %v1134_v12 = vld [vmem:[#allocation7 + $0x90] sm:$0xff] }
 0x20b   :  { %4511 = vmatpush2.bf16.msra.mxu0 %v6129_v16  ;;  %v1290_v16 = vld [vmem:[#allocation7 + $0x570] sm:$0xff] }
 0x20c   :  { %4554 = vmatpush2.bf16.msra.mxu1 %v6257_v38  ;;  %4512 = vmatprep.subr.bf16.mxu0 %v6122_v39  ;;  %v5827_v38 = vcombine.low %v1166_v52, %v1170_v55  ;;  %v5955_v39 = vcombine.low %v1294_v31, %v1298_v32  ;;  %v5948_v41 = vcombine.high %v1286_v37, %v1290_v16  ;;  %v1138_v13 = vld [vmem:[#allocation7 + $0xb0] sm:$0xff] }
 0x20d   :  { %4555 = vmatprep.subr.bf16.mxu1 %v6250_v40  ;;  %v5820_v40 = vcombine.high %v1158_v35, %v1162_v28  ;;  %v1262_v14 = vld [vmem:[#allocation7 + $0x490] sm:$0xff] }
 0x20e   :  { %v1126_v21 = vld [vmem:[#allocation7 + $0x50] sm:$0xff] }
 0x20f   :  { %4513 = vmatpush2.bf16.msra.mxu0 %v6121_v58  ;;  %v1282_v58 = vld [vmem:[#allocation7 + $0x530] sm:$0xff] }
 0x210   :  { %4556 = vmatpush2.bf16.msra.mxu1 %v6249_v45  ;;  %4514 = vmatprep.subr.bf16.mxu0 %v6114_v46  ;;  %v5819_v45 = vcombine.low %v1158_v35, %v1162_v28  ;;  %v5947_v46 = vcombine.low %v1286_v37, %v1290_v16  ;;  %v5940_v51 = vcombine.high %v1278_v44, %v1282_v58  ;;  %v1130_v22 = vld [vmem:[#allocation7 + $0x70] sm:$0xff] }
 0x211   :  { %4557 = vmatprep.subr.bf16.mxu1 %v6242_v50  ;;  %v5812_v50 = vcombine.high %v1150_v42, %v1154_v43  ;;  %v1254_v47 = vld [vmem:[#allocation7 + $0x450] sm:$0xff] }
 0x212   :  { %v1118_v55 = vld [vmem:[#allocation7 + $0x10] sm:$0xff] }
 0x213   :  { %4515 = vmatpush2.bf16.msra.mxu0 %v6113_v62  ;;  %v1274_v62 = vld [vmem:[#allocation7 + $0x4f0] sm:$0xff] }
 0x214   :  { %4558 = vmatpush2.bf16.msra.mxu1 %v6241_v1  ;;  %4516 = vmatprep.subr.bf16.mxu0 %v6106_v2  ;;  %v5811_v1 = vcombine.low %v1150_v42, %v1154_v43  ;;  %v5939_v2 = vcombine.low %v1278_v44, %v1282_v58  ;;  %v5932_v10 = vcombine.high %v1270_v59, %v1274_v62  ;;  %v1246_v31 = vld [vmem:[#allocation7 + $0x410] sm:$0xff] }
 0x215   :  { %4559 = vmatprep.subr.bf16.mxu1 %v6234_v6  ;;  %v5804_v6 = vcombine.high %v1142_v53, %v1146_v57  ;;  %v1250_v32 = vld [vmem:[#allocation7 + $0x430] sm:$0xff] }
 0x216   :  { %v5908_v28 = vcombine.high %v1246_v31, %v1250_v32  ;;  %v1242_v37 = vld [vmem:[#allocation7 + $0x3f0] sm:$0xff] }
 0x217   :  { %4517 = vmatpush2.bf16.msra.mxu0 %v6105_v15  ;;  %v1266_v15 = vld [vmem:[#allocation7 + $0x4b0] sm:$0xff] }
 0x218   :  { %4560 = vmatpush2.bf16.msra.mxu1 %v6233_v17  ;;  %4518 = vmatprep.subr.bf16.mxu0 %v6098_v18  ;;  %v5803_v17 = vcombine.low %v1142_v53, %v1146_v57  ;;  %v5931_v18 = vcombine.low %v1270_v59, %v1274_v62  ;;  %v5924_v20 = vcombine.high %v1262_v14, %v1266_v15  ;;  %v1366_v16 = vld [vmem:[#allocation7 + $0x7d0] sm:$0xff] }
 0x219   :  { %4561 = vmatprep.subr.bf16.mxu1 %v6226_v19  ;;  %v5796_v19 = vcombine.high %v1134_v12, %v1138_v13  ;;  %v1230_v43 = vld [vmem:[#allocation7 + $0x390] sm:$0xff] }
 0x21a   :  { %v1234_v44 = vld [vmem:[#allocation7 + $0x3b0] sm:$0xff] }
 0x21b   :  { %4519 = vmatpush2.bf16.msra.mxu0 %v6097_v48  ;;  %v1258_v48 = vld [vmem:[#allocation7 + $0x470] sm:$0xff] }
 0x21c   :  { %4562 = vmatpush2.bf16.msra.mxu1 %v6225_v54  ;;  %4574 = vmatprep.subr.bf16.mxu0 %v5836_v23  ;;  %v5795_v54 = vcombine.low %v1134_v12, %v1138_v13  ;;  %v5923_v23 = vcombine.low %v1262_v14, %v1266_v15  ;;  %v5916_v52 = vcombine.high %v1254_v47, %v1258_v48  ;;  %v1358_v58 = vld [vmem:[#allocation7 + $0x790] sm:$0xff] }
 0x21d   :  { %4617 = vmatprep.subr.bf16.mxu1 %v5964_v49  ;;  %v5788_v49 = vcombine.high %v1126_v21, %v1130_v22  ;;  %v1222_v57 = vld [vmem:[#allocation7 + $0x350] sm:$0xff] }
 0x21e   :  { %4521 = vmatmul.mubr.bf16.vlgmr.msra.gmra.mxu0 %v6834_v8  ;;  %v1226_v59 = vld [vmem:[#allocation7 + $0x370] sm:$0xff] }
 0x21f   :  { %4564 = vmatmul.mubr.bf16.vlgmr.msra.gmra.mxu1 %v6838_v11  ;;  %4575 = vmatpush1.bf16.msra.mxu0 %v5835_v30  ;;  %v1122_v30 = vld [vmem:[#allocation7 + $0x30] sm:$0xff] }
 0x220   :  { %4606 = vmatprep.mubr.bf16.mxu0 %v6798_v3  ;;  %4618 = vmatpush1.bf16.msra.mxu1 %v5963_v33  ;;  %v5787_v33 = vcombine.low %v1126_v21, %v1130_v22  ;;  %v5780_v35 = vcombine.high %v1118_v55, %v1122_v30  ;;  %v1350_v62 = vld [vmem:[#allocation7 + $0x750] sm:$0xff] }
 0x221   :  { %4649 = vmatprep.mubr.bf16.mxu1 %v6802_v5  ;;  %4576 = vmatprep.subr.bf16.mxu0 %v5828_v34  ;;  %v5915_v34 = vcombine.low %v1254_v47, %v1258_v48  ;;  %v1214_v13 = vld [vmem:[#allocation7 + $0x310] sm:$0xff] }
 0x222   :  { %4619 = vmatprep.subr.bf16.mxu1 %v5956_v36  ;;  %v1238_v36 = vld [vmem:[#allocation7 + $0x3d0] sm:$0xff] }
 0x223   :  { %4577 = vmatpush1.bf16.msra.mxu0 %v5827_v38  ;;  %v1370_v38 = vld [vmem:[#allocation7 + $0x7f0] sm:$0xff] }
 0x224   :  { %4620 = vmatpush1.bf16.msra.mxu1 %v5955_v39  ;;  %4578 = vmatprep.subr.bf16.mxu0 %v5820_v40  ;;  %v5779_v39 = vcombine.low %v1118_v55, %v1122_v30  ;;  %v5907_v40 = vcombine.low %v1246_v31, %v1250_v32  ;;  %v6028_v42 = vcombine.high %v1366_v16, %v1370_v38  ;;  %v1218_v14 = vld [vmem:[#allocation7 + $0x330] sm:$0xff] }
 0x225   :  { %4621 = vmatprep.subr.bf16.mxu1 %v5948_v41  ;;  %v5900_v41 = vcombine.high %v1238_v36, %v1242_v37  ;;  %v1342_v15 = vld [vmem:[#allocation7 + $0x710] sm:$0xff] }
 0x226   :  { %v1206_v22 = vld [vmem:[#allocation7 + $0x2d0] sm:$0xff] }
 0x227   :  { %4579 = vmatpush1.bf16.msra.mxu0 %v5819_v45  ;;  %v1362_v45 = vld [vmem:[#allocation7 + $0x7b0] sm:$0xff] }
 0x228   :  { %4622 = vmatpush1.bf16.msra.mxu1 %v5947_v46  ;;  %4580 = vmatprep.subr.bf16.mxu0 %v5812_v50  ;;  %v5899_v46 = vcombine.low %v1238_v36, %v1242_v37  ;;  %v6027_v50 = vcombine.low %v1366_v16, %v1370_v38  ;;  %v6020_v53 = vcombine.high %v1358_v58, %v1362_v45  ;;  %v1210_v47 = vld [vmem:[#allocation7 + $0x2f0] sm:$0xff] }
 0x229   :  { %4623 = vmatprep.subr.bf16.mxu1 %v5940_v51  ;;  %v5892_v51 = vcombine.high %v1230_v43, %v1234_v44  ;;  %v1334_v48 = vld [vmem:[#allocation7 + $0x6d0] sm:$0xff] }
 0x22a   :  { %v1198_v30 = vld [vmem:[#allocation7 + $0x290] sm:$0xff] }
 0x22b   :  { %4581 = vmatpush1.bf16.msra.mxu0 %v5811_v1  ;;  %v1354_v1 = vld [vmem:[#allocation7 + $0x770] sm:$0xff] }
 0x22c   :  { %4624 = vmatpush1.bf16.msra.mxu1 %v5939_v2  ;;  %4582 = vmatprep.subr.bf16.mxu0 %v5804_v6  ;;  %v5891_v2 = vcombine.low %v1230_v43, %v1234_v44  ;;  %v6019_v6 = vcombine.low %v1358_v58, %v1362_v45  ;;  %v6012_v12 = vcombine.high %v1350_v62, %v1354_v1  ;;  %v1202_v31 = vld [vmem:[#allocation7 + $0x2b0] sm:$0xff] }
 0x22d   :  { %4625 = vmatprep.subr.bf16.mxu1 %v5932_v10  ;;  %v5884_v10 = vcombine.high %v1222_v57, %v1226_v59  ;;  %v1326_v32 = vld [vmem:[#allocation7 + $0x690] sm:$0xff] }
 0x22e   :  { %v1190_v37 = vld [vmem:[#allocation7 + $0x250] sm:$0xff] }
 0x22f   :  { %4583 = vmatpush1.bf16.msra.mxu0 %v5803_v17  ;;  %v1346_v17 = vld [vmem:[#allocation7 + $0x730] sm:$0xff] }
 0x230   :  { %4626 = vmatpush1.bf16.msra.mxu1 %v5931_v18  ;;  %4584 = vmatprep.subr.bf16.mxu0 %v5796_v19  ;;  %v5883_v18 = vcombine.low %v1222_v57, %v1226_v59  ;;  %v6011_v19 = vcombine.low %v1350_v62, %v1354_v1  ;;  %v6004_v21 = vcombine.high %v1342_v15, %v1346_v17  ;;  %v1194_v16 = vld [vmem:[#allocation7 + $0x270] sm:$0xff] }
 0x231   :  { %4627 = vmatprep.subr.bf16.mxu1 %v5924_v20  ;;  %v5876_v20 = vcombine.high %v1214_v13, %v1218_v14  ;;  %v1318_v38 = vld [vmem:[#allocation7 + $0x650] sm:$0xff] }
 0x232   :  { %v1182_v44 = vld [vmem:[#allocation7 + $0x210] sm:$0xff] }
 0x233   :  { %4585 = vmatpush1.bf16.msra.mxu0 %v5795_v54  ;;  %v1338_v54 = vld [vmem:[#allocation7 + $0x6f0] sm:$0xff] }
 0x234   :  { %4628 = vmatpush1.bf16.msra.mxu1 %v5923_v23  ;;  %4586 = vmatprep.subr.bf16.mxu0 %v5788_v49  ;;  %v5875_v23 = vcombine.low %v1214_v13, %v1218_v14  ;;  %v6003_v49 = vcombine.low %v1342_v15, %v1346_v17  ;;  %v5996_v55 = vcombine.high %v1334_v48, %v1338_v54  ;;  %v1186_v58 = vld [vmem:[#allocation7 + $0x230] sm:$0xff] }
 0x235   :  { %4629 = vmatprep.subr.bf16.mxu1 %v5916_v52  ;;  %v5868_v52 = vcombine.high %v1206_v22, %v1210_v47  ;;  %v1310_v45 = vld [vmem:[#allocation7 + $0x610] sm:$0xff] }
 0x236   :  { %v1430_v59 = vld [vmem:[#allocation7 + $0x9d0] sm:$0xff] }
 0x237   :  { %4587 = vmatpush1.bf16.msra.mxu0 %v5787_v33  ;;  %v1330_v33 = vld [vmem:[#allocation7 + $0x6b0] sm:$0xff] }
 0x238   :  { %4630 = vmatpush1.bf16.msra.mxu1 %v5915_v34  ;;  %4588 = vmatprep.subr.bf16.mxu0 %v5780_v35  ;;  %v5867_v34 = vcombine.low %v1206_v22, %v1210_v47  ;;  %v5995_v35 = vcombine.low %v1334_v48, %v1338_v54  ;;  %v5988_v36 = vcombine.high %v1326_v32, %v1330_v33  ;;  %v1434_v62 = vld [vmem:[#allocation7 + $0x9f0] sm:$0xff] }
 0x239   :  { %4631 = vmatprep.subr.bf16.mxu1 %v5908_v28  ;;  %v5860_v28 = vcombine.high %v1198_v30, %v1202_v31  ;;  %v1558_v1 = vld [vmem:[#allocation7 + $0xdd0] sm:$0xff]  ;;  %v6091_v17 = vcombine.low %v1430_v59, %v1434_v62 }
 0x23a   :  { %v1422_v14 = vld [vmem:[#allocation7 + $0x990] sm:$0xff] }
 0x23b   :  { %4589 = vmatpush1.bf16.msra.mxu0 %v5779_v39  ;;  %v1322_v39 = vld [vmem:[#allocation7 + $0x670] sm:$0xff] }
 0x23c   :  { %4632 = vmatpush1.bf16.msra.mxu1 %v5907_v40  ;;  %4590 = vmatprep.subr.bf16.mxu0 %v5900_v41  ;;  %v5859_v40 = vcombine.low %v1198_v30, %v1202_v31  ;;  %v5987_v41 = vcombine.low %v1326_v32, %v1330_v33  ;;  %v5980_v43 = vcombine.high %v1318_v38, %v1322_v39  ;;  %v1426_v15 = vld [vmem:[#allocation7 + $0x9b0] sm:$0xff] }
 0x23d   :  { %4633 = vmatprep.subr.bf16.mxu1 %v6028_v42  ;;  %v5852_v42 = vcombine.high %v1190_v37, %v1194_v16  ;;  %v1414_v22 = vld [vmem:[#allocation7 + $0x950] sm:$0xff] }
 0x23e   :  { %v1418_v47 = vld [vmem:[#allocation7 + $0x970] sm:$0xff] }
 0x23f   :  { %4591 = vmatpush2.bf16.msra.mxu0 %v5899_v46  ;;  %v1314_v46 = vld [vmem:[#allocation7 + $0x630] sm:$0xff] }
 0x240   :  { %4634 = vmatpush2.bf16.msra.mxu1 %v6027_v50  ;;  %4592 = vmatprep.subr.bf16.mxu0 %v5892_v51  ;;  %v5851_v50 = vcombine.low %v1190_v37, %v1194_v16  ;;  %v5979_v51 = vcombine.low %v1318_v38, %v1322_v39  ;;  %v5972_v57 = vcombine.high %v1310_v45, %v1314_v46  ;;  %v1542_v54 = vld [vmem:[#allocation7 + $0xd50] sm:$0xff] }
 0x241   :  { %4635 = vmatprep.subr.bf16.mxu1 %v6020_v53  ;;  %v5844_v53 = vcombine.high %v1182_v44, %v1186_v58  ;;  %v1406_v31 = vld [vmem:[#allocation7 + $0x910] sm:$0xff] }
 0x242   :  { %v1410_v32 = vld [vmem:[#allocation7 + $0x930] sm:$0xff] }
 0x243   :  { %4593 = vmatpush2.bf16.msra.mxu0 %v5891_v2  ;;  %v1562_v2 = vld [vmem:[#allocation7 + $0xdf0] sm:$0xff] }
 0x244   :  { %4636 = vmatpush2.bf16.msra.mxu1 %v6019_v6  ;;  %4594 = vmatprep.subr.bf16.mxu0 %v5884_v10  ;;  %v5843_v6 = vcombine.low %v1182_v44, %v1186_v58  ;;  %v5971_v10 = vcombine.low %v1310_v45, %v1314_v46  ;;  %v6220_v13 = vcombine.high %v1558_v1, %v1562_v2  ;;  %v1534_v33 = vld [vmem:[#allocation7 + $0xd10] sm:$0xff] }
 0x245   :  { %4637 = vmatprep.subr.bf16.mxu1 %v6012_v12  ;;  %v6092_v12 = vcombine.high %v1430_v59, %v1434_v62  ;;  %v1398_v16 = vld [vmem:[#allocation7 + $0x8d0] sm:$0xff] }
 0x246   :  { %v1402_v38 = vld [vmem:[#allocation7 + $0x8f0] sm:$0xff] }
 0x247   :  { %4595 = vmatpush2.bf16.msra.mxu0 %v5883_v18  ;;  %v1550_v18 = vld [vmem:[#allocation7 + $0xd90] sm:$0xff] }
 0x248   :  { %4638 = vmatpush2.bf16.msra.mxu1 %v6011_v19  ;;  %4596 = vmatprep.subr.bf16.mxu0 %v5876_v20  ;;  %v1554_v19 = vld [vmem:[#allocation7 + $0xdb0] sm:$0xff]  ;;  %v6219_v20 = vcombine.low %v1558_v1, %v1562_v2 }
 0x249   :  { %4639 = vmatprep.subr.bf16.mxu1 %v6004_v21  ;;  %v6084_v21 = vcombine.high %v1422_v14, %v1426_v15  ;;  %v6212_v48 = vcombine.high %v1550_v18, %v1554_v19  ;;  %v1526_v39 = vld [vmem:[#allocation7 + $0xcd0] sm:$0xff] }
 0x24a   :  { %v1390_v58 = vld [vmem:[#allocation7 + $0x890] sm:$0xff] }
 0x24b   :  { %4597 = vmatpush2.bf16.msra.mxu0 %v5875_v23  ;;  %v1546_v23 = vld [vmem:[#allocation7 + $0xd70] sm:$0xff] }
 0x24c   :  { %4640 = vmatpush2.bf16.msra.mxu1 %v6003_v49  ;;  %4598 = vmatprep.subr.bf16.mxu0 %v5868_v52  ;;  %v6083_v49 = vcombine.low %v1422_v14, %v1426_v15  ;;  %v6211_v52 = vcombine.low %v1550_v18, %v1554_v19  ;;  %v6204_v30 = vcombine.high %v1542_v54, %v1546_v23  ;;  %v1394_v45 = vld [vmem:[#allocation7 + $0x8b0] sm:$0xff] }
 0x24d   :  { %4641 = vmatprep.subr.bf16.mxu1 %v5996_v55  ;;  %v6076_v55 = vcombine.high %v1414_v22, %v1418_v47  ;;  %v1518_v46 = vld [vmem:[#allocation7 + $0xc90] sm:$0xff] }
 0x24e   :  { %v1382_v62 = vld [vmem:[#allocation7 + $0x850] sm:$0xff] }
 0x24f   :  { %4599 = vmatpush2.bf16.msra.mxu0 %v5867_v34  ;;  %v1538_v34 = vld [vmem:[#allocation7 + $0xd30] sm:$0xff] }
 0x250   :  { %4642 = vmatpush2.bf16.msra.mxu1 %v5995_v35  ;;  %4600 = vmatprep.subr.bf16.mxu0 %v5860_v28  ;;  %v6075_v35 = vcombine.low %v1414_v22, %v1418_v47  ;;  %v6203_v28 = vcombine.low %v1542_v54, %v1546_v23  ;;  %v6196_v37 = vcombine.high %v1534_v33, %v1538_v34  ;;  %v1386_v1 = vld [vmem:[#allocation7 + $0x870] sm:$0xff] }
 0x251   :  { %4643 = vmatprep.subr.bf16.mxu1 %v5988_v36  ;;  %v6068_v36 = vcombine.high %v1406_v31, %v1410_v32  ;;  %v1510_v2 = vld [vmem:[#allocation7 + $0xc50] sm:$0xff] }
 0x252   :  { %v1374_v15 = vld [vmem:[#allocation7 + $0x810] sm:$0xff] }
 0x253   :  { %4601 = vmatpush2.bf16.msra.mxu0 %v5859_v40  ;;  %v1530_v40 = vld [vmem:[#allocation7 + $0xcf0] sm:$0xff] }
 0x254   :  { %4644 = vmatpush2.bf16.msra.mxu1 %v5987_v41  ;;  %4602 = vmatprep.subr.bf16.mxu0 %v5852_v42  ;;  %v6067_v41 = vcombine.low %v1406_v31, %v1410_v32  ;;  %v6195_v42 = vcombine.low %v1534_v33, %v1538_v34  ;;  %v6188_v44 = vcombine.high %v1526_v39, %v1530_v40  ;;  %v1502_v18 = vld [vmem:[#allocation7 + $0xc10] sm:$0xff] }
 0x255   :  { %4645 = vmatprep.subr.bf16.mxu1 %v5980_v43  ;;  %v6060_v43 = vcombine.high %v1398_v16, %v1402_v38  ;;  %v1506_v19 = vld [vmem:[#allocation7 + $0xc30] sm:$0xff] }
 0x256   :  { %v6164_v47 = vcombine.high %v1502_v18, %v1506_v19  ;;  %v1498_v54 = vld [vmem:[#allocation7 + $0xbf0] sm:$0xff] }
 0x257   :  { %4603 = vmatpush2.bf16.msra.mxu0 %v5851_v50  ;;  %v1522_v50 = vld [vmem:[#allocation7 + $0xcb0] sm:$0xff] }
 0x258   :  { %4646 = vmatpush2.bf16.msra.mxu1 %v5979_v51  ;;  %4604 = vmatprep.subr.bf16.mxu0 %v5844_v53  ;;  %v6059_v51 = vcombine.low %v1398_v16, %v1402_v38  ;;  %v6187_v53 = vcombine.low %v1526_v39, %v1530_v40  ;;  %v6180_v59 = vcombine.high %v1518_v46, %v1522_v50  ;;  %v1622_v23 = vld [vmem:[#allocation7 + $0xfd0] sm:$0xff] }
 0x259   :  { %4647 = vmatprep.subr.bf16.mxu1 %v5972_v57  ;;  %v6052_v57 = vcombine.high %v1390_v58, %v1394_v45  ;;  %v1486_v32 = vld [vmem:[#allocation7 + $0xb90] sm:$0xff] }
 0x25a   :  { %v1490_v33 = vld [vmem:[#allocation7 + $0xbb0] sm:$0xff] }
 0x25b   :  { %4605 = vmatpush2.bf16.msra.mxu0 %v5843_v6  ;;  %v1514_v6 = vld [vmem:[#allocation7 + $0xc70] sm:$0xff] }
 0x25c   :  { %4648 = vmatpush2.bf16.msra.mxu1 %v5971_v10  ;;  %4660 = vmatprep.subr.bf16.mxu0 %v6092_v12  ;;  %v6051_v10 = vcombine.low %v1390_v58, %v1394_v45  ;;  %v6179_v12 = vcombine.low %v1518_v46, %v1522_v50  ;;  %v6172_v14 = vcombine.high %v1510_v2, %v1514_v6  ;;  %v1614_v34 = vld [vmem:[#allocation7 + $0xf90] sm:$0xff] }
 0x25d   :  { %4703 = vmatprep.subr.bf16.mxu1 %v6220_v13  ;;  %v6044_v13 = vcombine.high %v1382_v62, %v1386_v1  ;;  %v1478_v38 = vld [vmem:[#allocation7 + $0xb50] sm:$0xff] }
 0x25e   :  { %4607 = vmatmul.mubr.bf16.vlgmr.msra.gmra.mxu0 %v6800_v4  ;;  %v1482_v39 = vld [vmem:[#allocation7 + $0xb70] sm:$0xff] }
 0x25f   :  { %4650 = vmatmul.mubr.bf16.vlgmr.msra.gmra.mxu1 %v6804_v7  ;;  %4661 = vmatpush1.bf16.msra.mxu0 %v6091_v17  ;;  %v1378_v17 = vld [vmem:[#allocation7 + $0x830] sm:$0xff] }
 0x260   :  { %4692 = vmatprep.mubr.bf16.mxu0 %v6832_v63  ;;  %4704 = vmatpush1.bf16.msra.mxu1 %v6219_v20  ;;  %v6043_v20 = vcombine.low %v1382_v62, %v1386_v1  ;;  %v6036_v22 = vcombine.high %v1374_v15, %v1378_v17  ;;  %v1606_v40 = vld [vmem:[#allocation7 + $0xf50] sm:$0xff] }
 0x261   :  { %4735 = vmatprep.mubr.bf16.mxu1 %v6836_v9  ;;  %4662 = vmatprep.subr.bf16.mxu0 %v6084_v21  ;;  %v6171_v21 = vcombine.low %v1510_v2, %v1514_v6  ;;  %v1470_v45 = vld [vmem:[#allocation7 + $0xb10] sm:$0xff] }
 0x262   :  { %4705 = vmatprep.subr.bf16.mxu1 %v6212_v48  ;;  %v1494_v48 = vld [vmem:[#allocation7 + $0xbd0] sm:$0xff] }
 0x263   :  { %4663 = vmatpush1.bf16.msra.mxu0 %v6083_v49  ;;  %v1626_v49 = vld [vmem:[#allocation7 + $0xff0] sm:$0xff] }
 0x264   :  { %4706 = vmatpush1.bf16.msra.mxu1 %v6211_v52  ;;  %4664 = vmatprep.subr.bf16.mxu0 %v6076_v55  ;;  %v6035_v52 = vcombine.low %v1374_v15, %v1378_v17  ;;  %v6163_v55 = vcombine.low %v1502_v18, %v1506_v19  ;;  %v6284_v31 = vcombine.high %v1622_v23, %v1626_v49  ;;  %v1474_v46 = vld [vmem:[#allocation7 + $0xb30] sm:$0xff] }
 0x265   :  { %4707 = vmatprep.subr.bf16.mxu1 %v6204_v30  ;;  %v6156_v30 = vcombine.high %v1494_v48, %v1498_v54  ;;  %v1598_v50 = vld [vmem:[#allocation7 + $0xf10] sm:$0xff] }
 0x266   :  { %v1462_v1 = vld [vmem:[#allocation7 + $0xad0] sm:$0xff] }
 0x267   :  { %4665 = vmatpush1.bf16.msra.mxu0 %v6075_v35  ;;  %v1618_v35 = vld [vmem:[#allocation7 + $0xfb0] sm:$0xff] }
 0x268   :  { %4708 = vmatpush1.bf16.msra.mxu1 %v6203_v28  ;;  %4666 = vmatprep.subr.bf16.mxu0 %v6068_v36  ;;  %v6155_v28 = vcombine.low %v1494_v48, %v1498_v54  ;;  %v6283_v36 = vcombine.low %v1622_v23, %v1626_v49  ;;  %v6276_v16 = vcombine.high %v1614_v34, %v1618_v35  ;;  %v1466_v2 = vld [vmem:[#allocation7 + $0xaf0] sm:$0xff] }
 0x269   :  { %4709 = vmatprep.subr.bf16.mxu1 %v6196_v37  ;;  %v6148_v37 = vcombine.high %v1486_v32, %v1490_v33  ;;  %v1590_v6 = vld [vmem:[#allocation7 + $0xed0] sm:$0xff] }
 0x26a   :  { %v1454_v17 = vld [vmem:[#allocation7 + $0xa90] sm:$0xff] }
 0x26b   :  { %4667 = vmatpush1.bf16.msra.mxu0 %v6067_v41  ;;  %v1610_v41 = vld [vmem:[#allocation7 + $0xf70] sm:$0xff] }
 0x26c   :  { %4710 = vmatpush1.bf16.msra.mxu1 %v6195_v42  ;;  %4668 = vmatprep.subr.bf16.mxu0 %v6060_v43  ;;  %v6147_v42 = vcombine.low %v1486_v32, %v1490_v33  ;;  %v6275_v43 = vcombine.low %v1614_v34, %v1618_v35  ;;  %v6268_v58 = vcombine.high %v1606_v40, %v1610_v41  ;;  %v1458_v18 = vld [vmem:[#allocation7 + $0xab0] sm:$0xff] }
 0x26d   :  { %4711 = vmatprep.subr.bf16.mxu1 %v6188_v44  ;;  %v6140_v44 = vcombine.high %v1478_v38, %v1482_v39  ;;  %v1582_v19 = vld [vmem:[#allocation7 + $0xe90] sm:$0xff] }
 0x26e   :  { %v1446_v54 = vld [vmem:[#allocation7 + $0xa50] sm:$0xff] }
 0x26f   :  { %4669 = vmatpush1.bf16.msra.mxu0 %v6059_v51  ;;  %v1602_v51 = vld [vmem:[#allocation7 + $0xf30] sm:$0xff] }
 0x270   :  { %4712 = vmatpush1.bf16.msra.mxu1 %v6187_v53  ;;  %4670 = vmatprep.subr.bf16.mxu0 %v6052_v57  ;;  %v6139_v53 = vcombine.low %v1478_v38, %v1482_v39  ;;  %v6267_v57 = vcombine.low %v1606_v40, %v1610_v41  ;;  %v6260_v62 = vcombine.high %v1598_v50, %v1602_v51  ;;  %v1450_v23 = vld [vmem:[#allocation7 + $0xa70] sm:$0xff]  ;;  %v1175_v39 = vld [vmem:[#allocation7 + $0x1d8] sm:$0xff] }
 0x271   :  { %4713 = vmatprep.subr.bf16.mxu1 %v6180_v59  ;;  %v6132_v59 = vcombine.high %v1470_v45, %v1474_v46  ;;  %v1574_v49 = vld [vmem:[#allocation7 + $0xe50] sm:$0xff]  ;;  %v1179_v40 = vld [vmem:[#allocation7 + $0x1f8] sm:$0xff] }
 0x272   :  { %v1438_v33 = vld [vmem:[#allocation7 + $0xa10] sm:$0xff]  ;;  %v1303_v41 = vld [vmem:[#allocation7 + $0x5d8] sm:$0xff] }
 0x273   :  { %4671 = vmatpush1.bf16.msra.mxu0 %v6051_v10  ;;  %v1594_v10 = vld [vmem:[#allocation7 + $0xef0] sm:$0xff] }
 0x274   :  { %4714 = vmatpush1.bf16.msra.mxu1 %v6179_v12  ;;  %4672 = vmatprep.subr.bf16.mxu0 %v6044_v13  ;;  %v6131_v12 = vcombine.low %v1470_v45, %v1474_v46  ;;  %v6259_v13 = vcombine.low %v1598_v50, %v1602_v51  ;;  %v6252_v15 = vcombine.high %v1590_v6, %v1594_v10  ;;  %v1442_v34 = vld [vmem:[#allocation7 + $0xa30] sm:$0xff]  ;;  %v1167_v46 = vld [vmem:[#allocation7 + $0x198] sm:$0xff] }
 0x275   :  { %4715 = vmatprep.subr.bf16.mxu1 %v6172_v14  ;;  %v6124_v14 = vcombine.high %v1462_v1, %v1466_v2  ;;  %v1566_v35 = vld [vmem:[#allocation7 + $0xe10] sm:$0xff]  ;;  %v1171_v50 = vld [vmem:[#allocation7 + $0x1b8] sm:$0xff]  ;;  %v5837_v51 = vcombine.low %v1175_v39, %v1179_v40 }
 0x277   :  { %4673 = vmatpush1.bf16.msra.mxu0 %v6043_v20  ;;  %v1586_v20 = vld [vmem:[#allocation7 + $0xeb0] sm:$0xff] }
 0x278   :  { %4716 = vmatpush1.bf16.msra.mxu1 %v6171_v21  ;;  %4674 = vmatprep.subr.bf16.mxu0 %v6036_v22  ;;  %v6123_v21 = vcombine.low %v1462_v1, %v1466_v2  ;;  %v6251_v22 = vcombine.low %v1590_v6, %v1594_v10  ;;  %v6244_v48 = vcombine.high %v1582_v19, %v1586_v20  ;;  %v1159_v1 = vld [vmem:[#allocation7 + $0x158] sm:$0xff] }
 0x279   :  { %4717 = vmatprep.subr.bf16.mxu1 %v6164_v47  ;;  %v6116_v47 = vcombine.high %v1454_v17, %v1458_v18  ;;  %v1163_v2 = vld [vmem:[#allocation7 + $0x178] sm:$0xff] }
 0x27a   :  { %v1287_v10 = vld [vmem:[#allocation7 + $0x558] sm:$0xff] }
 0x27b   :  { %4675 = vmatpush1.bf16.msra.mxu0 %v6035_v52  ;;  %v1578_v52 = vld [vmem:[#allocation7 + $0xe70] sm:$0xff] }
 0x27c   :  { %4718 = vmatpush1.bf16.msra.mxu1 %v6163_v55  ;;  %4676 = vmatprep.subr.bf16.mxu0 %v6156_v30  ;;  %v6115_v55 = vcombine.low %v1454_v17, %v1458_v18  ;;  %v6243_v30 = vcombine.low %v1582_v19, %v1586_v20  ;;  %v6236_v32 = vcombine.high %v1574_v49, %v1578_v52  ;;  %v1151_v18 = vld [vmem:[#allocation7 + $0x118] sm:$0xff] }
 0x27d   :  { %4719 = vmatprep.subr.bf16.mxu1 %v6284_v31  ;;  %v6108_v31 = vcombine.high %v1446_v54, %v1450_v23  ;;  %v1155_v19 = vld [vmem:[#allocation7 + $0x138] sm:$0xff] }
 0x27e   :  { %v1279_v20 = vld [vmem:[#allocation7 + $0x518] sm:$0xff] }
 0x27f   :  { %4677 = vmatpush2.bf16.msra.mxu0 %v6155_v28  ;;  %v1570_v28 = vld [vmem:[#allocation7 + $0xe30] sm:$0xff] }
 0x280   :  { %4720 = vmatpush2.bf16.msra.mxu1 %v6283_v36  ;;  %4678 = vmatprep.subr.bf16.mxu0 %v6148_v37  ;;  %v6107_v36 = vcombine.low %v1446_v54, %v1450_v23  ;;  %v6235_v37 = vcombine.low %v1574_v49, %v1578_v52  ;;  %v6228_v38 = vcombine.high %v1566_v35, %v1570_v28  ;;  %v1143_v54 = vld [vmem:[#allocation7 + $0xd8] sm:$0xff] }
 0x281   :  { %4721 = vmatprep.subr.bf16.mxu1 %v6276_v16  ;;  %v6100_v16 = vcombine.high %v1438_v33, %v1442_v34  ;;  %v1147_v23 = vld [vmem:[#allocation7 + $0xf8] sm:$0xff] }
 0x282   :  { %v1271_v49 = vld [vmem:[#allocation7 + $0x4d8] sm:$0xff] }
 0x283   :  { %4679 = vmatpush2.bf16.msra.mxu0 %v6147_v42  ;;  %v1307_v42 = vld [vmem:[#allocation7 + $0x5f8] sm:$0xff] }
 0x284   :  { %4722 = vmatpush2.bf16.msra.mxu1 %v6275_v43  ;;  %4680 = vmatprep.subr.bf16.mxu0 %v6140_v44  ;;  %v6099_v43 = vcombine.low %v1438_v33, %v1442_v34  ;;  %v6227_v44 = vcombine.low %v1566_v35, %v1570_v28  ;;  %v5966_v45 = vcombine.high %v1303_v41, %v1307_v42  ;;  %v1275_v52 = vld [vmem:[#allocation7 + $0x4f8] sm:$0xff] }
 0x285   :  { %4723 = vmatprep.subr.bf16.mxu1 %v6268_v58  ;;  %v5838_v58 = vcombine.high %v1175_v39, %v1179_v40  ;;  %v1139_v33 = vld [vmem:[#allocation7 + $0xb8] sm:$0xff]  ;;  %v5805_v28 = vcombine.low %v1143_v54, %v1147_v23 }
 0x286   :  { %v1263_v34 = vld [vmem:[#allocation7 + $0x498] sm:$0xff] }
 0x287   :  { %4681 = vmatpush2.bf16.msra.mxu0 %v6139_v53  ;;  %v1295_v53 = vld [vmem:[#allocation7 + $0x598] sm:$0xff] }
 0x288   :  { %4724 = vmatpush2.bf16.msra.mxu1 %v6267_v57  ;;  %4682 = vmatprep.subr.bf16.mxu0 %v6132_v59  ;;  %v1299_v57 = vld [vmem:[#allocation7 + $0x5b8] sm:$0xff]  ;;  %v5965_v59 = vcombine.low %v1303_v41, %v1307_v42 }
 0x289   :  { %4725 = vmatprep.subr.bf16.mxu1 %v6260_v62  ;;  %v5830_v62 = vcombine.high %v1167_v46, %v1171_v50  ;;  %v5958_v6 = vcombine.high %v1295_v53, %v1299_v57  ;;  %v1267_v35 = vld [vmem:[#allocation7 + $0x4b8] sm:$0xff] }
 0x28a   :  { %v1131_v39 = vld [vmem:[#allocation7 + $0x78] sm:$0xff] }
 0x28b   :  { %4683 = vmatpush2.bf16.msra.mxu0 %v6131_v12  ;;  %v1291_v12 = vld [vmem:[#allocation7 + $0x578] sm:$0xff] }
 0x28c   :  { %4726 = vmatpush2.bf16.msra.mxu1 %v6259_v13  ;;  %4684 = vmatprep.subr.bf16.mxu0 %v6124_v14  ;;  %v5829_v13 = vcombine.low %v1167_v46, %v1171_v50  ;;  %v5957_v14 = vcombine.low %v1295_v53, %v1299_v57  ;;  %v5950_v17 = vcombine.high %v1287_v10, %v1291_v12  ;;  %v1255_v40 = vld [vmem:[#allocation7 + $0x458] sm:$0xff] }
 0x28d   :  { %4727 = vmatprep.subr.bf16.mxu1 %v6252_v15  ;;  %v5822_v15 = vcombine.high %v1159_v1, %v1163_v2  ;;  %v1259_v41 = vld [vmem:[#allocation7 + $0x478] sm:$0xff] }
 0x28e   :  { %v1123_v46 = vld [vmem:[#allocation7 + $0x38] sm:$0xff]  ;;  %v5917_v57 = vcombine.low %v1255_v40, %v1259_v41 }
 0x28f   :  { %4685 = vmatpush2.bf16.msra.mxu0 %v6123_v21  ;;  %v1283_v21 = vld [vmem:[#allocation7 + $0x538] sm:$0xff] }
 0x290   :  { %4728 = vmatpush2.bf16.msra.mxu1 %v6251_v22  ;;  %4686 = vmatprep.subr.bf16.mxu0 %v6116_v47  ;;  %v5821_v22 = vcombine.low %v1159_v1, %v1163_v2  ;;  %v5949_v47 = vcombine.low %v1287_v10, %v1291_v12  ;;  %v1247_v50 = vld [vmem:[#allocation7 + $0x418] sm:$0xff] }
 0x291   :  { %4729 = vmatprep.subr.bf16.mxu1 %v6244_v48  ;;  %v5814_v48 = vcombine.high %v1151_v18, %v1155_v19  ;;  %v1239_v1 = vld [vmem:[#allocation7 + $0x3d8] sm:$0xff] }
 0x292   :  { %v1243_v2 = vld [vmem:[#allocation7 + $0x3f8] sm:$0xff] }
 0x293   :  { %4687 = vmatpush2.bf16.msra.mxu0 %v6115_v55  ;;  %v5941_v55 = vcombine.low %v1279_v20, %v1283_v21  ;;  %v1371_v10 = vld [vmem:[#allocation7 + $0x7f8] sm:$0xff] }
 0x294   :  { %4730 = vmatpush2.bf16.msra.mxu1 %v6243_v30  ;;  %4688 = vmatprep.subr.bf16.mxu0 %v6108_v31  ;;  %v5806_v30 = vcombine.high %v1143_v54, %v1147_v23  ;;  %v5934_v31 = vcombine.high %v1271_v49, %v1275_v52  ;;  %v1227_v54 = vld [vmem:[#allocation7 + $0x378] sm:$0xff] }
 0x295   :  { %4731 = vmatprep.subr.bf16.mxu1 %v6236_v32  ;;  %v1135_v32 = vld [vmem:[#allocation7 + $0x98] sm:$0xff] }
 0x296   :  { %v5797_v42 = vcombine.low %v1135_v32, %v1139_v33  ;;  %v1351_v23 = vld [vmem:[#allocation7 + $0x758] sm:$0xff] }
 0x297   :  { %4689 = vmatpush2.bf16.msra.mxu0 %v6107_v36  ;;  %v5933_v36 = vcombine.low %v1271_v49, %v1275_v52  ;;  %v1355_v49 = vld [vmem:[#allocation7 + $0x778] sm:$0xff] }
 0x298   :  { %4732 = vmatpush2.bf16.msra.mxu1 %v6235_v37  ;;  %4690 = vmatprep.subr.bf16.mxu0 %v6100_v16  ;;  %v5798_v37 = vcombine.high %v1135_v32, %v1139_v33  ;;  %v5926_v16 = vcombine.high %v1263_v34, %v1267_v35  ;;  %v1219_v32 = vld [vmem:[#allocation7 + $0x338] sm:$0xff] }
 0x299   :  { %4733 = vmatprep.subr.bf16.mxu1 %v6228_v38  ;;  %v1127_v38 = vld [vmem:[#allocation7 + $0x58] sm:$0xff] }
 0x29a   :  { %v5789_v53 = vcombine.low %v1127_v38, %v1131_v39  ;;  %v1343_v33 = vld [vmem:[#allocation7 + $0x718] sm:$0xff] }
 0x29b   :  { %4691 = vmatpush2.bf16.msra.mxu0 %v6099_v43  ;;  %v5925_v43 = vcombine.low %v1263_v34, %v1267_v35  ;;  %v1347_v34 = vld [vmem:[#allocation7 + $0x738] sm:$0xff] }
 0x29c   :  { %4734 = vmatpush2.bf16.msra.mxu1 %v6227_v44  ;;  %4746 = vmatprep.subr.bf16.mxu0 %v5838_v58  ;;  %v5790_v44 = vcombine.high %v1127_v38, %v1131_v39  ;;  %v5918_v58 = vcombine.high %v1255_v40, %v1259_v41  ;;  %v1211_v38 = vld [vmem:[#allocation7 + $0x2f8] sm:$0xff] }
 0x29d   :  { %4789 = vmatprep.subr.bf16.mxu1 %v5966_v45  ;;  %v1119_v45 = vld [vmem:[#allocation7 + $0x18] sm:$0xff] }
 0x29e   :  { %4693 = vmatmul.mubr.bf16.vlgmr.msra.gmra.mxu0 %v6834_v8  ;;  %v5781_v12 = vcombine.low %v1119_v45, %v1123_v46  ;;  %v1335_v39 = vld [vmem:[#allocation7 + $0x6d8] sm:$0xff] }
 0x29f   :  { %4736 = vmatmul.mubr.bf16.vlgmr.msra.gmra.mxu1 %v6838_v11  ;;  %4747 = vmatpush1.bf16.msra.mxu0 %v5837_v51  ;;  %v1251_v51 = vld [vmem:[#allocation7 + $0x438] sm:$0xff] }
 0x2a0   :  { %4778 = vmatprep.mubr.bf16.mxu0 %v6798_v3  ;;  %4790 = vmatpush1.bf16.msra.mxu1 %v5965_v59  ;;  %v5942_v3 = vcombine.high %v1279_v20, %v1283_v21  ;;  %v5782_v59 = vcombine.high %v1119_v45, %v1123_v46  ;;  %v1363_v20 = vld [vmem:[#allocation7 + $0x7b8] sm:$0xff]  ;;  %v5901_v21 = vcombine.low %v1239_v1, %v1243_v2 }
 0x2a1   :  { %4821 = vmatprep.mubr.bf16.mxu1 %v6802_v5  ;;  %4748 = vmatprep.subr.bf16.mxu0 %v5830_v62  ;;  %v5813_v5 = vcombine.low %v1151_v18, %v1155_v19  ;;  %v5910_v62 = vcombine.high %v1247_v50, %v1251_v51  ;;  %v1235_v18 = vld [vmem:[#allocation7 + $0x3b8] sm:$0xff] }
 0x2a2   :  { %4791 = vmatprep.subr.bf16.mxu1 %v5958_v6  ;;  %v1367_v6 = vld [vmem:[#allocation7 + $0x7d8] sm:$0xff] }
 0x2a3   :  { %4749 = vmatpush1.bf16.msra.mxu0 %v5829_v13  ;;  %v5909_v13 = vcombine.low %v1247_v50, %v1251_v51  ;;  %v1359_v19 = vld [vmem:[#allocation7 + $0x798] sm:$0xff] }
 0x2a4   :  { %4792 = vmatpush1.bf16.msra.mxu1 %v5957_v14  ;;  %4750 = vmatprep.subr.bf16.mxu0 %v5822_v15  ;;  %v5902_v14 = vcombine.high %v1239_v1, %v1243_v2  ;;  %v6030_v15 = vcombine.high %v1367_v6, %v1371_v10  ;;  %v1339_v40 = vld [vmem:[#allocation7 + $0x6f8] sm:$0xff] }
 0x2a5   :  { %4793 = vmatprep.subr.bf16.mxu1 %v5950_v17  ;;  %v1231_v17 = vld [vmem:[#allocation7 + $0x398] sm:$0xff] }
 0x2a6   :  { %v5893_v52 = vcombine.low %v1231_v17, %v1235_v18  ;;  %v1203_v45 = vld [vmem:[#allocation7 + $0x2b8] sm:$0xff] }
 0x2a7   :  { %4751 = vmatpush1.bf16.msra.mxu0 %v5821_v22  ;;  %v6029_v22 = vcombine.low %v1367_v6, %v1371_v10  ;;  %v1327_v46 = vld [vmem:[#allocation7 + $0x698] sm:$0xff] }
 0x2a8   :  { %4794 = vmatpush1.bf16.msra.mxu1 %v5949_v47  ;;  %4752 = vmatprep.subr.bf16.mxu0 %v5814_v48  ;;  %v5894_v47 = vcombine.high %v1231_v17, %v1235_v18  ;;  %v6022_v48 = vcombine.high %v1359_v19, %v1363_v20  ;;  %v1331_v50 = vld [vmem:[#allocation7 + $0x6b8] sm:$0xff] }
 0x2a9   :  { %4795 = vmatprep.subr.bf16.mxu1 %v5942_v3  ;;  %v1223_v3 = vld [vmem:[#allocation7 + $0x358] sm:$0xff] }
 0x2aa   :  { %v5885_v35 = vcombine.low %v1223_v3, %v1227_v54  ;;  %v1195_v1 = vld [vmem:[#allocation7 + $0x278] sm:$0xff] }
 0x2ab   :  { %4753 = vmatpush1.bf16.msra.mxu0 %v5813_v5  ;;  %v6021_v5 = vcombine.low %v1359_v19, %v1363_v20  ;;  %v1319_v2 = vld [vmem:[#allocation7 + $0x658] sm:$0xff] }
 0x2ac   :  { %4796 = vmatpush1.bf16.msra.mxu1 %v5941_v55  ;;  %4754 = vmatprep.subr.bf16.mxu0 %v5806_v30  ;;  %v5886_v55 = vcombine.high %v1223_v3, %v1227_v54  ;;  %v6014_v30 = vcombine.high %v1351_v23, %v1355_v49  ;;  %v1323_v6 = vld [vmem:[#allocation7 + $0x678] sm:$0xff] }
 0x2ad   :  { %4797 = vmatprep.subr.bf16.mxu1 %v5934_v31  ;;  %v1215_v31 = vld [vmem:[#allocation7 + $0x318] sm:$0xff] }
 0x2ae   :  { %v5877_v41 = vcombine.low %v1215_v31, %v1219_v32  ;;  %v1187_v17 = vld [vmem:[#allocation7 + $0x238] sm:$0xff] }
 0x2af   :  { %4755 = vmatpush1.bf16.msra.mxu0 %v5805_v28  ;;  %v6013_v28 = vcombine.low %v1351_v23, %v1355_v49  ;;  %v1311_v18 = vld [vmem:[#allocation7 + $0x618] sm:$0xff] }
 0x2b0   :  { %4798 = vmatpush1.bf16.msra.mxu1 %v5933_v36  ;;  %4756 = vmatprep.subr.bf16.mxu0 %v5798_v37  ;;  %v5878_v36 = vcombine.high %v1215_v31, %v1219_v32  ;;  %v6006_v37 = vcombine.high %v1343_v33, %v1347_v34  ;;  %v1315_v19 = vld [vmem:[#allocation7 + $0x638] sm:$0xff] }
 0x2b1   :  { %4799 = vmatprep.subr.bf16.mxu1 %v5926_v16  ;;  %v1207_v16 = vld [vmem:[#allocation7 + $0x2d8] sm:$0xff] }
 0x2b2   :  { %v5869_v51 = vcombine.low %v1207_v16, %v1211_v38  ;;  %v1435_v3 = vld [vmem:[#allocation7 + $0x9f8] sm:$0xff] }
 0x2b3   :  { %4757 = vmatpush1.bf16.msra.mxu0 %v5797_v42  ;;  %v6005_v42 = vcombine.low %v1343_v33, %v1347_v34  ;;  %v1559_v54 = vld [vmem:[#allocation7 + $0xdd8] sm:$0xff] }
 0x2b4   :  { %4800 = vmatpush1.bf16.msra.mxu1 %v5925_v43  ;;  %4758 = vmatprep.subr.bf16.mxu0 %v5790_v44  ;;  %v5870_v43 = vcombine.high %v1207_v16, %v1211_v38  ;;  %v5998_v44 = vcombine.high %v1335_v39, %v1339_v40  ;;  %v1563_v23 = vld [vmem:[#allocation7 + $0xdf8] sm:$0xff] }
 0x2b5   :  { %4801 = vmatprep.subr.bf16.mxu1 %v5918_v58  ;;  %v1199_v58 = vld [vmem:[#allocation7 + $0x298] sm:$0xff] }
 0x2b6   :  { %v5861_v10 = vcombine.low %v1199_v58, %v1203_v45  ;;  %v1423_v31 = vld [vmem:[#allocation7 + $0x998] sm:$0xff] }
 0x2b7   :  { %4759 = vmatpush1.bf16.msra.mxu0 %v5789_v53  ;;  %v5997_v53 = vcombine.low %v1335_v39, %v1339_v40  ;;  %v1427_v32 = vld [vmem:[#allocation7 + $0x9b8] sm:$0xff] }
 0x2b8   :  { %4802 = vmatpush1.bf16.msra.mxu1 %v5917_v57  ;;  %4760 = vmatprep.subr.bf16.mxu0 %v5782_v59  ;;  %v5862_v57 = vcombine.high %v1199_v58, %v1203_v45  ;;  %v5990_v59 = vcombine.high %v1327_v46, %v1331_v50  ;;  %v1551_v34 = vld [vmem:[#allocation7 + $0xd98] sm:$0xff] }
 0x2b9   :  { %4803 = vmatprep.subr.bf16.mxu1 %v5910_v62  ;;  %v1191_v62 = vld [vmem:[#allocation7 + $0x258] sm:$0xff] }
 0x2ba   :  { %v5853_v20 = vcombine.low %v1191_v62, %v1195_v1  ;;  %v1419_v16 = vld [vmem:[#allocation7 + $0x978] sm:$0xff] }
 0x2bb   :  { %4761 = vmatpush1.bf16.msra.mxu0 %v5781_v12  ;;  %v5989_v12 = vcombine.low %v1327_v46, %v1331_v50  ;;  %v1543_v40 = vld [vmem:[#allocation7 + $0xd58] sm:$0xff] }
 0x2bc   :  { %4804 = vmatpush1.bf16.msra.mxu1 %v5909_v13  ;;  %4762 = vmatprep.subr.bf16.mxu0 %v5902_v14  ;;  %v5854_v13 = vcombine.high %v1191_v62, %v1195_v1  ;;  %v5982_v14 = vcombine.high %v1319_v2, %v1323_v6  ;;  %v1407_v46 = vld [vmem:[#allocation7 + $0x918] sm:$0xff] }
 0x2bd   :  { %4805 = vmatprep.subr.bf16.mxu1 %v6030_v15  ;;  %v1183_v15 = vld [vmem:[#allocation7 + $0x218] sm:$0xff] }
 0x2be   :  { %v5845_v49 = vcombine.low %v1183_v15, %v1187_v17  ;;  %v1403_v1 = vld [vmem:[#allocation7 + $0x8f8] sm:$0xff] }
 0x2bf   :  { %4763 = vmatpush2.bf16.msra.mxu0 %v5901_v21  ;;  %v5981_v21 = vcombine.low %v1319_v2, %v1323_v6  ;;  %v1527_v6 = vld [vmem:[#allocation7 + $0xcd8] sm:$0xff] }
 0x2c0   :  { %4806 = vmatpush2.bf16.msra.mxu1 %v6029_v22  ;;  %4764 = vmatprep.subr.bf16.mxu0 %v5894_v47  ;;  %v5846_v22 = vcombine.high %v1183_v15, %v1187_v17  ;;  %v5974_v47 = vcombine.high %v1311_v18, %v1315_v19 }
 0x2c1   :  { %4807 = vmatprep.subr.bf16.mxu1 %v6022_v48  ;;  %v1431_v48 = vld [vmem:[#allocation7 + $0x9d8] sm:$0xff] }
 0x2c2   :  { %v6093_v33 = vcombine.low %v1431_v48, %v1435_v3 }
 0x2c3   :  { %4765 = vmatpush2.bf16.msra.mxu0 %v5893_v52  ;;  %v5973_v52 = vcombine.low %v1311_v18, %v1315_v19  ;;  %v1391_v19 = vld [vmem:[#allocation7 + $0x898] sm:$0xff] }
 0x2c4   :  { %4808 = vmatpush2.bf16.msra.mxu1 %v6021_v5  ;;  %4766 = vmatprep.subr.bf16.mxu0 %v5886_v55  ;;  %v6094_v5 = vcombine.high %v1431_v48, %v1435_v3  ;;  %v6222_v55 = vcombine.high %v1559_v54, %v1563_v23 }
 0x2c5   :  { %4809 = vmatprep.subr.bf16.mxu1 %v6014_v30  ;;  %v6862_v30 = vpop.f32.mrf.mxu0 }
 0x2c7   :  { %4767 = vmatpush2.bf16.msra.mxu0 %v5885_v35  ;;  %v1555_v35 = vld [vmem:[#allocation7 + $0xdb8] sm:$0xff]  ;;  %v6864_v38 = vpop.f32.mrf.mxu0 }
 0x2c8   :  { %4810 = vmatpush2.bf16.msra.mxu1 %v6013_v28  ;;  %4768 = vmatprep.subr.bf16.mxu0 %v5878_v36  ;;  %v6221_v28 = vcombine.low %v1559_v54, %v1563_v23  ;;  %v6086_v36 = vcombine.high %v1423_v31, %v1427_v32  ;;  %v6214_v39 = vcombine.high %v1551_v34, %v1555_v35 }
 0x2c9   :  { %4811 = vmatprep.subr.bf16.mxu1 %v6006_v37  ;;  %v1415_v37 = vld [vmem:[#allocation7 + $0x958] sm:$0xff]  ;;  %v6872_v50 = vpop.f32.mrf.mxu0 }
 0x2ca   :  { %v6078_v58 = vcombine.high %v1415_v37, %v1419_v16 }
 0x2cb   :  { %4769 = vmatpush2.bf16.msra.mxu0 %v5877_v41  ;;  %v1547_v41 = vld [vmem:[#allocation7 + $0xd78] sm:$0xff]  ;;  %v6876_v2 = vpop.f32.mrf.mxu0 }
 0x2cc   :  { %4812 = vmatpush2.bf16.msra.mxu1 %v6005_v42  ;;  %4770 = vmatprep.subr.bf16.mxu0 %v5870_v43  ;;  %v6085_v42 = vcombine.low %v1423_v31, %v1427_v32  ;;  %v6868_v43 = vpop.f32.mrf.mxu1  ;;  %v6206_v45 = vcombine.high %v1543_v40, %v1547_v41  ;;  %v1511_v31 = vld [vmem:[#allocation7 + $0xc58] sm:$0xff] }
 0x2cd   :  { %4813 = vmatprep.subr.bf16.mxu1 %v5998_v44  ;;  %v6213_v44 = vcombine.low %v1551_v34, %v1555_v35  ;;  %v1515_v32 = vld [vmem:[#allocation7 + $0xc78] sm:$0xff] }
 0x2cf   :  { %4771 = vmatpush2.bf16.msra.mxu0 %v5869_v51  ;;  %v1535_v51 = vld [vmem:[#allocation7 + $0xd18] sm:$0xff] }
 0x2d0   :  { %4814 = vmatpush2.bf16.msra.mxu1 %v5997_v53  ;;  %4772 = vmatprep.subr.bf16.mxu0 %v5862_v57  ;;  %v6077_v53 = vcombine.low %v1415_v37, %v1419_v16  ;;  %v6874_v57 = vpop.f32.mrf.mxu1  ;;  %v1375_v37 = vld [vmem:[#allocation7 + $0x818] sm:$0xff] }
 0x2d1   :  { %4815 = vmatprep.subr.bf16.mxu1 %v5990_v59  ;;  %v1379_v16 = vld [vmem:[#allocation7 + $0x838] sm:$0xff] }
 0x2d3   :  { %4773 = vmatpush2.bf16.msra.mxu0 %v5861_v10  ;;  %v1531_v10 = vld [vmem:[#allocation7 + $0xcf8] sm:$0xff] }
 0x2d4   :  { %4816 = vmatpush2.bf16.msra.mxu1 %v5989_v12  ;;  %4774 = vmatprep.subr.bf16.mxu0 %v5854_v13  ;;  %v6878_v13 = vpop.f32.mrf.mxu1  ;;  %v6190_v18 = vcombine.high %v1527_v6, %v1531_v10  ;;  %v6189_v54 = vcombine.low %v1527_v6, %v1531_v10  ;;  %v1487_v10 = vld [vmem:[#allocation7 + $0xb98] sm:$0xff] }
 0x2d5   :  { %4817 = vmatprep.subr.bf16.mxu1 %v5982_v14  ;;  %v6880_v14 = vpop.f32.mrf.mxu0 }
 0x2d6   :  { %v6882_v48 = vpop.f32.mrf.mxu1 }
 0x2d7   :  { %4775 = vmatpush2.bf16.msra.mxu0 %v5853_v20  ;;  %v1395_v20 = vld [vmem:[#allocation7 + $0x8b8] sm:$0xff]  ;;  %v6884_v3 = vpop.f32.mrf.mxu0 }
 0x2d8   :  { %4818 = vmatpush2.bf16.msra.mxu1 %v5981_v21  ;;  %4776 = vmatprep.subr.bf16.mxu0 %v5846_v22  ;;  %v1519_v21 = vld [vmem:[#allocation7 + $0xc98] sm:$0xff]  ;;  %v6054_v23 = vcombine.high %v1391_v19, %v1395_v20 }
 0x2d9   :  { %4819 = vmatprep.subr.bf16.mxu1 %v5974_v47  ;;  %v1523_v22 = vld [vmem:[#allocation7 + $0xcb8] sm:$0xff]  ;;  %v6888_v34 = vpop.f32.mrf.mxu0 }
 0x2da   :  { %v6181_v35 = vcombine.low %v1519_v21, %v1523_v22 }
 0x2db   :  { %4777 = vmatpush2.bf16.msra.mxu0 %v5845_v49  ;;  %v6182_v49 = vcombine.high %v1519_v21, %v1523_v22 }
 0x2dc   :  { %4820 = vmatpush2.bf16.msra.mxu1 %v5973_v52  ;;  %4832 = vmatprep.subr.bf16.mxu0 %v6094_v5  ;;  %v1383_v52 = vld [vmem:[#allocation7 + $0x858] sm:$0xff] }
 0x2dd   :  { %4875 = vmatprep.subr.bf16.mxu1 %v6222_v55  ;;  %v1387_v5 = vld [vmem:[#allocation7 + $0x878] sm:$0xff]  ;;  %v6886_v55 = vpop.f32.mrf.mxu1 }
 0x2de   :  { %4779 = vmatmul.mubr.bf16.vlgmr.msra.gmra.mxu0 %v6800_v4  ;;  %v1411_v4 = vld [vmem:[#allocation7 + $0x938] sm:$0xff] }
 0x2df   :  { %4822 = vmatmul.mubr.bf16.vlgmr.msra.gmra.mxu1 %v6804_v7  ;;  %4833 = vmatpush1.bf16.msra.mxu0 %v6093_v33  ;;  %v1539_v7 = vld [vmem:[#allocation7 + $0xd38] sm:$0xff]  ;;  %v6070_v59 = vcombine.high %v1407_v46, %v1411_v4  ;;  %v6069_v12 = vcombine.low %v1407_v46, %v1411_v4  ;;  %v6053_v33 = vcombine.low %v1391_v19, %v1395_v20 }
 0x2e0   :  { %4864 = vmatprep.mubr.bf16.mxu0 %v6832_v63  ;;  %4876 = vmatpush1.bf16.msra.mxu1 %v6221_v28  ;;  %v6205_v63 = vcombine.low %v1543_v40, %v1547_v41  ;;  %v6198_v62 = vcombine.high %v1535_v51, %v1539_v7  ;;  %v6197_v15 = vcombine.low %v1535_v51, %v1539_v7  ;;  %v1503_v40 = vld [vmem:[#allocation7 + $0xc18] sm:$0xff] }
 0x2e1   :  { %4907 = vmatprep.mubr.bf16.mxu1 %v6836_v9  ;;  %4834 = vmatprep.subr.bf16.mxu0 %v6086_v36  ;;  %v1399_v9 = vld [vmem:[#allocation7 + $0x8d8] sm:$0xff]  ;;  %v6046_v28 = vcombine.high %v1383_v52, %v1387_v5  ;;  %v6174_v36 = vcombine.high %v1511_v31, %v1515_v32 }
 0x2e2   :  { %4877 = vmatprep.subr.bf16.mxu1 %v6214_v39  ;;  %v6062_v17 = vcombine.high %v1399_v9, %v1403_v1  ;;  %v6061_v47 = vcombine.low %v1399_v9, %v1403_v1  ;;  %v6890_v39 = vpop.f32.mrf.mxu1  ;;  %v1507_v41 = vld [vmem:[#allocation7 + $0xc38] sm:$0xff] }
 0x2e3   :  { %4835 = vmatpush1.bf16.msra.mxu0 %v6085_v42  ;;  %v6045_v42 = vcombine.low %v1383_v52, %v1387_v5  ;;  %v6166_v46 = vcombine.high %v1503_v40, %v1507_v41  ;;  %v1495_v4 = vld [vmem:[#allocation7 + $0xbd8] sm:$0xff]  ;;  %v6165_v9 = vcombine.low %v1503_v40, %v1507_v41 }
 0x2e4   :  { %4878 = vmatpush1.bf16.msra.mxu1 %v6213_v44  ;;  %4836 = vmatprep.subr.bf16.mxu0 %v6078_v58  ;;  %v6892_v44 = vpop.f32.mrf.mxu0  ;;  %v6173_v58 = vcombine.low %v1511_v31, %v1515_v32  ;;  %v1499_v51 = vld [vmem:[#allocation7 + $0xbf8] sm:$0xff]  ;;  %v6894_v7 = vpop.f32.mrf.mxu1 }
 0x2e5   :  { %4879 = vmatprep.subr.bf16.mxu1 %v6206_v45  ;;  %v6038_v45 = vcombine.high %v1375_v37, %v1379_v16  ;;  %v6158_v1 = vcombine.high %v1495_v4, %v1499_v51  ;;  %v1619_v19 = vld [vmem:[#allocation7 + $0xfb8] sm:$0xff]  ;;  %v6157_v20 = vcombine.low %v1495_v4, %v1499_v51 }
 0x2e6   :  { %v1607_v5 = vld [vmem:[#allocation7 + $0xf58] sm:$0xff] }
 0x2e7   :  { %4837 = vmatpush1.bf16.msra.mxu0 %v6077_v53  ;;  %v6896_v53 = vpop.f32.mrf.mxu0  ;;  %v1611_v31 = vld [vmem:[#allocation7 + $0xf78] sm:$0xff] }
 0x2e8   :  { %4880 = vmatpush1.bf16.msra.mxu1 %v6205_v63  ;;  %4838 = vmatprep.subr.bf16.mxu0 %v6070_v59  ;;  %v1623_v63 = vld [vmem:[#allocation7 + $0xfd8] sm:$0xff]  ;;  %v6269_v4 = vcombine.low %v1607_v5, %v1611_v31 }
 0x2e9   :  { %4881 = vmatprep.subr.bf16.mxu1 %v6198_v62  ;;  %v1627_v59 = vld [vmem:[#allocation7 + $0xff8] sm:$0xff]  ;;  %v6037_v62 = vcombine.low %v1375_v37, %v1379_v16 }
 0x2ea   :  { %v6286_v6 = vcombine.high %v1623_v63, %v1627_v59  ;;  %v6285_v22 = vcombine.low %v1623_v63, %v1627_v59  ;;  %v1471_v37 = vld [vmem:[#allocation7 + $0xb18] sm:$0xff] }
 0x2eb   :  { %4839 = vmatpush1.bf16.msra.mxu0 %v6069_v12  ;;  %v1491_v12 = vld [vmem:[#allocation7 + $0xbb8] sm:$0xff] }
 0x2ec   :  { %4882 = vmatpush1.bf16.msra.mxu1 %v6197_v15  ;;  %4840 = vmatprep.subr.bf16.mxu0 %v6062_v17  ;;  %v6898_v15 = vpop.f32.mrf.mxu1  ;;  %v6900_v17 = vpop.f32.mrf.mxu0  ;;  %v6149_v32 = vcombine.low %v1487_v10, %v1491_v12  ;;  %v1475_v16 = vld [vmem:[#allocation7 + $0xb38] sm:$0xff] }
 0x2ed   :  { %4883 = vmatprep.subr.bf16.mxu1 %v6190_v18  ;;  %v1615_v18 = vld [vmem:[#allocation7 + $0xf98] sm:$0xff]  ;;  %v6134_v51 = vcombine.high %v1471_v37, %v1475_v16 }
 0x2ee   :  { %v6902_v21 = vpop.f32.mrf.mxu1  ;;  %v6904_v52 = vpop.f32.mrf.mxu0  ;;  %v1599_v41 = vld [vmem:[#allocation7 + $0xf18] sm:$0xff] }
 0x2ef   :  { %4841 = vmatpush1.bf16.msra.mxu0 %v6061_v47  ;;  %v6150_v47 = vcombine.high %v1487_v10, %v1491_v12  ;;  %v1463_v59 = vld [vmem:[#allocation7 + $0xad8] sm:$0xff] }
 0x2f0   :  { %4884 = vmatpush1.bf16.msra.mxu1 %v6189_v54  ;;  %4842 = vmatprep.subr.bf16.mxu0 %v6054_v23  ;;  %v6278_v54 = vcombine.high %v1615_v18, %v1619_v19  ;;  %v1479_v23 = vld [vmem:[#allocation7 + $0xb58] sm:$0xff]  ;;  %v4442_v40 = vpop.f32.mrf.mxu0 }
 0x2f1   :  { %4885 = vmatprep.subr.bf16.mxu1 %v6182_v49  ;;  %v1483_v49 = vld [vmem:[#allocation7 + $0xb78] sm:$0xff] }
 0x2f3   :  { %4843 = vmatpush1.bf16.msra.mxu0 %v6053_v33  ;;  %v6906_v33 = vpop.f32.mrf.mxu1 }
 0x2f4   :  { %4886 = vmatpush1.bf16.msra.mxu1 %v6181_v35  ;;  %4844 = vmatprep.subr.bf16.mxu0 %v6046_v28  ;;  %v6277_v35 = vcombine.low %v1615_v18, %v1619_v19  ;;  %v6142_v28 = vcombine.high %v1479_v23, %v1483_v49 }
 0x2f5   :  { %4887 = vmatprep.subr.bf16.mxu1 %v6174_v36  ;;  %v6270_v36 = vcombine.high %v1607_v5, %v1611_v31  ;;  %v1583_v5 = vld [vmem:[#allocation7 + $0xe98] sm:$0xff] }
 0x2f6   :  { %v1587_v31 = vld [vmem:[#allocation7 + $0xeb8] sm:$0xff] }
 0x2f7   :  { %4845 = vmatpush1.bf16.msra.mxu0 %v6045_v42  ;;  %v1603_v42 = vld [vmem:[#allocation7 + $0xf38] sm:$0xff] }
 0x2f8   :  { %4888 = vmatpush1.bf16.msra.mxu1 %v6173_v58  ;;  %4846 = vmatprep.subr.bf16.mxu0 %v6038_v45  ;;  %v6141_v58 = vcombine.low %v1479_v23, %v1483_v49  ;;  %v6908_v45 = vpop.f32.mrf.mxu1  ;;  %v6262_v63 = vcombine.high %v1599_v41, %v1603_v42  ;;  %v6261_v18 = vcombine.low %v1599_v41, %v1603_v42  ;;  %v1447_v42 = vld [vmem:[#allocation7 + $0xa58] sm:$0xff] }
 0x2f9   :  { %4889 = vmatprep.subr.bf16.mxu1 %v6166_v46  ;;  %v6910_v46 = vpop.f32.mrf.mxu0 }
 0x2fa   :  { %v4485_v10 = vpop.f32.mrf.mxu1 }
 0x2fb   :  { %4847 = vmatpush1.bf16.msra.mxu0 %v6037_v62  ;;  %v1467_v62 = vld [vmem:[#allocation7 + $0xaf8] sm:$0xff]  ;;  %v4524_v12 = vpop.f32.mrf.mxu0 }
 0x2fc   :  { %4890 = vmatpush1.bf16.msra.mxu1 %v6165_v9  ;;  %4848 = vmatprep.subr.bf16.mxu0 %v6158_v1  ;;  %v1591_v9 = vld [vmem:[#allocation7 + $0xed8] sm:$0xff]  ;;  %v6126_v19 = vcombine.high %v1463_v59, %v1467_v62  ;;  %v6917_v49 = vpop.f32.mrf.mxu1 }
 0x2fd   :  { %4891 = vmatprep.subr.bf16.mxu1 %v6286_v6  ;;  %v1595_v1 = vld [vmem:[#allocation7 + $0xef8] sm:$0xff]  ;;  %v6133_v6 = vcombine.low %v1471_v37, %v1475_v16 }
 0x2fe   :  { %v6253_v37 = vcombine.low %v1591_v9, %v1595_v1 }
 0x2ff   :  { %4849 = vmatpush2.bf16.msra.mxu0 %v6157_v20  ;;  %v6912_v20 = vld [vmem:[#allocation8] sm:$0xff] }
 0x300   :  { %4892 = vmatpush2.bf16.msra.mxu1 %v6285_v22  ;;  %4850 = vmatprep.subr.bf16.mxu0 %v6150_v47  ;;  %v6254_v22 = vcombine.high %v1591_v9, %v1595_v1  ;;  %v1455_v47 = vld [vmem:[#allocation7 + $0xa98] sm:$0xff]  ;;  %v1637_v23 = vrot.slane %v6912_v20, %v246_v25  ;;  %v6246_v25 = vcombine.high %v1583_v5, %v1587_v31 }
 0x301   :  { %4893 = vmatprep.subr.bf16.mxu1 %v6278_v54  ;;  %v1459_v54 = vld [vmem:[#allocation7 + $0xab8] sm:$0xff]  ;;  %v6245_v9 = vcombine.low %v1583_v5, %v1587_v31 }
 0x302   :  { %v6118_v16 = vcombine.high %v1455_v47, %v1459_v54 }
 0x303   :  { %4851 = vmatpush2.bf16.msra.mxu0 %v6149_v32  ;;  %v1645_v32 = vrot.slane %v6912_v20, %v254_v27  ;;  %v1579_v27 = vld [vmem:[#allocation7 + $0xe78] sm:$0xff] }
 0x304   :  { %4894 = vmatpush2.bf16.msra.mxu1 %v6277_v35  ;;  %4852 = vmatprep.subr.bf16.mxu0 %v6142_v28  ;;  %v6125_v35 = vcombine.low %v1463_v59, %v1467_v62  ;;  %v4271_v28 = vadd.f32 %v6876_v2, %v1637_v23  ;;  %v6117_v2 = vcombine.low %v1455_v47, %v1459_v54  ;;  %v1571_v47 = vld [vmem:[#allocation7 + $0xe38] sm:$0xff] }
 0x305   :  { %4895 = vmatprep.subr.bf16.mxu1 %v6270_v36  ;;  %v6923_v36 = vpop.f32.mrf.mxu0  ;;  %v4443_v41 = vadd.f32 %v4442_v40, %v1645_v32  ;;  %v4439_v59 = vadd.f32 %v6900_v17, %v1645_v32  ;;  %v1567_v17 = vld [vmem:[#allocation7 + $0xe18] sm:$0xff] }
 0x306   :  { %v4314_v62 = vadd.f32 %v6882_v48, %v4271_v28 }
 0x307   :  { %4853 = vmatpush2.bf16.msra.mxu0 %v6141_v58  ;;  %v1451_v58 = vld [vmem:[#allocation7 + $0xa78] sm:$0xff]  ;;  %v4486_v1 = vadd.f32 %v4485_v10, %v4443_v41  ;;  %v4482_v48 = vadd.f32 %v6906_v33, %v4439_v59  ;;  %v6229_v41 = vcombine.low %v1567_v17, %v1571_v47 }
 0x308   :  { %4896 = vmatpush2.bf16.msra.mxu1 %v6269_v4  ;;  %4854 = vmatprep.subr.bf16.mxu0 %v6134_v51  ;;  %v4267_v4 = vadd.f32 %v6864_v38, %v1637_v23  ;;  %v4567_v51 = vpop.f32.mrf.mxu1  ;;  %v6110_v40 = vcombine.high %v1447_v42, %v1451_v58  ;;  %v4357_v23 = vadd.f32 %v6892_v44, %v4314_v62  ;;  %v6457_v59 = vld [vmem:[#allocation10 + $0x70] sm:$0xff]  }
 0x309   :  { %4897 = vmatprep.subr.bf16.mxu1 %v6262_v63  ;;  %v1575_v63 = vld [vmem:[#allocation7 + $0xe58] sm:$0xff]  ;;  %v6109_v32 = vcombine.low %v1447_v42, %v1451_v58  ;;  %v6454_v42 = vld [vmem:[#allocation10 + $0xf8] sm:$0xff]  }
 0x30a   :  { %v4310_v38 = vadd.f32 %v6874_v57, %v4267_v4  ;;  %v6930_v0 = vpop.f32.mrf.mxu1  ;;  %v6237_v10 = vcombine.low %v1575_v63, %v1579_v27  ;;  %v6230_v57 = vcombine.high %v1567_v17, %v1571_v47  ;;  %v4400_v44 = vadd.f32 %v6898_v15, %v4357_v23  ;;  %v6456_v15 = vld [vmem:[#allocation10 + $0xb8] sm:$0xff]  }
 0x30b   :  { %4855 = vmatpush2.bf16.msra.mxu0 %v6133_v6  ;;  %v4528_v6 = vpop.f32.mrf.mxu0  ;;  %v6469_v23 = vld [vmem:[#allocation10 + $0x58] sm:$0xff]   ;;  %v1641_v17 = vrot.slane %v6912_v20, %v250_v29 }
 0x30c   :  { %4898 = vmatpush2.bf16.msra.mxu1 %v6261_v18  ;;  %4856 = vmatprep.subr.bf16.mxu0 %v6126_v19  ;;  %v6238_v18 = vcombine.high %v1575_v63, %v1579_v27  ;;  %v1439_v19 = vld [vmem:[#allocation7 + $0xa18] sm:$0xff]  ;;  %v4529_v54 = vadd.f32 %v4528_v6, %v4486_v1  ;;  %v4353_v5 = vadd.f32 %v6884_v3, %v4310_v38  ;;  %v4571_v28 = vpop.f32.mrf.mxu1  ;;  %v4927_v58 = vmax.f32 %v4400_v44, 0.0  ;;  %v6463_v1 = vld [vmem:[#allocation10 + $0x28] sm:$0xff]   ;;  %v6468_v38 = vld [vmem:[#allocation10 + $0xa0] sm:$0xff]  }
 0x30d   :  { %4899 = vmatprep.subr.bf16.mxu1 %v6254_v22  ;;  %v1443_v22 = vld [vmem:[#allocation7 + $0xa38] sm:$0xff]  ;;  %v6470_v47 = vld [vmem:[#allocation10 + $0xd8] sm:$0xff]  }
 0x30e   :  { %v6102_v31 = vcombine.high %v1439_v19, %v1443_v22  ;;  %v4396_v33 = vadd.f32 %v6890_v39, %v4353_v5  ;;  %v6458_v39 = vld [vmem:[#allocation10 + $0xf0] sm:$0xff]  }
 0x30f   :  { %4857 = vmatpush2.bf16.msra.mxu0 %v6125_v35  ;;  %v4525_v35 = vadd.f32 %v4524_v12, %v4482_v48  ;;  %v6455_v12 = vld [vmem:[#allocation10 + $0x38] sm:$0xff]   ;;  %v6460_v6 = vld [vmem:[#allocation10 + $0xb0] sm:$0xff]  }
 0x310   :  { %4900 = vmatpush2.bf16.msra.mxu1 %v6253_v37  ;;  %4858 = vmatprep.subr.bf16.mxu0 %v6118_v16  ;;  %v4572_v37 = vadd.f32 %v4571_v28, %v4529_v54  ;;  %v6101_v16 = vcombine.low %v1439_v19, %v1443_v22  ;;  %v4919_v63 = vmax.f32 %v4396_v33, 0.0  ;;  %v6466_v19 = vld [vmem:[#allocation10 + $0xe0] sm:$0xff]   ;;  %v1633_v22 = vrot.slane %v6912_v20, %v242_v26  ;;  %v6472_v26 = vld [vmem:[#allocation10 + $0x98] sm:$0xff]   ;;  %v6477_v28 = vld [vmem:[#allocation10 + $0x48] sm:$0xff]  }
 0x311   :  { %4901 = vmatprep.subr.bf16.mxu1 %v6246_v25  ;;  %v6453_v25 = vld [vmem:[#allocation10 + $0x78] sm:$0xff]   ;;  %v4568_v3 = vadd.f32 %v4567_v51, %v4525_v35  ;;  %v6459_v51 = vld [vmem:[#allocation10 + $0x30] sm:$0xff]   ;;  %v4441_v54 = vadd.f32 %v6904_v52, %v1641_v17  ;;  %v6479_v33 = vld [vmem:[#allocation10 + $0x8] sm:$0xff]  }
 0x312   :  { %v4929_v4 = vmax.f32 %v4572_v37, 0.0  ;;  %v4269_v48 = vadd.f32 %v6872_v50, %v1633_v22  ;;  %v4265_v5 = vadd.f32 %v6862_v30, %v1633_v22  ;;  %v6474_v35 = vld [vmem:[#allocation10 + $0xd0] sm:$0xff]  }
 0x313   :  { %4859 = vmatpush2.bf16.msra.mxu0 %v6117_v2  ;;  %v4921_v27 = vmax.f32 %v4568_v3, 0.0  ;;  %v4935_v2 = vpack.c.bf16 %v4927_v58, %v4919_v63  ;;  %v6475_v50 = vld [vmem:[#allocation10 + $0x10] sm:$0xff]   ;;  %v6485_v58 = vld [vmem:[#allocation10 + $0x178] sm:$0xff]  }
 0x314   :  { %4902 = vmatpush2.bf16.msra.mxu1 %v6245_v9  ;;  %4860 = vmatprep.subr.bf16.mxu0 %v6110_v40  ;;  %v6461_v9 = vld [vmem:[#allocation10 + $0x68] sm:$0xff]   ;;  %v4312_v29 = vadd.f32 %v6878_v13, %v4269_v48  ;;  %v4308_v52 = vadd.f32 %v6868_v43, %v4265_v5  ;;  %v6476_v30 = vld [vmem:[#allocation10 + $0x90] sm:$0xff]  }
 0x315   :  { %4903 = vmatprep.subr.bf16.mxu1 %v6238_v18  ;;  %v4937_v62 = vpack.c.bf16 %v4929_v4, %v4921_v27  ;;  %v6462_v40 = vld [vmem:[#allocation10 + $0xe8] sm:$0xff]   ;;  %v6501_v4 = vld [vmem:[#allocation10 + $0x1f8] sm:$0xff]   ;;  %v6495_v22 = vld [vmem:[#allocation10 + $0x150] sm:$0xff]  }
 0x316   :  { %v6464_v18 = vld [vmem:[#allocation10 + $0xa8] sm:$0xff]   ;;  %v4355_v44 = vadd.f32 %v6888_v34, %v4312_v29  ;;  %v4351_v13 = vadd.f32 %v6880_v14, %v4308_v52  ;;  %v6483_v14 = vld [vmem:[#allocation10] sm:$0xff]   ;;  %v6502_v27 = vld [vmem:[#allocation10 + $0x1b8] sm:$0xff]  }
 0x317   :  { %4861 = vmatpush2.bf16.msra.mxu0 %v6109_v32  ;;  %v6471_v32 = vld [vmem:[#allocation10 + $0x18] sm:$0xff]   ;;  %v6480_v34 = vld [vmem:[#allocation10 + $0x88] sm:$0xff]  }
 0x318   :  { %4904 = vmatpush2.bf16.msra.mxu1 %v6237_v10  ;;  %4862 = vmatprep.subr.bf16.mxu0 %v6102_v31  ;;  %v6473_v10 = vld [vmem:[#allocation10 + $0x50] sm:$0xff]   ;;  %v4437_v31 = vadd.f32 %v6896_v53, %v1641_v17  ;;  %v4398_v43 = vadd.f32 %v6894_v7, %v4355_v44  ;;  %v6497_v17 = vld [vmem:[#allocation10 + $0x148] sm:$0xff]  }
 0x319   :  { %4905 = vmatprep.subr.bf16.mxu1 %v6230_v57  ;;  %v4484_v57 = vadd.f32 %v6908_v45, %v4441_v54  ;;  %v6498_v48 = vld [vmem:[#allocation10 + $0x108] sm:$0xff]  }
 0x31a   :  { %v4480_v37 = vadd.f32 %v6902_v21, %v4437_v31  ;;  %v6482_v21 = vld [vmem:[#allocation10 + $0xc0] sm:$0xff]   ;;  %v1649_v31 = vrot.slane %v6912_v20, %v258_v60 }
 0x31b   :  { %4863 = vmatpush2.bf16.msra.mxu0 %v6101_v16  ;;  %v4527_v53 = vadd.f32 %v6923_v36, %v4484_v57  ;;  %v6478_v16 = vld [vmem:[#allocation10 + $0xc8] sm:$0xff]   ;;  %v4394_v36 = vadd.f32 %v6886_v55, %v4351_v13  ;;  %v6487_v55 = vld [vmem:[#allocation10 + $0x170] sm:$0xff]   ;;  %v6510_v13 = vld [vmem:[#allocation10 + $0x198] sm:$0xff]  }
 0x31c   :  { %4906 = vmatpush2.bf16.msra.mxu1 %v6229_v41  ;;  %6352 = vmatprep.subr.bf16.mxu0 %v6453_v25  ;;  %v4523_v45 = vadd.f32 %v6910_v46, %v4480_v37  ;;  %v6481_v41 = vld [vmem:[#allocation10 + $0x40] sm:$0xff]   ;;  %v6509_v37 = vld [vmem:[#allocation10 + $0x1d8] sm:$0xff]  }
 0x31d   :  { %6374 = vmatprep.subr.bf16.mxu1 %v6454_v42  ;;  %v4570_v25 = vadd.f32 %v6930_v0, %v4527_v53  ;;  %v4926_v42 = vmax.f32 %v4398_v43, 0.0  ;;  %v6484_v46 = vld [vmem:[#allocation10 + $0x80] sm:$0xff]   ;;  %v6486_v0 = vld [vmem:[#allocation10 + $0x138] sm:$0xff]  }
 0x31e   :  { %4865 = vmatmul.mubr.bf16.vlgmr.msra.gmra.mxu0 %v6834_v8  ;;  %v6465_v8 = vld [vmem:[#allocation10 + $0x60] sm:$0xff]   ;;  %v4566_v3 = vadd.f32 %v6917_v49, %v4523_v45 }
 0x31f   :  { %4908 = vmatmul.mubr.bf16.vlgmr.msra.gmra.mxu1 %v6838_v11  ;;  %6353 = vmatpush3.bf16.msra.mxu0 %v6455_v12  ;;  %v6467_v11 = vld [vmem:[#allocation10 + $0x20] sm:$0xff]   ;;  %v4928_v7 = vmax.f32 %v4570_v25, 0.0  ;;  %v4918_v12 = vmax.f32 %v4394_v36, 0.0 }
 0x320   :  { %5493 = vmatprep.mubr.bf16.mxu0 %v4935_v2  ;;  %6375 = vmatpush3.bf16.msra.mxu1 %v6456_v15  ;;  %v4920_v63 = vmax.f32 %v4566_v3, 0.0  ;;  %v6488_v2 = vld [vmem:[#allocation10 + $0x130] sm:$0xff]  }
 0x321   :  { %5534 = vmatprep.mubr.bf16.mxu1 %v4937_v62  ;;  %6354 = vmatprep.subr.bf16.mxu0 %v6457_v59  ;;  %v4934_v15 = vpack.c.bf16 %v4926_v42, %v4918_v12  ;;  %v6503_v59 = vld [vmem:[#allocation10 + $0x1f0] sm:$0xff]  }
 0x322   :  { %6376 = vmatprep.subr.bf16.mxu1 %v6458_v39  ;;  %v4936_v49 = vpack.c.bf16 %v4928_v7, %v4920_v63  ;;  %v6489_v39 = vld [vmem:[#allocation10 + $0x168] sm:$0xff]   ;;  %v6504_v62 = vld [vmem:[#allocation10 + $0x1b0] sm:$0xff]  }
 0x323   :  { %6355 = vmatpush3.bf16.msra.mxu0 %v6459_v51  ;;  %v6505_v51 = vld [vmem:[#allocation10 + $0x1e8] sm:$0xff]   ;;  %v6512_v42 = vld [vmem:[#allocation10 + $0x190] sm:$0xff]  }
 0x324   :  { %6377 = vmatpush3.bf16.msra.mxu1 %v6460_v6  ;;  %6356 = vmatprep.subr.bf16.mxu0 %v6461_v9  ;;  %v6490_v6 = vld [vmem:[#allocation10 + $0x128] sm:$0xff]   ;;  %v6491_v9 = vld [vmem:[#allocation10 + $0x160] sm:$0xff]  }
 0x325   :  { %6378 = vmatprep.subr.bf16.mxu1 %v6462_v40  ;;  %v6506_v40 = vld [vmem:[#allocation10 + $0x1a8] sm:$0xff]  }
 0x327   :  { %6357 = vmatpush3.bf16.msra.mxu0 %v6463_v1  ;;  %v6507_v1 = vld [vmem:[#allocation10 + $0x1e0] sm:$0xff]  }
 0x328   :  { %6379 = vmatpush3.bf16.msra.mxu1 %v6464_v18  ;;  %6358 = vmatprep.subr.bf16.mxu0 %v6465_v8  ;;  %v6492_v18 = vld [vmem:[#allocation10 + $0x120] sm:$0xff]   ;;  %v6493_v8 = vld [vmem:[#allocation10 + $0x158] sm:$0xff]  }
 0x329   :  { %6380 = vmatprep.subr.bf16.mxu1 %v6466_v19  ;;  %v6508_v19 = vld [vmem:[#allocation10 + $0x1a0] sm:$0xff]  }
 0x32b   :  { %6359 = vmatpush3.bf16.msra.mxu0 %v6467_v11  ;;  %v6494_v11 = vld [vmem:[#allocation10 + $0x118] sm:$0xff]  }
 0x32c   :  { %6381 = vmatpush3.bf16.msra.mxu1 %v6468_v38  ;;  %6360 = vmatprep.subr.bf16.mxu0 %v6469_v23  ;;  %v6496_v38 = vld [vmem:[#allocation10 + $0x110] sm:$0xff]   ;;  %v4608_v23 = vpop.f32.mrf.mxu0 }
 0x32d   :  { %6382 = vmatprep.subr.bf16.mxu1 %v6470_v47  ;;  %v4651_v47 = vpop.f32.mrf.mxu1 }
 0x32e   :  { %v4610_v54 = vpop.f32.mrf.mxu0 }
 0x32f   :  { %6361 = vmatpush3.bf16.msra.mxu0 %v6471_v32  ;;  %v6499_v32 = vld [vmem:[#allocation10 + $0x140] sm:$0xff]   ;;  %v4653_v5 = vpop.f32.mrf.mxu1 }
 0x330   :  { %6383 = vmatpush3.bf16.msra.mxu1 %v6472_v26  ;;  %6362 = vmatprep.subr.bf16.mxu0 %v6473_v10  ;;  %v1653_v26 = vrot.slane %v6912_v20, %v262_v56  ;;  %v6500_v10 = vld [vmem:[#allocation10 + $0x100] sm:$0xff]  }
 0x331   :  { %6384 = vmatprep.subr.bf16.mxu1 %v6474_v35  ;;  %v4612_v35 = vpop.f32.mrf.mxu0  ;;  %v4655_v29 = vpop.f32.mrf.mxu1 }
 0x332   :  { %v4611_v57 = vadd.f32 %v4610_v54, %v1653_v26  ;;  %v4613_v44 = vadd.f32 %v4612_v35, %v1649_v31 }
 0x333   :  { %6363 = vmatpush3.bf16.msra.mxu0 %v6475_v50  ;;  %v4609_v50 = vadd.f32 %v4608_v23, %v1649_v31  ;;  %v4614_v52 = vpop.f32.mrf.mxu0 }
 0x334   :  { %6385 = vmatpush3.bf16.msra.mxu1 %v6476_v30  ;;  %6364 = vmatprep.subr.bf16.mxu0 %v6477_v28  ;;  %v4657_v30 = vpop.f32.mrf.mxu1  ;;  %v4654_v53 = vadd.f32 %v4653_v5, %v4611_v57  ;;  %v4656_v43 = vadd.f32 %v4655_v29, %v4613_v44 }
 0x335   :  { %6386 = vmatprep.subr.bf16.mxu1 %v6478_v16  ;;  %v4615_v16 = vadd.f32 %v4614_v52, %v1653_v26  ;;  %v4652_v45 = vadd.f32 %v4651_v47, %v4609_v50 }
 0x337   :  { %6365 = vmatpush3.bf16.msra.mxu0 %v6479_v33  ;;  %v4658_v36 = vadd.f32 %v4657_v30, %v4615_v16 }
 0x338   :  { %6387 = vmatpush3.bf16.msra.mxu1 %v6480_v34  ;;  %6366 = vmatprep.subr.bf16.mxu0 %v6481_v41 }
 0x339   :  { %6388 = vmatprep.subr.bf16.mxu1 %v6482_v21  ;;  %v6511_v21 = vld [vmem:[#allocation10 + $0x1d0] sm:$0xff]  }
 0x33b   :  { %6367 = vmatpush3.bf16.msra.mxu0 %v6483_v14 }
 0x33c   :  { %6389 = vmatpush3.bf16.msra.mxu1 %v6484_v46  ;;  %6396 = vmatprep.subr.bf16.mxu0 %v6485_v58 }
 0x33d   :  { %6418 = vmatprep.subr.bf16.mxu1 %v6501_v4 }
 0x33e   :  { %5494 = vmatmul.mubr.bf16.vlgmr.msra.gmra.mxu0 %v4934_v15 }
 0x33f   :  { %5535 = vmatmul.mubr.bf16.vlgmr.msra.gmra.mxu1 %v4936_v49  ;;  %6397 = vmatpush3.bf16.msra.mxu0 %v6486_v0  ;;  %v6513_v0 = vld [vmem:[#allocation10 + $0x1c8] sm:$0xff]  }
 0x340   :  { %6398 = vmatprep.subr.bf16.mxu0 %v6487_v55  ;;  %6419 = vmatpush3.bf16.msra.mxu1 %v6502_v27  ;;  %v6514_v55 = vld [vmem:[#allocation10 + $0x188] sm:$0xff]  }
 0x341   :  { %6420 = vmatprep.subr.bf16.mxu1 %v6503_v59 }
 0x343   :  { %6399 = vmatpush3.bf16.msra.mxu0 %v6488_v2 }
 0x344   :  { %6400 = vmatprep.subr.bf16.mxu0 %v6489_v39  ;;  %6421 = vmatpush3.bf16.msra.mxu1 %v6504_v62  ;;  %v6515_v39 = vld [vmem:[#allocation10 + $0x1c0] sm:$0xff]  }
 0x345   :  { %6422 = vmatprep.subr.bf16.mxu1 %v6505_v51  ;;  %v6516_v51 = vld [vmem:[#allocation10 + $0x180] sm:$0xff]  }
 0x347   :  { %6401 = vmatpush3.bf16.msra.mxu0 %v6490_v6 }
 0x348   :  { %6402 = vmatprep.subr.bf16.mxu0 %v6491_v9  ;;  %6423 = vmatpush3.bf16.msra.mxu1 %v6506_v40 }
 0x349   :  { %6424 = vmatprep.subr.bf16.mxu1 %v6507_v1 }
 0x34b   :  { %6403 = vmatpush3.bf16.msra.mxu0 %v6492_v18 }
 0x34c   :  { %6404 = vmatprep.subr.bf16.mxu0 %v6493_v8  ;;  %6425 = vmatpush3.bf16.msra.mxu1 %v6508_v19  ;;  %v1661_v8 = vrot.slane %v6912_v20, %v270_v61  ;;  %v6984_v19 = vsub.s32 6, %v6778_v24 }
 0x34d   :  { %6426 = vmatprep.subr.bf16.mxu1 %v6509_v37 }
 0x34f   :  { %6405 = vmatpush3.bf16.msra.mxu0 %v6494_v11  ;;  %v1657_v11 = vrot.slane %v6912_v20, %v6984_v19 }
 0x350   :  { %6406 = vmatprep.subr.bf16.mxu0 %v6495_v22  ;;  %6427 = vmatpush3.bf16.msra.mxu1 %v6510_v13 }
 0x351   :  { %6428 = vmatprep.subr.bf16.mxu1 %v6511_v21 }
 0x353   :  { %6407 = vmatpush3.bf16.msra.mxu0 %v6496_v38 }
 0x354   :  { %6408 = vmatprep.subr.bf16.mxu0 %v6497_v17  ;;  %6429 = vmatpush3.bf16.msra.mxu1 %v6512_v42 }
 0x355   :  { %6430 = vmatprep.subr.bf16.mxu1 %v6513_v0 }
 0x357   :  { %6409 = vmatpush3.bf16.msra.mxu0 %v6498_v48 }
 0x358   :  { %6410 = vmatprep.subr.bf16.mxu0 %v6499_v32  ;;  %6431 = vmatpush3.bf16.msra.mxu1 %v6514_v55 }
 0x359   :  { %6432 = vmatprep.subr.bf16.mxu1 %v6515_v39 }
 0x35b   :  { %6411 = vmatpush3.bf16.msra.mxu0 %v6500_v10 }
 0x35c   :  { %6433 = vmatpush3.bf16.msra.mxu1 %v6516_v51 }
 0x35e   :  { %v4694_v28 = vpop.f32.mrf.mxu0 }
 0x35f   :  { %v4737_v56 = vpop.f32.mrf.mxu1  ;;  %v4695_v41 = vadd.f32 %v4694_v28, %v4652_v45 }
 0x360   :  { %v4696_v33 = vpop.f32.mrf.mxu0 }
 0x361   :  { %v4697_v60 = vadd.f32 %v4696_v33, %v4654_v53  ;;  %v4739_v34 = vpop.f32.mrf.mxu1  ;;  %v4738_v12 = vadd.f32 %v4737_v56, %v4695_v41 }
 0x362   :  { %v4698_v25 = vpop.f32.mrf.mxu0 }
 0x363   :  { %v4699_v3 = vadd.f32 %v4698_v25, %v4656_v43  ;;  %v4741_v14 = vpop.f32.mrf.mxu1  ;;  %v4740_v58 = vadd.f32 %v4739_v34, %v4697_v60  ;;  %v4922_v2 = vmax.f32 %v4738_v12, 0.0 }
 0x364   :  { %v4700_v46 = vpop.f32.mrf.mxu0 }
 0x365   :  { %v4742_v7 = vadd.f32 %v4741_v14, %v4699_v3  ;;  %v4701_v4 = vadd.f32 %v4700_v46, %v4658_v36  ;;  %v4743_v63 = vpop.f32.mrf.mxu1  ;;  %v4923_v49 = vmax.f32 %v4740_v58, 0.0 }
 0x367   :  { %v4744_v15 = vadd.f32 %v4743_v63, %v4701_v4  ;;  %v4930_v27 = vmax.f32 %v4742_v7, 0.0  ;;  %v6287_v4 = vld [vmem:[#allocation11] ss:$0 sm:$0xff] }
 0x369   :  { %v4931_v59 = vmax.f32 %v4744_v15, 0.0  ;;  %v4938_v6 = vpack.c.bf16 %v4930_v27, %v4922_v2 }
 0x36b   :  { %v4939_v62 = vpack.c.bf16 %v4931_v59, %v4923_v49 }
 0x36d   :  { %5575 = vmatprep.mubr.bf16.mxu0 %v4939_v62 }
 0x36e   :  { %5576 = vmatmul.mubr.bf16.vlgmr.msra.gmra.mxu0 %v4938_v6 }
 0x39e   :  { %v4780_v9 = vpop.f32.mrf.mxu0 }
 0x39f   :  { %v4823_v40 = vpop.f32.mrf.mxu1  ;;  %v4781_v17 = vadd.f32 %v4780_v9, %v1657_v11 }
 0x3a0   :  { %v4782_v1 = vpop.f32.mrf.mxu0 }
 0x3a1   :  { %v4825_v18 = vpop.f32.mrf.mxu1  ;;  %v4783_v23 = vadd.f32 %v4782_v1, %v1661_v8  ;;  %v4824_v31 = vadd.f32 %v4823_v40, %v4781_v17 }
 0x3a2   :  { %v4784_v22 = vpop.f32.mrf.mxu0 }
 0x3a3   :  { %v4827_v38 = vpop.f32.mrf.mxu1  ;;  %v4785_v48 = vadd.f32 %v4784_v22, %v1657_v11  ;;  %v4826_v5 = vadd.f32 %v4825_v18, %v4783_v23 }
 0x3a4   :  { %v4786_v47 = vpop.f32.mrf.mxu0 }
 0x3a5   :  { %v4829_v54 = vpop.f32.mrf.mxu1  ;;  %v4787_v26 = vadd.f32 %v4786_v47, %v1661_v8  ;;  %v4828_v29 = vadd.f32 %v4827_v38, %v4785_v48 }
 0x3a7   :  { %v4830_v52 = vadd.f32 %v4829_v54, %v4787_v26 }
 0x3de   :  { %v4866_v32 = vpop.f32.mrf.mxu0 }
 0x3df   :  { %v4909_v10 = vpop.f32.mrf.mxu1  ;;  %v4867_v50 = vadd.f32 %v4866_v32, %v4824_v31 }
 0x3e0   :  { %v4868_v35 = vpop.f32.mrf.mxu0 }
 0x3e1   :  { %v4869_v57 = vadd.f32 %v4868_v35, %v4826_v5  ;;  %v4911_v61 = vpop.f32.mrf.mxu1  ;;  %v4910_v16 = vadd.f32 %v4909_v10, %v4867_v50 }
 0x3e2   :  { %v4870_v24 = vpop.f32.mrf.mxu0 }
 0x3e3   :  { %v4871_v20 = vadd.f32 %v4870_v24, %v4828_v29  ;;  %v4913_v44 = vpop.f32.mrf.mxu1  ;;  %v4912_v28 = vadd.f32 %v4911_v61, %v4869_v57  ;;  %v4924_v60 = vmax.f32 %v4910_v16, 0.0 }
 0x3e4   :  { %v4872_v30 = vpop.f32.mrf.mxu0 }
 0x3e5   :  { %v4914_v37 = vadd.f32 %v4913_v44, %v4871_v20  ;;  %v4873_v53 = vadd.f32 %v4872_v30, %v4830_v52  ;;  %v4915_v56 = vpop.f32.mrf.mxu1  ;;  %v4925_v33 = vmax.f32 %v4912_v28, 0.0 }
 0x3e7   :  { %v4916_v13 = vadd.f32 %v4915_v56, %v4873_v53  ;;  %v4932_v45 = vmax.f32 %v4914_v37, 0.0 }
 0x3e9   :  { %v4933_v43 = vmax.f32 %v4916_v13, 0.0  ;;  %v4940_v41 = vpack.c.bf16 %v4932_v45, %v4924_v60 }
 0x3eb   :  { %v4941_v34 = vpack.c.bf16 %v4933_v43, %v4925_v33 }
 0x3ed   :  { %5616 = vmatprep.mubr.bf16.mxu1 %v4941_v34 }
 0x3ee   :  { %5617 = vmatmul.mubr.bf16.vlgmr.msra.gmra.mxu1 %v4940_v41 }
 0x3fe   :  { %v6368_v25 = vpop.f32.mrf.mxu0 }
 0x3ff   :  { %v6390_v3 = vpop.f32.mrf.mxu1 }
 0x400   :  { %v6369_v21 = vpop.f32.mrf.mxu0 }
 0x401   :  { %v6391_v46 = vpop.f32.mrf.mxu1  ;;  %v6370_v7 = vadd.f32 %v6369_v21, %v6368_v25 }
 0x402   :  { %v6371_v36 = vpop.f32.mrf.mxu0  ;;  %v6392_v27 = vadd.f32 %v6391_v46, %v6390_v3 }
 0x403   :  { %v6393_v12 = vpop.f32.mrf.mxu1  ;;  %v5496_v0 = vadd.f32 %v6370_v7, %v6287_v4 }
 0x404   :  { %v6372_v14 = vpop.f32.mrf.mxu0 }
 0x405   :  { %v6373_v15 = vadd.f32 %v6372_v14, %v6371_v36  ;;  %v6394_v55 = vpop.f32.mrf.mxu1  ;;  %v5537_v39 = vadd.f32 %v6392_v27, %v5496_v0 }
 0x406   :  { %v6395_v6 = vadd.f32 %v6394_v55, %v6393_v12 }
 0x407   :  { %v5499_v62 = vadd.f32 %v6373_v15, %v6287_v4 }
 0x409   :  { %v5540_v8 = vadd.f32 %v6395_v6, %v5499_v62 }
 0x42e   :  { %v6412_v42 = vpop.f32.mrf.mxu0 }
 0x430   :  { %v6413_v58 = vpop.f32.mrf.mxu0 }
 0x431   :  { %v6414_v49 = vadd.f32 %v6413_v58, %v6412_v42 }
 0x432   :  { %v6415_v63 = vpop.f32.mrf.mxu0 }
 0x433   :  { %v5578_v9 = vadd.f32 %v6414_v49, %v5537_v39 }
 0x434   :  { %v6416_v59 = vpop.f32.mrf.mxu0 }
 0x435   :  { %v6417_v40 = vadd.f32 %v6416_v59, %v6415_v63 }
 0x437   :  { %v5581_v22 = vadd.f32 %v6417_v40, %v5540_v8 }
 0x4ae   :  { %v6434_v2 = vpop.f32.mrf.mxu1 }
 0x4b0   :  { %v6435_v51 = vpop.f32.mrf.mxu1 }
 0x4b1   :  { %v6436_v1 = vadd.f32 %v6435_v51, %v6434_v2 }
 0x4b2   :  { %v6437_v18 = vpop.f32.mrf.mxu1 }
 0x4b3   :  { %v5619_v19 = vadd.f32 %v6436_v1, %v5578_v9 }
 0x4b4   :  { %v6438_v11 = vpop.f32.mrf.mxu1 }
 0x4b5   :  { %5625 = vst [vmem:[#allocation13] sm:$0xff] %v5619_v19  ;;  %v6439_v38 = vadd.f32 %v6438_v11, %v6437_v18 }
 0x4b7   :  { %v5622_v23 = vadd.f32 %v6439_v38, %v5581_v22 }
 0x4b9   :  { %5626 = vst [vmem:[#allocation13 + $0x8] sm:$0xff] %v5622_v23 }
 0x4ba   :  { %6648 = shalt.err (!%p6645_p6)
}
 0x4bb   :  { %s6678_s16 = smov 128   ;;  %s6679_s17 = smov 8  }
 0x4bc   :  { %5638 = dma.vmem_to_hbm [thread:$0]  %s5633_s14, 256, %s6982_s7, [#allocation4], %s6678_s16, %s6678_s16, %s6679_s17  }
 0x4bd   :  { %6665 = dma.done.wait [#allocation4], 256  }
 0x4be   :  { %6666 = vsyncadd [#allocation4], 4294967040 }
 0x4bf   :  { %5642 = vsyncpa [#allocation3], 1 }
 0x4c0   :  { %5643 = vsyncpa [#allocation6], 1 }
 0x4c1   :  { %5644 = vsyncpa [#allocation9], 1 }
 0x4c2   :  { %5645 = vsyncpa [#allocation12], 1 }
 0x4c3   :  { %5646 = vsyncpa [#allocation4], 1 }

</bundles_post_ra>
